<compile_context>
chip_gen: v7x
topology: tpu7x:2x2x1
jax: 0.10.0
libtpu: 0.0.40
codegen_flags: <defaults>
</compile_context>

<pallas_src>
import functools
import math

import jax
import jax.numpy as jnp
from jax import lax
from jax.experimental import pallas as pl
from jax.experimental.pallas import tpu as pltpu


# ---------------------------------------------------------------------------
# Small helpers
# ---------------------------------------------------------------------------
def _round_up(x, m):
    return (x + m - 1) // m * m


def _padded_bytes(sublane, lane, itemsize):
    """Conservative VMEM footprint of a (sublane, lane) tile (8 x 128 tiling)."""
    return _round_up(sublane, 8) * _round_up(lane, 128) * itemsize


def _vmem_limit_bytes(total):
    # Derived from the actual buffer sum (+25% and 4 MiB headroom for compiler
    # internal scratch); floored at 24 MiB, capped so v7x (64 MiB physical VMEM)
    # keeps headroom.
    return int(min(max(total + total // 4 + (4 << 20), 24 << 20), 48 << 20))


# ---------------------------------------------------------------------------
# Fused im2col + matmul kernel (stride == 1 path)
# ---------------------------------------------------------------------------
def _fused_conv_kernel(w_ref, x_ref, o_ref, acc_ref, *, kh, kw, w_pad, t_tile):
    # w_ref  : VMEM (1, kh*kw, C_in, C_out)  alpha-mixed weights for batch b
    #                                        (resident across the P-tile axis)
    # x_ref  : VMEM (1, L_in, C_in)          whole padded input for batch b,
    #                                        channels-last, spatial flattened
    #                                        (resident across the P-tile axis)
    # o_ref  : VMEM (1, t_tile, C_out)       "wide" output tile (flat padded coords)
    # acc_ref: VMEM (t_tile, C_out) f32      accumulator scratch
    p = pl.program_id(1)
    t0 = pl.multiple_of(p * t_tile, 8)

    acc_ref[...] = jnp.zeros_like(acc_ref)
    for i in range(kh):
        for j in range(kw):
            off = i * w_pad + j          # static shift in flat padded coordinates
            base = (off // 8) * 8        # keep the dynamic slice 8-aligned
            rem = off - base             # static residual shift (0..7)
            start = pl.multiple_of(t0 + base, 8)
            win = x_ref[0, pl.ds(start, t_tile + 8), :]              # (T+8, C_in)
            slab = lax.slice_in_dim(win, rem, rem + t_tile, axis=0)  # (T,   C_in)
            acc_ref[...] += jnp.dot(slab, w_ref[0, i * kw + j],
                                    preferred_element_type=jnp.float32)
    o_ref[0] = acc_ref[...].astype(o_ref.dtype)


def _plan_fused_tile(p_wide, halo, c_in, c_out, kk, in_isz, out_isz,
                     budget_bytes=28 << 20, max_t=4096):
    """Pick the wide-output tile T (multiple of 8) from a VMEM budget covering
    every double-buffered block; return None if the resident input cannot fit."""
    w_fix = 2 * kk * _padded_bytes(c_in, c_out, in_isz)     # dbl-buffered weights
    t_cap = min(max_t, _round_up(p_wide, 8))
    cands = sorted({t_cap} | {min(t_cap, v)
                              for v in (4096, 2048, 1024, 512, 256, 128, 64, 32, 16, 8)},
                   reverse=True)
    for t in cands:
        t = max(8, _round_up(t, 8))
        p_pad = _round_up(p_wide, t)
        l_in = _round_up(p_pad + halo + 8, 8)
        total = (w_fix
                 + 2 * _padded_bytes(l_in, c_in, in_isz)    # resident input, dbl-buffered
                 + 2 * _padded_bytes(t, c_out, out_isz)     # output tile, dbl-buffered
                 + _padded_bytes(t, c_out, 4))              # f32 accumulator
        if total <= budget_bytes:
            return t, p_pad, l_in, total
    return None


def _lla_conv2d_fused(x, alpha, kernel_embed, padding, out_dtype, compute_dtype):
    B, C_in, H, W = x.shape
    E, C_out, _, kh, kw = kernel_embed.shape
    H_pad, W_pad = H + 2 * padding, W + 2 * padding
    H_out, W_out = H_pad - kh + 1, W_pad - kw + 1
    kk = kh * kw

    in_isz = jnp.dtype(compute_dtype).itemsize
    out_isz = jnp.dtype(out_dtype).itemsize

    halo = (kh - 1) * W_pad + (kw - 1)
    P_wide = H_out * W_pad                       # wide-output coords t = r*W_pad + c
    plan = _plan_fused_tile(P_wide, halo, C_in, C_out, kk, in_isz, out_isz)
    if plan is None:
        return None                              # padded image too big to keep resident
    T, P_pad, L_in, vmem_total = plan

    # Channels-last, padded, spatial-flattened input (single pass over x).
    x_nhwc = jnp.pad(jnp.transpose(x, (0, 2, 3, 1)).astype(compute_dtype),
                     ((0, 0), (padding, padding), (padding, padding), (0, 0)))
    x_flat = x_nhwc.reshape(B, H_pad * W_pad, C_in)
    x_flat = jnp.pad(x_flat, ((0, 0), (0, L_in - H_pad * W_pad), (0, 0)))

    # Hoisted alpha-mix (tiny f32 einsum), laid out (B, kh*kw, C_in, C_out).
    w_k = jnp.einsum("be,eoihw->bhwio", alpha.astype(jnp.float32),
                     kernel_embed.astype(jnp.float32))
    w_k = w_k.reshape(B, kk, C_in, C_out).astype(compute_dtype)

    grid = (B, P_pad // T)
    kernel = functools.partial(_fused_conv_kernel, kh=kh, kw=kw,
                               w_pad=W_pad, t_tile=T)

    flops = 2 * B * C_out * C_in * kk * P_pad
    bytes_accessed = (B * L_in * C_in * in_isz
                      + B * kk * C_in * C_out * in_isz
                      + B * P_pad * C_out * out_isz)

    out_wide = pl.pallas_call(
        kernel,
        out_shape=jax.ShapeDtypeStruct((B, P_pad, C_out), out_dtype),
        grid_spec=pltpu.PrefetchScalarGridSpec(
            num_scalar_prefetch=0,
            grid=grid,
            in_specs=[
                # Weights + input depend only on b -> stay resident across the
                # inner P-tile grid axis (no re-DMA).
                pl.BlockSpec((1, kk, C_in, C_out), lambda b, p: (b, 0, 0, 0)),
                pl.BlockSpec((1, L_in, C_in), lambda b, p: (b, 0, 0)),
            ],
            out_specs=pl.BlockSpec((1, T, C_out), lambda b, p: (b, p, 0)),
            scratch_shapes=[pltpu.VMEM((T, C_out), jnp.float32)],
        ),
        compiler_params=pltpu.CompilerParams(
            dimension_semantics=("parallel", "parallel"),
            vmem_limit_bytes=_vmem_limit_bytes(vmem_total),
        ),
        cost_estimate=pl.CostEstimate(flops=flops, transcendentals=0,
                                      bytes_accessed=bytes_accessed),
    )(w_k, x_flat)

    # Valid columns: t = r*W_pad + c with c < W_out; everything else is garbage.
    out = out_wide[:, :P_wide, :].reshape(B, H_out, W_pad, C_out)[:, :, :W_out, :]
    return jnp.transpose(out, (0, 3, 1, 2))


# ---------------------------------------------------------------------------
# Fallback: im2col in the wrapper + single MXU matmul kernel (any stride)
# ---------------------------------------------------------------------------
def _im2col_matmul_kernel(w_ref, x_ref, o_ref):
    # w_ref: (1, C_out, K); x_ref: (1, K, TP); o_ref: (1, C_out, TP) lane-dense.
    o_ref[0] = lax.dot_general(
        w_ref[0], x_ref[0],
        dimension_numbers=(((1,), (0,)), ((), ())),
        preferred_element_type=jnp.float32,
    ).astype(o_ref.dtype)


def _im2col_kp(x, kh, kw, stride, padding):
    """x: [B,C,H,W] -> patches [B, C*kh*kw, H_out*W_out] in (c, i, j) feature
    order, built directly in final order (no stack-then-transpose pass)."""
    B, C, H, W = x.shape
    s, p = stride, padding
    H_out = (H + 2 * p - kh) // s + 1
    W_out = (W + 2 * p - kw) // s + 1
    x_pad = jnp.pad(x, ((0, 0), (0, 0), (p, p), (p, p)))
    cols = [x_pad[:, :, i:i + s * H_out:s, j:j + s * W_out:s]
            for i in range(kh) for j in range(kw)]
    patches = jnp.stack(cols, axis=2)             # (B, C, kh*kw, H_out, W_out)
    return patches.reshape(B, C * kh * kw, H_out * W_out), H_out, W_out


def _pick_p_tile(P, K, C_out, in_isz, out_isz, budget_bytes=32 << 20, max_tp=4096):
    fixed = 2 * _padded_bytes(C_out, K, in_isz)                # dbl-buffered weights
    per_col = 2 * (_round_up(K, 8) * in_isz + _round_up(C_out, 8) * out_isz)
    tp = (max(budget_bytes - fixed, 1 << 20) // max(per_col, 1)) // 128 * 128
    tp = max(128, min(tp, max_tp))
    tp = min(tp, _round_up(P, 128))
    return tp, fixed + per_col * tp


def _lla_conv2d_im2col(x, alpha, kernel_embed, stride, padding, out_dtype,
                       compute_dtype):
    B, C_in, H, W = x.shape
    E, C_out, _, kh, kw = kernel_embed.shape
    K = C_in * kh * kw

    patches, H_out, W_out = _im2col_kp(x, kh, kw, stride, padding)
    P = H_out * W_out

    w_flat = kernel_embed.reshape(E, C_out, K).astype(jnp.float32)
    w_mixed = jnp.einsum("be,eok->bok", alpha.astype(jnp.float32),
                         w_flat).astype(compute_dtype)
    patches = patches.astype(compute_dtype)

    in_isz = jnp.dtype(compute_dtype).itemsize
    out_isz = jnp.dtype(out_dtype).itemsize
    TP, vmem_total = _pick_p_tile(P, K, C_out, in_isz, out_isz)
    P_pad = _round_up(P, TP)
    if P_pad != P:
        patches = jnp.pad(patches, ((0, 0), (0, 0), (0, P_pad - P)))

    flops = 2 * B * C_out * K * P_pad
    bytes_accessed = (B * K * P_pad * in_isz + B * C_out * K * in_isz
                      + B * C_out * P_pad * out_isz)

    out = pl.pallas_call(
        _im2col_matmul_kernel,
        out_shape=jax.ShapeDtypeStruct((B, C_out, P_pad), out_dtype),
        grid_spec=pltpu.PrefetchScalarGridSpec(
            num_scalar_prefetch=0,
            grid=(B, P_pad // TP),
            in_specs=[
                pl.BlockSpec((1, C_out, K), lambda b, p: (b, 0, 0)),
                pl.BlockSpec((1, K, TP), lambda b, p: (b, 0, p)),
            ],
            out_specs=pl.BlockSpec((1, C_out, TP), lambda b, p: (b, 0, p)),
        ),
        compiler_params=pltpu.CompilerParams(
            dimension_semantics=("parallel", "parallel"),
            vmem_limit_bytes=_vmem_limit_bytes(vmem_total),
        ),
        cost_estimate=pl.CostEstimate(flops=flops, transcendentals=0,
                                      bytes_accessed=bytes_accessed),
    )(w_mixed, patches)

    if P_pad != P:
        out = out[:, :, :P]
    return out.reshape(B, C_out, H_out, W_out)


# ---------------------------------------------------------------------------
# Public entry point
# ---------------------------------------------------------------------------
def lla_conv2d(x, alpha, kernel_embed, *, stride=1, padding=0,
               compute_dtype=jnp.bfloat16, out_dtype=None):
    """x: [B, C_in, H, W], alpha: [B, E], kernel_embed: [E, C_out, C_in, kh, kw].

    Set compute_dtype=jnp.float32 for bit-tighter matching of the PyTorch f32
    conv; set out_dtype=jnp.bfloat16 to halve output HBM traffic.
    """
    B, C_in, H, W = x.shape
    E, C_out, C_in_w, kh, kw = kernel_embed.shape
    assert C_in_w == C_in and alpha.shape == (B, E)
    if out_dtype is None:
        out_dtype = x.dtype

    if stride == 1:
        out = _lla_conv2d_fused(x, alpha, kernel_embed, padding, out_dtype,
                                compute_dtype)
        if out is not None:
            return out
    # TODO(synk): fused path for stride>1 / row-tiled resident input with halo
    # for very large images; both currently fall back to the im2col matmul.
    return _lla_conv2d_im2col(x, alpha, kernel_embed, stride, padding,
                              out_dtype, compute_dtype)


# ---------------------------------------------------------------------------
# Parameter init (matches torch kaiming_uniform_(a=sqrt(5)) per embedding)
# ---------------------------------------------------------------------------
def init_kernel_embed(key, num_embeddings, out_channels, in_channels, kh, kw):
    fan_in = in_channels * kh * kw
    bound = 1.0 / math.sqrt(fan_in)
    return jax.random.uniform(
        key, (num_embeddings, out_channels, in_channels, kh, kw),
        dtype=jnp.float32, minval=-bound, maxval=bound)


# ---------------------------------------------------------------------------
# Pure-JAX reference
# ---------------------------------------------------------------------------
def _reference(x, alpha, kernel_embed, stride, padding):
    kernels = jnp.einsum("be,eoikl->boikl", alpha, kernel_embed)

    def one(xi, wi):
        return lax.conv_general_dilated(
            xi[None], wi, window_strides=(stride, stride),
            padding=[(padding, padding), (padding, padding)],
            dimension_numbers=("NCHW", "OIHW", "NCHW"))[0]

    return jax.vmap(one)(x, kernels)


if __name__ == "__main__":
    key = jax.random.PRNGKey(0)
    k1, k2, k3 = jax.random.split(key, 3)

    B, C_in, H, W = 2, 4, 16, 16
    C_out, E = 8, 3
    kh, kw = 3, 3

    x = jax.random.normal(k1, (B, C_in, H, W), dtype=jnp.float32)
    alpha = jax.nn.softmax(jax.random.normal(k2, (B, E), dtype=jnp.float32), axis=-1)
    kernel_embed = init_kernel_embed(k3, E, C_out, C_in, kh, kw)

    # Fused-im2col path (stride=1, padding=1).
    out = lla_conv2d(x, alpha, kernel_embed, stride=1, padding=1)
    out = jax.block_until_ready(out)
    ref = _reference(x, alpha, kernel_embed, 1, 1)
    assert out.shape == ref.shape, (out.shape, ref.shape)
    # bf16 matmul operands, f32 accumulation -> loose-ish tolerance.
    assert jnp.allclose(out, ref, atol=2e-2, rtol=2e-2), "fused path mismatch"

    # Fallback im2col-matmul path (stride=2).
    out2 = lla_conv2d(x, alpha, kernel_embed, stride=2, padding=1)
    out2 = jax.block_until_ready(out2)
    ref2 = _reference(x, alpha, kernel_embed, 2, 1)
    assert out2.shape == ref2.shape, (out2.shape, ref2.shape)
    assert jnp.allclose(out2, ref2, atol=2e-2, rtol=2e-2), "im2col path mismatch"

    print("KERNEL_OK")
</pallas_src>

<mosaic_0001>
module attributes {stable_mosaic.version = 11 : i64} {
  func.func @_fused_conv_kernel(%arg0: i32, %arg1: i32, %arg2: memref<1x9x4x8xbf16, #tpu.memory_space<vmem>>, %arg3: memref<1x336x4xbf16, #tpu.memory_space<vmem>>, %arg4: memref<1x288x8xf32, #tpu.memory_space<vmem>>, %arg5: memref<288x8xf32, #tpu.memory_space<vmem>>) attributes {dimension_semantics = [#tpu.dimension_semantics<parallel>, #tpu.dimension_semantics<parallel>], iteration_bounds = array<i64: 2, 1>, scalar_prefetch = 0 : i64, scratch_operands = 1 : i64, tpu.core_type = #tpu.core_type<tc>, window_params = [{transform_indices = @transform_0, window_bounds = array<i64: 1, 9, 4, 8>}, {transform_indices = @transform_1, window_bounds = array<i64: 1, 336, 4>}, {transform_indices = @transform_2, window_bounds = array<i64: 1, 288, 8>}]} {
    %c288_i32 = arith.constant 288 : i32
    %0 = arith.muli %arg1, %c288_i32 : i32
    %1 = tpu.assume_multiple %0, 8 : i32
    %cst = arith.constant 0.000000e+00 : f32
    %2 = vector.broadcast %cst : f32 to vector<288x8xf32>
    %c0 = arith.constant 0 : index
    %c0_0 = arith.constant 0 : index
    %3 = vector.load %arg5[%c0, %c0_0] : memref<288x8xf32, #tpu.memory_space<vmem>>, vector<288x8xf32>
    tpu.vector_store %arg5[%c0, %c0_0], %2 {strides = array<i32>} : memref<288x8xf32, #tpu.memory_space<vmem>>, vector<288x8xf32>,
    %c0_i32 = arith.constant 0 : i32
    %4 = arith.addi %1, %c0_i32 : i32
    %5 = tpu.assume_multiple %4, 8 : i32
    %c0_1 = arith.constant 0 : index
    %6 = arith.index_cast %5 : i32 to index
    %c0_2 = arith.constant 0 : index
    %7 = vector.load %arg3[%c0_1, %6, %c0_2] : memref<1x336x4xbf16, #tpu.memory_space<vmem>>, vector<1x296x4xbf16>
    %8 = vector.shape_cast %7 : vector<1x296x4xbf16> to vector<296x4xbf16>
    %9 = vector.extract_strided_slice %8 {offsets = [0, 0], sizes = [288, 4], strides = [1, 1]} : vector<296x4xbf16> to vector<288x4xbf16>
    %c0_3 = arith.constant 0 : index
    %c0_4 = arith.constant 0 : index
    %10 = vector.load %arg5[%c0_3, %c0_4] : memref<288x8xf32, #tpu.memory_space<vmem>>, vector<288x8xf32>
    %c0_5 = arith.constant 0 : index
    %c0_6 = arith.constant 0 : index
    %c0_7 = arith.constant 0 : index
    %c0_8 = arith.constant 0 : index
    %11 = vector.load %arg2[%c0_5, %c0_6, %c0_7, %c0_8] : memref<1x9x4x8xbf16, #tpu.memory_space<vmem>>, vector<1x1x4x8xbf16>
    %12 = vector.shape_cast %11 : vector<1x1x4x8xbf16> to vector<4x8xbf16>
    %cst_9 = arith.constant dense<0.000000e+00> : vector<288x8xf32>
    %13 = tpu.matmul %9, %12, %cst_9 {dimension_numbers = #tpu.dot_dimension_numbers<[1], [0], [0], [1], [0, 0, 1, 1], [], []>} : vector<288x4xbf16>, vector<4x8xbf16>, vector<288x8xf32> -> vector<288x8xf32>
    %14 = arith.addf %10, %13 : vector<288x8xf32>
    %c0_10 = arith.constant 0 : index
    %c0_11 = arith.constant 0 : index
    %15 = vector.load %arg5[%c0_10, %c0_11] : memref<288x8xf32, #tpu.memory_space<vmem>>, vector<288x8xf32>
    tpu.vector_store %arg5[%c0_10, %c0_11], %14 {strides = array<i32>} : memref<288x8xf32, #tpu.memory_space<vmem>>, vector<288x8xf32>,
    %c0_i32_12 = arith.constant 0 : i32
    %16 = arith.addi %1, %c0_i32_12 : i32
    %17 = tpu.assume_multiple %16, 8 : i32
    %c0_13 = arith.constant 0 : index
    %18 = arith.index_cast %17 : i32 to index
    %c0_14 = arith.constant 0 : index
    %19 = vector.load %arg3[%c0_13, %18, %c0_14] : memref<1x336x4xbf16, #tpu.memory_space<vmem>>, vector<1x296x4xbf16>
    %20 = vector.shape_cast %19 : vector<1x296x4xbf16> to vector<296x4xbf16>
    %21 = vector.extract_strided_slice %20 {offsets = [1, 0], sizes = [288, 4], strides = [1, 1]} : vector<296x4xbf16> to vector<288x4xbf16>
    %c0_15 = arith.constant 0 : index
    %c0_16 = arith.constant 0 : index
    %22 = vector.load %arg5[%c0_15, %c0_16] : memref<288x8xf32, #tpu.memory_space<vmem>>, vector<288x8xf32>
    %c0_17 = arith.constant 0 : index
    %c1 = arith.constant 1 : index
    %c0_18 = arith.constant 0 : index
    %c0_19 = arith.constant 0 : index
    %23 = vector.load %arg2[%c0_17, %c1, %c0_18, %c0_19] : memref<1x9x4x8xbf16, #tpu.memory_space<vmem>>, vector<1x1x4x8xbf16>
    %24 = vector.shape_cast %23 : vector<1x1x4x8xbf16> to vector<4x8xbf16>
    %cst_20 = arith.constant dense<0.000000e+00> : vector<288x8xf32>
    %25 = tpu.matmul %21, %24, %cst_20 {dimension_numbers = #tpu.dot_dimension_numbers<[1], [0], [0], [1], [0, 0, 1, 1], [], []>} : vector<288x4xbf16>, vector<4x8xbf16>, vector<288x8xf32> -> vector<288x8xf32>
    %26 = arith.addf %22, %25 : vector<288x8xf32>
    %c0_21 = arith.constant 0 : index
    %c0_22 = arith.constant 0 : index
    %27 = vector.load %arg5[%c0_21, %c0_22] : memref<288x8xf32, #tpu.memory_space<vmem>>, vector<288x8xf32>
    tpu.vector_store %arg5[%c0_21, %c0_22], %26 {strides = array<i32>} : memref<288x8xf32, #tpu.memory_space<vmem>>, vector<288x8xf32>,
    %c0_i32_23 = arith.constant 0 : i32
    %28 = arith.addi %1, %c0_i32_23 : i32
    %29 = tpu.assume_multiple %28, 8 : i32
    %c0_24 = arith.constant 0 : index
    %30 = arith.index_cast %29 : i32 to index
    %c0_25 = arith.constant 0 : index
    %31 = vector.load %arg3[%c0_24, %30, %c0_25] : memref<1x336x4xbf16, #tpu.memory_space<vmem>>, vector<1x296x4xbf16>
    %32 = vector.shape_cast %31 : vector<1x296x4xbf16> to vector<296x4xbf16>
    %33 = vector.extract_strided_slice %32 {offsets = [2, 0], sizes = [288, 4], strides = [1, 1]} : vector<296x4xbf16> to vector<288x4xbf16>
    %c0_26 = arith.constant 0 : index
    %c0_27 = arith.constant 0 : index
    %34 = vector.load %arg5[%c0_26, %c0_27] : memref<288x8xf32, #tpu.memory_space<vmem>>, vector<288x8xf32>
    %c0_28 = arith.constant 0 : index
    %c2 = arith.constant 2 : index
    %c0_29 = arith.constant 0 : index
    %c0_30 = arith.constant 0 : index
    %35 = vector.load %arg2[%c0_28, %c2, %c0_29, %c0_30] : memref<1x9x4x8xbf16, #tpu.memory_space<vmem>>, vector<1x1x4x8xbf16>
    %36 = vector.shape_cast %35 : vector<1x1x4x8xbf16> to vector<4x8xbf16>
    %cst_31 = arith.constant dense<0.000000e+00> : vector<288x8xf32>
    %37 = tpu.matmul %33, %36, %cst_31 {dimension_numbers = #tpu.dot_dimension_numbers<[1], [0], [0], [1], [0, 0, 1, 1], [], []>} : vector<288x4xbf16>, vector<4x8xbf16>, vector<288x8xf32> -> vector<288x8xf32>
    %38 = arith.addf %34, %37 : vector<288x8xf32>
    %c0_32 = arith.constant 0 : index
    %c0_33 = arith.constant 0 : index
    %39 = vector.load %arg5[%c0_32, %c0_33] : memref<288x8xf32, #tpu.memory_space<vmem>>, vector<288x8xf32>
    tpu.vector_store %arg5[%c0_32, %c0_33], %38 {strides = array<i32>} : memref<288x8xf32, #tpu.memory_space<vmem>>, vector<288x8xf32>,
    %c16_i32 = arith.constant 16 : i32
    %40 = arith.addi %1, %c16_i32 : i32
    %41 = tpu.assume_multiple %40, 8 : i32
    %c0_34 = arith.constant 0 : index
    %42 = arith.index_cast %41 : i32 to index
    %c0_35 = arith.constant 0 : index
    %43 = vector.load %arg3[%c0_34, %42, %c0_35] : memref<1x336x4xbf16, #tpu.memory_space<vmem>>, vector<1x296x4xbf16>
    %44 = vector.shape_cast %43 : vector<1x296x4xbf16> to vector<296x4xbf16>
    %45 = vector.extract_strided_slice %44 {offsets = [2, 0], sizes = [288, 4], strides = [1, 1]} : vector<296x4xbf16> to vector<288x4xbf16>
    %c0_36 = arith.constant 0 : index
    %c0_37 = arith.constant 0 : index
    %46 = vector.load %arg5[%c0_36, %c0_37] : memref<288x8xf32, #tpu.memory_space<vmem>>, vector<288x8xf32>
    %c0_38 = arith.constant 0 : index
    %c3 = arith.constant 3 : index
    %c0_39 = arith.constant 0 : index
    %c0_40 = arith.constant 0 : index
    %47 = vector.load %arg2[%c0_38, %c3, %c0_39, %c0_40] : memref<1x9x4x8xbf16, #tpu.memory_space<vmem>>, vector<1x1x4x8xbf16>
    %48 = vector.shape_cast %47 : vector<1x1x4x8xbf16> to vector<4x8xbf16>
    %cst_41 = arith.constant dense<0.000000e+00> : vector<288x8xf32>
    %49 = tpu.matmul %45, %48, %cst_41 {dimension_numbers = #tpu.dot_dimension_numbers<[1], [0], [0], [1], [0, 0, 1, 1], [], []>} : vector<288x4xbf16>, vector<4x8xbf16>, vector<288x8xf32> -> vector<288x8xf32>
    %50 = arith.addf %46, %49 : vector<288x8xf32>
    %c0_42 = arith.constant 0 : index
    %c0_43 = arith.constant 0 : index
    %51 = vector.load %arg5[%c0_42, %c0_43] : memref<288x8xf32, #tpu.memory_space<vmem>>, vector<288x8xf32>
    tpu.vector_store %arg5[%c0_42, %c0_43], %50 {strides = array<i32>} : memref<288x8xf32, #tpu.memory_space<vmem>>, vector<288x8xf32>,
    %c16_i32_44 = arith.constant 16 : i32
    %52 = arith.addi %1, %c16_i32_44 : i32
    %53 = tpu.assume_multiple %52, 8 : i32
    %c0_45 = arith.constant 0 : index
    %54 = arith.index_cast %53 : i32 to index
    %c0_46 = arith.constant 0 : index
    %55 = vector.load %arg3[%c0_45, %54, %c0_46] : memref<1x336x4xbf16, #tpu.memory_space<vmem>>, vector<1x296x4xbf16>
    %56 = vector.shape_cast %55 : vector<1x296x4xbf16> to vector<296x4xbf16>
    %57 = vector.extract_strided_slice %56 {offsets = [3, 0], sizes = [288, 4], strides = [1, 1]} : vector<296x4xbf16> to vector<288x4xbf16>
    %c0_47 = arith.constant 0 : index
    %c0_48 = arith.constant 0 : index
    %58 = vector.load %arg5[%c0_47, %c0_48] : memref<288x8xf32, #tpu.memory_space<vmem>>, vector<288x8xf32>
    %c0_49 = arith.constant 0 : index
    %c4 = arith.constant 4 : index
    %c0_50 = arith.constant 0 : index
    %c0_51 = arith.constant 0 : index
    %59 = vector.load %arg2[%c0_49, %c4, %c0_50, %c0_51] : memref<1x9x4x8xbf16, #tpu.memory_space<vmem>>, vector<1x1x4x8xbf16>
    %60 = vector.shape_cast %59 : vector<1x1x4x8xbf16> to vector<4x8xbf16>
    %cst_52 = arith.constant dense<0.000000e+00> : vector<288x8xf32>
    %61 = tpu.matmul %57, %60, %cst_52 {dimension_numbers = #tpu.dot_dimension_numbers<[1], [0], [0], [1], [0, 0, 1, 1], [], []>} : vector<288x4xbf16>, vector<4x8xbf16>, vector<288x8xf32> -> vector<288x8xf32>
    %62 = arith.addf %58, %61 : vector<288x8xf32>
    %c0_53 = arith.constant 0 : index
    %c0_54 = arith.constant 0 : index
    %63 = vector.load %arg5[%c0_53, %c0_54] : memref<288x8xf32, #tpu.memory_space<vmem>>, vector<288x8xf32>
    tpu.vector_store %arg5[%c0_53, %c0_54], %62 {strides = array<i32>} : memref<288x8xf32, #tpu.memory_space<vmem>>, vector<288x8xf32>,
    %c16_i32_55 = arith.constant 16 : i32
    %64 = arith.addi %1, %c16_i32_55 : i32
    %65 = tpu.assume_multiple %64, 8 : i32
    %c0_56 = arith.constant 0 : index
    %66 = arith.index_cast %65 : i32 to index
    %c0_57 = arith.constant 0 : index
    %67 = vector.load %arg3[%c0_56, %66, %c0_57] : memref<1x336x4xbf16, #tpu.memory_space<vmem>>, vector<1x296x4xbf16>
    %68 = vector.shape_cast %67 : vector<1x296x4xbf16> to vector<296x4xbf16>
    %69 = vector.extract_strided_slice %68 {offsets = [4, 0], sizes = [288, 4], strides = [1, 1]} : vector<296x4xbf16> to vector<288x4xbf16>
    %c0_58 = arith.constant 0 : index
    %c0_59 = arith.constant 0 : index
    %70 = vector.load %arg5[%c0_58, %c0_59] : memref<288x8xf32, #tpu.memory_space<vmem>>, vector<288x8xf32>
    %c0_60 = arith.constant 0 : index
    %c5 = arith.constant 5 : index
    %c0_61 = arith.constant 0 : index
    %c0_62 = arith.constant 0 : index
    %71 = vector.load %arg2[%c0_60, %c5, %c0_61, %c0_62] : memref<1x9x4x8xbf16, #tpu.memory_space<vmem>>, vector<1x1x4x8xbf16>
    %72 = vector.shape_cast %71 : vector<1x1x4x8xbf16> to vector<4x8xbf16>
    %cst_63 = arith.constant dense<0.000000e+00> : vector<288x8xf32>
    %73 = tpu.matmul %69, %72, %cst_63 {dimension_numbers = #tpu.dot_dimension_numbers<[1], [0], [0], [1], [0, 0, 1, 1], [], []>} : vector<288x4xbf16>, vector<4x8xbf16>, vector<288x8xf32> -> vector<288x8xf32>
    %74 = arith.addf %70, %73 : vector<288x8xf32>
    %c0_64 = arith.constant 0 : index
    %c0_65 = arith.constant 0 : index
    %75 = vector.load %arg5[%c0_64, %c0_65] : memref<288x8xf32, #tpu.memory_space<vmem>>, vector<288x8xf32>
    tpu.vector_store %arg5[%c0_64, %c0_65], %74 {strides = array<i32>} : memref<288x8xf32, #tpu.memory_space<vmem>>, vector<288x8xf32>,
    %c32_i32 = arith.constant 32 : i32
    %76 = arith.addi %1, %c32_i32 : i32
    %77 = tpu.assume_multiple %76, 8 : i32
    %c0_66 = arith.constant 0 : index
    %78 = arith.index_cast %77 : i32 to index
    %c0_67 = arith.constant 0 : index
    %79 = vector.load %arg3[%c0_66, %78, %c0_67] : memref<1x336x4xbf16, #tpu.memory_space<vmem>>, vector<1x296x4xbf16>
    %80 = vector.shape_cast %79 : vector<1x296x4xbf16> to vector<296x4xbf16>
    %81 = vector.extract_strided_slice %80 {offsets = [4, 0], sizes = [288, 4], strides = [1, 1]} : vector<296x4xbf16> to vector<288x4xbf16>
    %c0_68 = arith.constant 0 : index
    %c0_69 = arith.constant 0 : index
    %82 = vector.load %arg5[%c0_68, %c0_69] : memref<288x8xf32, #tpu.memory_space<vmem>>, vector<288x8xf32>
    %c0_70 = arith.constant 0 : index
    %c6 = arith.constant 6 : index
    %c0_71 = arith.constant 0 : index
    %c0_72 = arith.constant 0 : index
    %83 = vector.load %arg2[%c0_70, %c6, %c0_71, %c0_72] : memref<1x9x4x8xbf16, #tpu.memory_space<vmem>>, vector<1x1x4x8xbf16>
    %84 = vector.shape_cast %83 : vector<1x1x4x8xbf16> to vector<4x8xbf16>
    %cst_73 = arith.constant dense<0.000000e+00> : vector<288x8xf32>
    %85 = tpu.matmul %81, %84, %cst_73 {dimension_numbers = #tpu.dot_dimension_numbers<[1], [0], [0], [1], [0, 0, 1, 1], [], []>} : vector<288x4xbf16>, vector<4x8xbf16>, vector<288x8xf32> -> vector<288x8xf32>
    %86 = arith.addf %82, %85 : vector<288x8xf32>
    %c0_74 = arith.constant 0 : index
    %c0_75 = arith.constant 0 : index
    %87 = vector.load %arg5[%c0_74, %c0_75] : memref<288x8xf32, #tpu.memory_space<vmem>>, vector<288x8xf32>
    tpu.vector_store %arg5[%c0_74, %c0_75], %86 {strides = array<i32>} : memref<288x8xf32, #tpu.memory_space<vmem>>, vector<288x8xf32>,
    %c32_i32_76 = arith.constant 32 : i32
    %88 = arith.addi %1, %c32_i32_76 : i32
    %89 = tpu.assume_multiple %88, 8 : i32
    %c0_77 = arith.constant 0 : index
    %90 = arith.index_cast %89 : i32 to index
    %c0_78 = arith.constant 0 : index
    %91 = vector.load %arg3[%c0_77, %90, %c0_78] : memref<1x336x4xbf16, #tpu.memory_space<vmem>>, vector<1x296x4xbf16>
    %92 = vector.shape_cast %91 : vector<1x296x4xbf16> to vector<296x4xbf16>
    %93 = vector.extract_strided_slice %92 {offsets = [5, 0], sizes = [288, 4], strides = [1, 1]} : vector<296x4xbf16> to vector<288x4xbf16>
    %c0_79 = arith.constant 0 : index
    %c0_80 = arith.constant 0 : index
    %94 = vector.load %arg5[%c0_79, %c0_80] : memref<288x8xf32, #tpu.memory_space<vmem>>, vector<288x8xf32>
    %c0_81 = arith.constant 0 : index
    %c7 = arith.constant 7 : index
    %c0_82 = arith.constant 0 : index
    %c0_83 = arith.constant 0 : index
    %95 = vector.load %arg2[%c0_81, %c7, %c0_82, %c0_83] : memref<1x9x4x8xbf16, #tpu.memory_space<vmem>>, vector<1x1x4x8xbf16>
    %96 = vector.shape_cast %95 : vector<1x1x4x8xbf16> to vector<4x8xbf16>
    %cst_84 = arith.constant dense<0.000000e+00> : vector<288x8xf32>
    %97 = tpu.matmul %93, %96, %cst_84 {dimension_numbers = #tpu.dot_dimension_numbers<[1], [0], [0], [1], [0, 0, 1, 1], [], []>} : vector<288x4xbf16>, vector<4x8xbf16>, vector<288x8xf32> -> vector<288x8xf32>
    %98 = arith.addf %94, %97 : vector<288x8xf32>
    %c0_85 = arith.constant 0 : index
    %c0_86 = arith.constant 0 : index
    %99 = vector.load %arg5[%c0_85, %c0_86] : memref<288x8xf32, #tpu.memory_space<vmem>>, vector<288x8xf32>
    tpu.vector_store %arg5[%c0_85, %c0_86], %98 {strides = array<i32>} : memref<288x8xf32, #tpu.memory_space<vmem>>, vector<288x8xf32>,
    %c32_i32_87 = arith.constant 32 : i32
    %100 = arith.addi %1, %c32_i32_87 : i32
    %101 = tpu.assume_multiple %100, 8 : i32
    %c0_88 = arith.constant 0 : index
    %102 = arith.index_cast %101 : i32 to index
    %c0_89 = arith.constant 0 : index
    %103 = vector.load %arg3[%c0_88, %102, %c0_89] : memref<1x336x4xbf16, #tpu.memory_space<vmem>>, vector<1x296x4xbf16>
    %104 = vector.shape_cast %103 : vector<1x296x4xbf16> to vector<296x4xbf16>
    %105 = vector.extract_strided_slice %104 {offsets = [6, 0], sizes = [288, 4], strides = [1, 1]} : vector<296x4xbf16> to vector<288x4xbf16>
    %c0_90 = arith.constant 0 : index
    %c0_91 = arith.constant 0 : index
    %106 = vector.load %arg5[%c0_90, %c0_91] : memref<288x8xf32, #tpu.memory_space<vmem>>, vector<288x8xf32>
    %c0_92 = arith.constant 0 : index
    %c8 = arith.constant 8 : index
    %c0_93 = arith.constant 0 : index
    %c0_94 = arith.constant 0 : index
    %107 = vector.load %arg2[%c0_92, %c8, %c0_93, %c0_94] : memref<1x9x4x8xbf16, #tpu.memory_space<vmem>>, vector<1x1x4x8xbf16>
    %108 = vector.shape_cast %107 : vector<1x1x4x8xbf16> to vector<4x8xbf16>
    %cst_95 = arith.constant dense<0.000000e+00> : vector<288x8xf32>
    %109 = tpu.matmul %105, %108, %cst_95 {dimension_numbers = #tpu.dot_dimension_numbers<[1], [0], [0], [1], [0, 0, 1, 1], [], []>} : vector<288x4xbf16>, vector<4x8xbf16>, vector<288x8xf32> -> vector<288x8xf32>
    %110 = arith.addf %106, %109 : vector<288x8xf32>
    %c0_96 = arith.constant 0 : index
    %c0_97 = arith.constant 0 : index
    %111 = vector.load %arg5[%c0_96, %c0_97] : memref<288x8xf32, #tpu.memory_space<vmem>>, vector<288x8xf32>
    tpu.vector_store %arg5[%c0_96, %c0_97], %110 {strides = array<i32>} : memref<288x8xf32, #tpu.memory_space<vmem>>, vector<288x8xf32>,
    %c0_98 = arith.constant 0 : index
    %c0_99 = arith.constant 0 : index
    %112 = vector.load %arg5[%c0_98, %c0_99] : memref<288x8xf32, #tpu.memory_space<vmem>>, vector<288x8xf32>
    %c0_100 = arith.constant 0 : index
    %c0_101 = arith.constant 0 : index
    %c0_102 = arith.constant 0 : index
    %113 = vector.load %arg4[%c0_100, %c0_101, %c0_102] : memref<1x288x8xf32, #tpu.memory_space<vmem>>, vector<1x288x8xf32>
    %114 = vector.shape_cast %113 : vector<1x288x8xf32> to vector<288x8xf32>
    %115 = vector.shape_cast %112 : vector<288x8xf32> to vector<1x288x8xf32>
    tpu.vector_store %arg4[%c0_100, %c0_101, %c0_102], %115 {strides = array<i32>} : memref<1x288x8xf32, #tpu.memory_space<vmem>>, vector<1x288x8xf32>,
    return
  }
  func.func @transform_0(%arg0: i32, %arg1: i32) -> (i32, i32, i32, i32) {
    %c0_i32 = arith.constant 0 : i32
    %c0_i32_0 = arith.constant 0 : i32
    %c0_i32_1 = arith.constant 0 : i32
    %c0_i32_2 = arith.constant 0 : i32
    return %arg0, %c0_i32, %c0_i32_0, %c0_i32_1 : i32, i32, i32, i32
  }
  func.func @transform_1(%arg0: i32, %arg1: i32) -> (i32, i32, i32) {
    %c0_i32 = arith.constant 0 : i32
    %c0_i32_0 = arith.constant 0 : i32
    %c0_i32_1 = arith.constant 0 : i32
    return %arg0, %c0_i32, %c0_i32_0 : i32, i32, i32
  }
  func.func @transform_2(%arg0: i32, %arg1: i32) -> (i32, i32, i32) {
    %c0_i32 = arith.constant 0 : i32
    %c0_i32_0 = arith.constant 0 : i32
    return %arg0, %arg1, %c0_i32 : i32, i32, i32
  }
}

</mosaic_0001>

<bundles_post_ra>
// kernel: tpu_custom_call.1
= control target key start
LH: loop header
LB: loop body
LE: loop exit
PB: predicated region body
PF: predicated region fallthrough
CT: control target
= control target key end

     0   :  { %s6688_s9 = smov 0   ;;  %s6690_s10 = smov 0   ;;  %s7897_s0 = inlined_call_operand.vmem [shape: bf16[2,9,4,8], index: 0, kind: input, shape index: {}]   ;;  %s7898_s1 = inlined_call_operand.vmem [shape: bf16[2,336,4], index: 1, kind: input, shape index: {}]   ;;  %s7899_s2 = inlined_call_operand.vmem [shape: f32[2,288,8], index: 2, kind: output, shape index: {}]  }
   0x1   :  { %s6692_s11 = smov 0  }
   0x2 LB: > { %s24_s12 = sadd.s32 1, %s6666_s10  ;;  %p5357_p0 = scmp.ge.s32.totalorder %s6670_s11, 1  ;;  %s6670_s11 = sphi %s6692_s11, %s12_s11   ;;  %s6666_s10 = sphi %s6690_s10, %s7901_s10   ;;  %s6662_s9 = sphi %s6688_s9, %s7900_s9  }
   0x3   : > { %p26_p1 = scmp.ge.s32.totalorder %s24_s12, 2  ;;  %p136_p2 = scmp.lt.s32.totalorder %s6670_s11, 3 }
   0x5   : > { %s7903_s12 = smov (%p26_p1, %s24_s12), 0  ;;  %p137_p3 = pnand %p5357_p0, %p136_p2 }
   0x6   : > { %p167_p4 = scmp.lt.s32.totalorder (!%p137_p3), %s6662_s9, 1  ;;  %vm448_vm0 = vcmask (!%p137_p3), 1041408   ;;  %vm393_vm1 = vcmask (!%p137_p3), 31744   ;;  %vm869_vm2 = vsmask.f32 (!%p137_p3), 7424  ;;  %vm1492_vm3 = vcmask (!%p137_p3), 1046528  }
   0x7   : > { %140 = sbr.rel (%p137_p3) target bundleno = 572 (0x23c), region = 28  ;;  %vm2520_vm4 = vsmask.f32 (!%p137_p3), 6400  ;;  %vm189_vm5 = vcmask (!%p137_p3), 64512   ;;  %vm3165_vm6 = vcmask (!%p137_p3), 1045504   ;;  %vm4838_vm8 = vcmask (!%p137_p3), 1044480  }
   0x8   : > { %vm4193_vm7 = vsmask.f32 (!%p137_p3), 5376 }
   0xe   : > { %s7905_s9 = smov (!%p167_p4, %s6662_s9), 1 }
   0xf   : > { %s6450_s13 = smul.u32 18, %s7905_s9 }
  0x10   : > { %s6451_s14 = smul.u32 168, %s7905_s9 }
  0x11   : > { %s6713_s17 = scalar_lea.vmem %s7897_s0, %s6450_s13  ;;  %s6452_s21 = smul.u32 288, %s7905_s9 }
  0x12   : > { %s6718_s20 = scalar_lea.vmem %s7898_s1, %s6451_s14  ;;  %v302_v0 = vld [vmem:[%s6713_s17] sm:$0x3]  ;;  %v5397_v1 = vld [vmem:[%s6713_s17 + $0x2] sm:$0x3]  ;;  %v5435_v2 = vld [vmem:[%s6713_s17 + $0x4] sm:$0x3] }
  0x13   : > { %6440 = vmatprep.subr.msk.bf16.mxu0 %vm448_vm0, %v302_v0  ;;  %6441 = vmatprep.subr.msk.bf16.mxu1 %vm448_vm0, %v302_v0  ;;  %v450_v3 = vsel %vm448_vm0, %v302_v0, 0  ;;  %v6478_v4 = vld [vmem:[%s6718_s20] sm:$0xff]   ;;  %v6479_v5 = vld [vmem:[%s6718_s20 + $0x50] sm:$0xff]   ;;  %v6480_v6 = vld [vmem:[%s6718_s20 + $0x8] sm:$0xff]   ;;  %v1585_v7 = vsel %vm448_vm0, %v5435_v2, 0  ;;  %v1073_v9 = vsel %vm448_vm0, %v5397_v1, 0  ;;  %s7754_s24 = scalar_lea.vmem %s7899_s2, %s6452_s21 }
  0x14   : > { %6097 = vmatpush3.bf16.msra.mxu0 %v450_v3  ;;  %6439 = vmatpush3.bf16.msra.mxu1 %v450_v3  ;;  %v6481_v8 = vld [vmem:[%s6718_s20 + $0x58] sm:$0xff]   ;;  %v6482_v10 = vld [vmem:[%s6718_s20 + $0x10] sm:$0xff]   ;;  %v6483_v11 = vld [vmem:[%s6718_s20 + $0x60] sm:$0xff]  }
  0x15   : > { %6098 = vmatprep.mubr.msk.bf16.mxu0 %vm393_vm1, %v6478_v4  ;;  %6442 = vmatprep.subr.msk.bf16.mxu1 %vm448_vm0, %v5397_v1  ;;  %v6484_v12 = vld [vmem:[%s6718_s20 + $0x18] sm:$0xff]   ;;  %v6485_v13 = vld [vmem:[%s6718_s20 + $0x68] sm:$0xff]   ;;  %v6486_v14 = vld [vmem:[%s6718_s20 + $0x20] sm:$0xff]  }
  0x16   : > { %6118 = vmatprep.mubr.msk.bf16.mxu1 %vm393_vm1, %v6479_v5  ;;  %6443 = vmatprep.subr.msk.bf16.mxu0 %vm448_vm0, %v5435_v2  ;;  %v6487_v15 = vld [vmem:[%s6718_s20 + $0x70] sm:$0xff]   ;;  %v6488_v16 = vld [vmem:[%s6718_s20 + $0x28] sm:$0xff]   ;;  %v6489_v17 = vld [vmem:[%s6718_s20 + $0x78] sm:$0xff]  }
  0x17   : > { %6099 = vmatmul.mubr.msk.bf16.vlgmr.msra.gmra.mrb[0].mxu0 %vm393_vm1, %v6480_v6  ;;  %6119 = vmatmul.mubr.msk.bf16.vlgmr.msra.gmra.mrb[0].mxu1 %vm393_vm1, %v6481_v8  ;;  %v6490_v18 = vld [vmem:[%s6718_s20 + $0x30] sm:$0xff]   ;;  %v6491_v19 = vld [vmem:[%s6718_s20 + $0x80] sm:$0xff]   ;;  %v6496_v21 = vld [vmem:[%s6718_s20 + $0x8] sm:$0xff]  }
  0x18   : > { %6173 = vmatpush3.bf16.msra.mxu0 %v1585_v7  ;;  %6135 = vmatpush3.bf16.msra.mxu1 %v1073_v9  ;;  %v6495_v20 = vld [vmem:[%s6718_s20] sm:$0xff]   ;;  %v878_v24 = vshll.u32 %v6496_v21, 16  ;;  %v6498_v25 = vld [vmem:[%s6718_s20 + $0x10] sm:$0xff]   ;;  %v6492_v27 = vld [vmem:[%s6718_s20 + $0x38] sm:$0xff]   ;;  %v882_v35 = vshrl.u32 %v6496_v21, 16 }
  0x19   : > { %6102 = vmatprep.mubr.msk.bf16.mxu0 %vm393_vm1, %v6482_v10  ;;  %6122 = vmatprep.mubr.msk.bf16.mxu1 %vm393_vm1, %v6483_v11  ;;  %v871_v22 = vshrl.u32 %v6495_v20, 16  ;;  %v873_v23 = vshll.u32 %v6495_v20, 16  ;;  %v5510_v26 = vld [vmem:[%s6713_s17 + $0x6] sm:$0x3]  ;;  %v6499_v30 = vld [vmem:[%s6718_s20 + $0x18] sm:$0xff]   ;;  %v6493_v31 = vld [vmem:[%s6718_s20 + $0x88] sm:$0xff]  }
  0x1a   : > { %6444 = vmatprep.subr.msk.bf16.mxu1 %vm448_vm0, %v5510_v26  ;;  %v880_v29 = vrot.slane %v878_v24, 1  ;;  %v6494_v33 = vld [vmem:[%s6718_s20 + $0x40] sm:$0xff]   ;;  %v886_v34 = vshll.u32 %v6498_v25, 16  ;;  %v6501_v37 = vld [vmem:[%s6718_s20 + $0x8] sm:$0xff]   ;;  %v890_v39 = vshrl.u32 %v6498_v25, 16  ;;  %v894_v40 = vshll.u32 %v6499_v30, 16 }
  0x1b   : > { %v875_v28 = vrot.slane %v873_v23, 1  ;;  %v6500_v36 = vld [vmem:[%s6718_s20] sm:$0xff]   ;;  %v5585_v41 = vld [vmem:[%s6713_s17 + $0x8] sm:$0x3]  ;;  %v1494_v46 = vrot.slane %v6501_v37, 1  ;;  %v6503_v52 = vld [vmem:[%s6718_s20 + $0x10] sm:$0xff]  }
  0x1c   : > { %v888_v42 = vrot.slane %v886_v34, 1  ;;  %v6502_v43 = vld [vmem:[%s6718_s20 + $0x20] sm:$0xff]   ;;  %v884_v44 = vor.u32 %v882_v35, %v880_v29  ;;  %v1493_v45 = vrot.slane %v6500_v36, 1  ;;  %6445 = vmatprep.subr.msk.bf16.mxu0 %vm448_vm0, %v5585_v41  ;;  %v896_v48 = vrot.slane %v894_v40, 1  ;;  %v6504_v49 = vld [vmem:[%s6718_s20 + $0x28] sm:$0xff]   ;;  %v6505_v60 = vld [vmem:[%s6718_s20 + $0x18] sm:$0xff]  }
  0x1d   : > { %v876_v32 = vor.u32 %v875_v28, %v871_v22  ;;  %v6497_v50 = vld [vmem:[%s6718_s20 + $0x48] sm:$0xff]   ;;  %v902_v51 = vshll.u32 %v6502_v43, 16  ;;  %v898_v55 = vshrl.u32 %v6499_v30, 16  ;;  %v2101_v56 = vsel %vm448_vm0, %v5510_v26, 0  ;;  %v6506_v61 = vld [vmem:[%s6718_s20 + $0x30] sm:$0xff]   ;;  %v6508_v1 = vld [vmem:[%s6718_s20 + $0x38] sm:$0xff]  }
  0x1e   : > { %v892_v47 = vor.u32 %v890_v39, %v888_v42  ;;  %v889_v53 = vsel %vm869_vm2, %v884_v44, %v888_v42  ;;  %v1495_v54 = vsel %vm1492_vm3, %v1493_v45, %v1494_v46  ;;  %v906_v58 = vshrl.u32 %v6502_v43, 16  ;;  %v6507_v9 = vld [vmem:[%s6718_s20 + $0x20] sm:$0xff]   ;;  %v6512_v22 = vld [vmem:[%s6718_s20 + $0x48] sm:$0xff]   ;;  %v6511_v26 = vld [vmem:[%s6718_s20 + $0x30] sm:$0xff]  }
  0x1f   : > { %6103 = vmatmul.mubr.msk.bf16.gmra.mrb[4].mxu0 %vm393_vm1, %v6484_v12  ;;  %6123 = vmatmul.mubr.msk.bf16.gmra.mrb[4].mxu1 %vm393_vm1, %v6485_v13  ;;  %v881_v38 = vsel %vm869_vm2, %v876_v32, %v880_v29  ;;  %v910_v59 = vshll.u32 %v6504_v49, 16  ;;  %v904_v62 = vrot.slane %v902_v51, 1  ;;  %v1496_v63 = vrot.slane %v6503_v52, 1  ;;  %v6509_v12 = vld [vmem:[%s6718_s20 + $0x28] sm:$0xff]   ;;  %v6513_v30 = vld [vmem:[%s6718_s20 + $0x38] sm:$0xff]   ;;  %v6514_v36 = vld [vmem:[%s6718_s20 + $0x50] sm:$0xff]  }
  0x20   : > { %6106 = vmatprep.mubr.msk.bf16.mxu0 %vm393_vm1, %v6486_v14  ;;  %6126 = vmatprep.mubr.msk.bf16.mxu1 %vm393_vm1, %v6487_v15  ;;  %v897_v57 = vsel %vm869_vm2, %v892_v47, %v896_v48  ;;  %v900_v0 = vor.u32 %v898_v55, %v896_v48  ;;  %v1498_v4 = vrot.slane %v6505_v60, 1  ;;  %v918_v5 = vshll.u32 %v6506_v61, 16  ;;  %v6515_v42 = vld [vmem:[%s6718_s20 + $0x40] sm:$0xff]   ;;  %v6517_v48 = vld [vmem:[%s6718_s20 + $0x48] sm:$0xff]  }
  0x21   : > { %v908_v2 = vor.u32 %v906_v58, %v904_v62  ;;  %v912_v3 = vrot.slane %v910_v59, 1  ;;  %v1497_v6 = vsel %vm1492_vm3, %v1494_v46, %v1496_v63  ;;  %v2746_v7 = vsel %vm448_vm0, %v5585_v41, 0  ;;  %v6516_v41 = vld [vmem:[%s6718_s20 + $0x58] sm:$0xff]   ;;  %v6520_v59 = vld [vmem:[%s6718_s20 + $0x68] sm:$0xff]  }
  0x22   : > { %v914_v8 = vshrl.u32 %v6504_v49, 16  ;;  %v905_v10 = vsel %vm869_vm2, %v900_v0, %v904_v62  ;;  %v926_v11 = vshll.u32 %v6508_v1, 16  ;;  %v1499_v14 = vsel %vm1492_vm3, %v1496_v63, %v1498_v4  ;;  %v6519_v62 = vld [vmem:[%s6718_s20 + $0x50] sm:$0xff]  }
  0x23   : > { %v913_v13 = vsel %vm869_vm2, %v908_v2, %v912_v3  ;;  %v922_v15 = vshrl.u32 %v6506_v61, 16  ;;  %v1502_v21 = vrot.slane %v6509_v12, 1  ;;  %v930_v29 = vshrl.u32 %v6508_v1, 16  ;;  %v6521_v2 = vld [vmem:[%s6718_s20 + $0x58] sm:$0xff]  }
  0x24   : > { %v928_v20 = vrot.slane %v926_v11, 1  ;;  %v1504_v35 = vrot.slane %v6511_v26, 1  ;;  %v950_v44 = vshll.u32 %v6514_v36, 16  ;;  %v946_v47 = vshrl.u32 %v6512_v22, 16 }
  0x25   : > { %v958_v51 = vshll.u32 %v6516_v41, 16  ;;  %v1508_v52 = vrot.slane %v6515_v42, 1  ;;  %v962_v1 = vshrl.u32 %v6516_v41, 16  ;;  %v1514_v11 = vrot.slane %v6521_v2, 1 }
  0x26   : > { %v932_v37 = vor.u32 %v930_v29, %v928_v20  ;;  %v1505_v43 = vsel %vm1492_vm3, %v1502_v21, %v1504_v35 }
  0x27   : > { %6107 = vmatmul.mubr.msk.bf16.gmra.mrb[8].mxu0 %vm393_vm1, %v6488_v16  ;;  %6127 = vmatmul.mubr.msk.bf16.gmra.mrb[8].mxu1 %vm393_vm1, %v6489_v17  ;;  %v920_v16 = vrot.slane %v918_v5, 1  ;;  %v1500_v17 = vrot.slane %v6507_v9, 1  ;;  %v960_v58 = vrot.slane %v958_v51, 1  ;;  %v6522_v9 = vld [vmem:[%s6718_s20 + $0x70] sm:$0xff]   ;;  %v6531_v51 = vld [vmem:[%s6718_s20 + $0x80] sm:$0xff]  }
  0x28   : > { %6110 = vmatprep.mubr.msk.bf16.mxu0 %vm393_vm1, %v6490_v18  ;;  %6130 = vmatprep.mubr.msk.bf16.mxu1 %vm393_vm1, %v6491_v19  ;;  %v6510_v18 = vld [vmem:[%s6718_s20 + $0x40] sm:$0xff]   ;;  %v916_v19 = vor.u32 %v914_v8, %v912_v3  ;;  %v6834_v3 = vld [vmem:[%s6713_s17 + $0xa] sm:$0x3]  ;;  %v1512_v8 = vrot.slane %v6519_v62, 1  ;;  %v6534_v62 = vld [vmem:[%s6718_s20 + $0x10] sm:$0xff]   ;;  %v1524_v2 = vrot.slane %v6531_v51, 1 }
  0x29   : > { %v924_v23 = vor.u32 %v922_v15, %v920_v16  ;;  %v1501_v24 = vsel %vm1492_vm3, %v1498_v4, %v1500_v17  ;;  %v934_v25 = vshll.u32 %v6510_v18, 16  ;;  %v1503_v28 = vsel %vm1492_vm3, %v1500_v17, %v1502_v21  ;;  %v6523_v15 = vld [vmem:[%s6718_s20 + $0x60] sm:$0xff]  }
  0x2a   : > { %v938_v32 = vshrl.u32 %v6510_v18, 16  ;;  %v982_v18 = vshll.u32 %v6522_v9, 16  ;;  %v978_v21 = vshrl.u32 %v6520_v59, 16  ;;  %v1516_v26 = vrot.slane %v6523_v15, 1 }
  0x2b   : > { %v936_v34 = vrot.slane %v934_v25, 1 }
  0x2d   : > { %v940_v39 = vor.u32 %v938_v32, %v936_v34  ;;  %v937_v45 = vsel %vm869_vm2, %v932_v37, %v936_v34  ;;  %v1517_v34 = vsel %vm1492_vm3, %v1514_v11, %v1516_v26 }
  0x2f   : > { %6111 = vmatmul.mubr.msk.bf16.gmra.mrb[12].mxu0 %vm393_vm1, %v6492_v27  ;;  %6131 = vmatmul.mubr.msk.bf16.gmra.mrb[12].mxu1 %vm393_vm1, %v6493_v31  ;;  %v921_v27 = vsel %vm869_vm2, %v916_v19, %v920_v16  ;;  %v929_v31 = vsel %vm869_vm2, %v924_v23, %v928_v20  ;;  %v6847_v16 = vld [vmem:[%s6713_s17 + $0xc] sm:$0x3]  ;;  %v1515_v20 = vsel %vm1492_vm3, %v1512_v8, %v1514_v11  ;;  %v6536_v11 = vld [vmem:[%s6718_s20 + $0x18] sm:$0xff]  }
  0x30   : > { %6114 = vmatprep.mubr.msk.bf16.mxu0 %vm393_vm1, %v6494_v33  ;;  %6136 = vmatprep.mubr.msk.bf16.mxu1 %vm393_vm1, %v881_v38  ;;  %v942_v33 = vshll.u32 %v6512_v22, 16  ;;  %v1506_v38 = vrot.slane %v6513_v30, 1  ;;  %v6525_v22 = vld [vmem:[%s6718_s20 + $0x68] sm:$0xff]  }
  0x31   : > { %v1518_v30 = vrot.slane %v6525_v22, 1  ;;  %v6543_v22 = vld [vmem:[%s6718_s20 + $0x20] sm:$0xff]  }
  0x32   : > { %v944_v40 = vrot.slane %v942_v33, 1  ;;  %v1507_v46 = vsel %vm1492_vm3, %v1504_v35, %v1506_v38  ;;  %v1509_v60 = vsel %vm1492_vm3, %v1506_v38, %v1508_v52  ;;  %v6528_v33 = vld [vmem:[%s6718_s20 + $0x88] sm:$0xff]  }
  0x33   : > { %v1519_v38 = vsel %vm1492_vm3, %v1516_v26, %v1518_v30 }
  0x34   : > { %v945_v49 = vsel %vm869_vm2, %v940_v39, %v944_v40  ;;  %v948_v55 = vor.u32 %v946_v47, %v944_v40  ;;  %v6529_v40 = vld [vmem:[%s6718_s20 + $0x78] sm:$0xff]  }
  0x37   : > { %6115 = vmatmul.mubr.msk.bf16.gmra.mrb[16].mxu0 %vm393_vm1, %v6497_v50  ;;  %6137 = vmatmul.mubr.msk.bf16.vlgmr.msra.gmra.mrb[16].mxu1 %vm393_vm1, %v889_v53  ;;  %v954_v50 = vshrl.u32 %v6514_v36, 16  ;;  %v952_v53 = vrot.slane %v950_v44, 1  ;;  %v6527_v36 = vld [vmem:[%s6718_s20 + $0x70] sm:$0xff]  }
  0x38   : > { %6174 = vmatprep.mubr.msk.bf16.mxu0 %vm393_vm1, %v1495_v54  ;;  %6211 = vmatpush3.bf16.msra.mxu1 %v2101_v56  ;;  %v6518_v54 = vld [vmem:[%s6718_s20 + $0x60] sm:$0xff]   ;;  %v1510_v56 = vrot.slane %v6517_v48, 1  ;;  %v1522_v48 = vrot.slane %v6529_v40, 1  ;;  %v6547_v40 = vld [vmem:[%s6718_s20 + $0x30] sm:$0xff]  }
  0x39   : > { %6140 = vmatprep.mubr.msk.bf16.mxu1 %vm393_vm1, %v897_v57  ;;  %v956_v57 = vor.u32 %v954_v50, %v952_v53  ;;  %v966_v61 = vshll.u32 %v6518_v54, 16  ;;  %v953_v63 = vsel %vm869_vm2, %v948_v55, %v952_v53  ;;  %v970_v5 = vshrl.u32 %v6518_v54, 16  ;;  %6446 = vmatprep.subr.msk.bf16.mxu1 %vm448_vm0, %v6834_v3  ;;  %v6539_v55 = vld [vmem:[%s6718_s20 + $0x10] sm:$0xff]  }
  0x3a   : > { %v1511_v0 = vsel %vm1492_vm3, %v1508_v52, %v1510_v56  ;;  %v1513_v17 = vsel %vm1492_vm3, %v1510_v56, %v1512_v8  ;;  %v6538_v52 = vld [vmem:[%s6718_s20 + $0x8] sm:$0xff]   ;;  %v1525_v15 = vsel %vm1492_vm3, %v1522_v48, %v1524_v2 }
  0x3b   : > { %v961_v4 = vsel %vm869_vm2, %v956_v57, %v960_v58 }
  0x3f   : > { %6175 = vmatmul.mubr.msk.bf16.vlgmr.msra.gmra.mrb[20].mxu0 %vm393_vm1, %v1497_v6  ;;  %6141 = vmatmul.mubr.msk.bf16.gmra.mrb[20].mxu1 %vm393_vm1, %v905_v10  ;;  %v974_v6 = vshll.u32 %v6520_v59, 16  ;;  %v964_v10 = vor.u32 %v962_v1, %v960_v58  ;;  %v1010_v58 = vshrl.u32 %v6528_v33, 16  ;;  %v6532_v59 = vld [vmem:[%s6718_s20 + $0x88] sm:$0xff]  }
  0x40   : > { %6249 = vmatpush3.bf16.msra.mxu0 %v2746_v7  ;;  %6144 = vmatprep.mubr.msk.bf16.mxu1 %vm393_vm1, %v913_v13  ;;  %v968_v7 = vrot.slane %v966_v61, 1 }
  0x41   : > { %6178 = vmatprep.mubr.msk.bf16.mxu0 %vm393_vm1, %v1499_v14  ;;  %v976_v13 = vrot.slane %v974_v6, 1  ;;  %v6524_v14 = vld [vmem:[%s6718_s20 + $0x78] sm:$0xff]   ;;  %6447 = vmatprep.subr.msk.bf16.mxu0 %vm448_vm0, %v6847_v16  ;;  %v1526_v6 = vrot.slane %v6532_v59, 1 }
  0x42   : > { %v972_v12 = vor.u32 %v970_v5, %v968_v7  ;;  %v969_v19 = vsel %vm869_vm2, %v964_v10, %v968_v7  ;;  %v990_v25 = vshll.u32 %v6524_v14, 16  ;;  %v994_v39 = vshrl.u32 %v6524_v14, 16  ;;  %v6535_v10 = vld [vmem:[%s6718_s20 + $0x90] ss:$0 sps:$4 sm:$0xff]  }
  0x43   : > { %v980_v29 = vor.u32 %v978_v21, %v976_v13  ;;  %v2533_v7 = vshll.u32 %v6539_v55, 16 }
  0x44   : > { %v977_v23 = vsel %vm869_vm2, %v972_v12, %v976_v13  ;;  %v992_v32 = vrot.slane %v990_v25, 1  ;;  %v6537_v12 = vld [vmem:[%s6718_s20 + $0x20] sm:$0xff]   ;;  %v2012_v25 = vrot.slane %v6536_v11, 1  ;;  %v6939_v11 = vld [vmem:[%s6718_s20 + $0x48] sm:$0xff]  }
  0x45   : > { %v2535_v21 = vrot.slane %v2533_v7, 2  ;;  %v2014_v26 = vrot.slane %v6537_v12, 1 }
  0x46   : > { %v996_v47 = vor.u32 %v994_v39, %v992_v32 }
  0x47   : > { %6179 = vmatmul.mubr.msk.bf16.gmra.mrb[24].mxu0 %vm393_vm1, %v1501_v24  ;;  %6145 = vmatmul.mubr.msk.bf16.gmra.mrb[24].mxu1 %vm393_vm1, %v921_v27  ;;  %v986_v24 = vshrl.u32 %v6522_v9, 16  ;;  %v984_v27 = vrot.slane %v982_v18, 1  ;;  %v2010_v9 = vrot.slane %v6534_v62, 1  ;;  %v6541_v18 = vld [vmem:[%s6718_s20 + $0x18] sm:$0xff]  }
  0x48   : > { %6182 = vmatprep.mubr.msk.bf16.mxu0 %vm393_vm1, %v1503_v28  ;;  %6148 = vmatprep.mubr.msk.bf16.mxu1 %vm393_vm1, %v929_v31  ;;  %v6526_v28 = vld [vmem:[%s6718_s20 + $0x80] sm:$0xff]  }
  0x49   : > { %v988_v31 = vor.u32 %v986_v24, %v984_v27  ;;  %v998_v35 = vshll.u32 %v6526_v28, 16  ;;  %v985_v37 = vsel %vm869_vm2, %v980_v29, %v984_v27  ;;  %v1002_v42 = vshrl.u32 %v6526_v28, 16 }
  0x4a   : > { %v1528_v24 = vrot.slane %v6535_v10, 1  ;;  %v2539_v27 = vshrl.u32 %v6541_v18, 16  ;;  %v2542_v28 = vshll.u32 %v6541_v18, 16 }
  0x4b   : > { %v993_v41 = vsel %vm869_vm2, %v988_v31, %v992_v32  ;;  %v1000_v44 = vrot.slane %v998_v35, 1  ;;  %v2548_v31 = vshrl.u32 %v6543_v22, 16  ;;  %v2551_v32 = vshll.u32 %v6543_v22, 16  ;;  %v6555_v22 = vld [vmem:[%s6718_s20 + $0x50] sm:$0xff]  }
  0x4c   : > { %v1529_v35 = vsel %vm1492_vm3, %v1526_v6, %v1528_v24  ;;  %v6958_v24 = vld [vmem:[%s6718_s20 + $0x50] sm:$0xff]  }
  0x4d   : > { %v1001_v56 = vsel %vm869_vm2, %v996_v47, %v1000_v44 }
  0x4f   : > { %6183 = vmatmul.mubr.msk.bf16.gmra.mrb[28].mxu0 %vm393_vm1, %v1505_v43  ;;  %6149 = vmatmul.mubr.msk.bf16.gmra.mrb[28].mxu1 %vm393_vm1, %v937_v45  ;;  %v1006_v43 = vshll.u32 %v6528_v33, 16  ;;  %v1520_v45 = vrot.slane %v6527_v36, 1  ;;  %v6540_v33 = vld [vmem:[%s6718_s20 + $0x28] sm:$0xff]   ;;  %v2541_v36 = vrot.slane %v2539_v27, 1  ;;  %v2024_v27 = vrot.slane %v6939_v11, 1 }
  0x50   : > { %6186 = vmatprep.mubr.msk.bf16.mxu0 %vm393_vm1, %v1507_v46  ;;  %6152 = vmatprep.mubr.msk.bf16.mxu1 %vm393_vm1, %v945_v49  ;;  %v6530_v46 = vld [vmem:[%s6718_s20 + $0x90] ss:$0 sps:$4 sm:$0xff]   ;;  %v1004_v49 = vor.u32 %v1002_v42, %v1000_v44  ;;  %v2015_v42 = vsel %vm1492_vm3, %v2012_v25, %v2014_v26  ;;  %v2550_v44 = vrot.slane %v2548_v31, 1  ;;  %v2016_v47 = vrot.slane %v6540_v33, 1 }
  0x51   : > { %v1008_v50 = vrot.slane %v1006_v43, 1  ;;  %v1521_v53 = vsel %vm1492_vm3, %v1518_v30, %v1520_v45  ;;  %v1014_v54 = vshll.u32 %v6530_v46, 16  ;;  %v1523_v57 = vsel %vm1492_vm3, %v1520_v45, %v1522_v48  ;;  %v6542_v43 = vld [vmem:[%s6718_s20 + $0x30] sm:$0xff]  }
  0x52   : > { %v2553_v45 = vrot.slane %v2551_v32, 2  ;;  %v2018_v51 = vrot.slane %v6542_v43, 1  ;;  %v2017_v59 = vsel %vm1492_vm3, %v2014_v26, %v2016_v47  ;;  %v6672_v26 = vmov 0.0  }
  0x53   : > { %v1009_v61 = vsel %vm869_vm2, %v1004_v49, %v1008_v50  ;;  %v1016_v1 = vrot.slane %v1014_v54, 1  ;;  %v1012_v5 = vor.u32 %v1010_v58, %v1008_v50  ;;  %v2569_v50 = vshll.u32 %v6547_v40, 16  ;;  %v6544_v54 = vld [vmem:[%s6718_s20 + $0x38] sm:$0xff]   ;;  %v6551_v58 = vld [vmem:[%s6718_s20 + $0x40] sm:$0xff]   ;;  %192 = vst.msk [vmem:[#allocation2 + $0x10] sm:$0xff] %vm189_vm5, %v6672_v26  ;;  %190 = vst.msk [vmem:[#allocation2] sm:$0xff] %vm189_vm5, %v6672_v26 }
  0x54   : > { %v2584_v7 = vshrl.u32 %v6551_v58, 16  ;;  %v2587_v10 = vshll.u32 %v6551_v58, 16  ;;  %191 = vst.msk [vmem:[#allocation2 + $0x8] sm:$0xff] %vm189_vm5, %v6672_v26  ;;  %193 = vst.msk [vmem:[#allocation2 + $0x18] sm:$0xff] %vm189_vm5, %v6672_v26  ;;  %v2602_v31 = vshrl.u32 %v6555_v22, 16  ;;  %v2605_v32 = vshll.u32 %v6555_v22, 16 }
  0x55   : > { %194 = vst.msk [vmem:[#allocation2 + $0x20] sm:$0xff] %vm189_vm5, %v6672_v26  ;;  %195 = vst.msk [vmem:[#allocation2 + $0x28] sm:$0xff] %vm189_vm5, %v6672_v26  ;;  %v2026_v33 = vrot.slane %v6958_v24, 1 }
  0x56   : > { %v2586_v18 = vrot.slane %v2584_v7, 1  ;;  %196 = vst.msk [vmem:[#allocation2 + $0x30] sm:$0xff] %vm189_vm5, %v6672_v26  ;;  %197 = vst.msk [vmem:[#allocation2 + $0x38] sm:$0xff] %vm189_vm5, %v6672_v26  ;;  %v2607_v43 = vrot.slane %v2605_v32, 2  ;;  %v6569_v32 = vld [vmem:[%s6718_s20 + $0x88] sm:$0xff]  }
  0x57   : > { %6187 = vmatmul.mubr.msk.bf16.gmra.mrb[32].mxu0 %vm393_vm1, %v1509_v60  ;;  %6153 = vmatmul.mubr.msk.bf16.gmra.mrb[32].mxu1 %vm393_vm1, %v953_v63  ;;  %v6533_v60 = vld [vmem:[%s6718_s20 + $0x8] sm:$0xff]   ;;  %v2522_v63 = vshrl.u32 %v6538_v52, 16  ;;  %198 = vst.msk [vmem:[#allocation2 + $0x40] sm:$0xff] %vm189_vm5, %v6672_v26  ;;  %199 = vst.msk [vmem:[#allocation2 + $0x48] sm:$0xff] %vm189_vm5, %v6672_v26 }
  0x58   : > { %6190 = vmatprep.mubr.msk.bf16.mxu0 %vm393_vm1, %v1511_v0  ;;  %6156 = vmatprep.mubr.msk.bf16.mxu1 %vm393_vm1, %v961_v4  ;;  %v2525_v0 = vshll.u32 %v6538_v52, 16  ;;  %v2530_v4 = vshrl.u32 %v6539_v55, 16  ;;  %v2009_v8 = vrot.slane %v6533_v60, 1  ;;  %v2554_v52 = vor.u32 %v2553_v45, %v2550_v44  ;;  %200 = vst.msk [vmem:[#allocation2 + $0x50] sm:$0xff] %vm189_vm5, %v6672_v26  ;;  %201 = vst.msk [vmem:[#allocation2 + $0x58] sm:$0xff] %vm189_vm5, %v6672_v26  ;;  %v6554_v45 = vld [vmem:[%s6718_s20 + $0x60] sm:$0xff]  }
  0x59   : > { %v2524_v13 = vrot.slane %v2522_v63, 1  ;;  %v3774_v60 = vsel %vm448_vm0, %v6847_v16, 0  ;;  %v2571_v63 = vrot.slane %v2569_v50, 2  ;;  %202 = vst.msk [vmem:[#allocation2 + $0x60] sm:$0xff] %vm189_vm5, %v6672_v26  ;;  %203 = vst.msk [vmem:[#allocation2 + $0x68] sm:$0xff] %vm189_vm5, %v6672_v26  ;;  %v2027_v44 = vsel %vm1492_vm3, %v2024_v27, %v2026_v33 }
  0x5a   : > { %v2527_v14 = vrot.slane %v2525_v0, 2  ;;  %v6925_v0 = vld [vmem:[%s6713_s17 + $0xe] sm:$0x3]  ;;  %204 = vst.msk [vmem:[#allocation2 + $0x70] sm:$0xff] %vm189_vm5, %v6672_v26  ;;  %205 = vst.msk [vmem:[#allocation2 + $0x78] sm:$0xff] %vm189_vm5, %v6672_v26 }
  0x5b   : > { %206 = vst.msk [vmem:[#allocation2 + $0x80] sm:$0xff] %vm189_vm5, %v6672_v26  ;;  %207 = vst.msk [vmem:[#allocation2 + $0x88] sm:$0xff] %vm189_vm5, %v6672_v26 }
  0x5c   : > { %v2528_v29 = vor.u32 %v2527_v14, %v2524_v13  ;;  %v6942_v14 = vld [vmem:[%s6718_s20 + $0x48] sm:$0xff]   ;;  %208 = vst.msk [vmem:[#allocation2 + $0x90] sm:$0xff] %vm189_vm5, %v6672_v26  ;;  %209 = vst.msk [vmem:[#allocation2 + $0x98] sm:$0xff] %vm189_vm5, %v6672_v26 }
  0x5d   : > { %210 = vst.msk [vmem:[#allocation2 + $0xa0] sm:$0xff] %vm189_vm5, %v6672_v26  ;;  %211 = vst.msk [vmem:[#allocation2 + $0xa8] sm:$0xff] %vm189_vm5, %v6672_v26 }
  0x5e   : > { %212 = vst.msk [vmem:[#allocation2 + $0xb0] sm:$0xff] %vm189_vm5, %v6672_v26  ;;  %213 = vst.msk [vmem:[#allocation2 + $0xb8] sm:$0xff] %vm189_vm5, %v6672_v26 }
  0x5f   : > { %6191 = vmatmul.mubr.msk.bf16.gmra.mrb[36].mxu0 %vm393_vm1, %v1513_v17  ;;  %6157 = vmatmul.mubr.msk.bf16.gmra.mrb[36].mxu1 %vm393_vm1, %v969_v19  ;;  %v2532_v17 = vrot.slane %v2530_v4, 1  ;;  %v1017_v19 = vsel %vm869_vm2, %v1012_v5, %v1016_v1  ;;  %v2019_v1 = vsel %vm1492_vm3, %v2016_v47, %v2018_v51  ;;  %v2020_v5 = vrot.slane %v6544_v54, 1  ;;  %214 = vst.msk [vmem:[#allocation2 + $0xc0] sm:$0xff] %vm189_vm5, %v6672_v26 }
  0x60   : > { %6194 = vmatprep.mubr.msk.bf16.mxu0 %vm393_vm1, %v1515_v20  ;;  %6160 = vmatprep.mubr.msk.bf16.mxu1 %vm393_vm1, %v977_v23  ;;  %v1527_v20 = vsel %vm1492_vm3, %v1524_v2, %v1526_v6  ;;  %v2011_v23 = vsel %vm1492_vm3, %v2009_v8, %v2010_v9  ;;  %215 = vst.msk [vmem:[#allocation2 + $0xc8] sm:$0xff] %vm189_vm5, %v6672_v26  ;;  %216 = vst.msk [vmem:[#allocation2 + $0xd0] sm:$0xff] %vm189_vm5, %v6672_v26 }
  0x61   : > { %v2536_v30 = vor.u32 %v2535_v21, %v2532_v17  ;;  %v2589_v21 = vrot.slane %v2587_v10, 2  ;;  %217 = vst.msk [vmem:[#allocation2 + $0xd8] sm:$0xff] %vm189_vm5, %v6672_v26  ;;  %218 = vst.msk [vmem:[#allocation2 + $0xe0] sm:$0xff] %vm189_vm5, %v6672_v26  ;;  %v6560_v10 = vld [vmem:[%s6718_s20 + $0x78] sm:$0xff]  }
  0x62   : > { %219 = vst.msk [vmem:[#allocation2 + $0xe8] sm:$0xff] %vm189_vm5, %v6672_v26  ;;  %220 = vst.msk [vmem:[#allocation2 + $0xf0] sm:$0xff] %vm189_vm5, %v6672_v26  ;;  %v2036_v24 = vrot.slane %v6560_v10, 1 }
  0x63   : > { %v2537_v39 = vsel %vm2520_vm4, %v2528_v29, %v2536_v30  ;;  %221 = vst.msk [vmem:[#allocation2 + $0xf8] sm:$0xff] %vm189_vm5, %v6672_v26  ;;  %222 = vst.msk [vmem:[#allocation2 + $0x100] sm:$0xff] %vm189_vm5, %v6672_v26  ;;  %v2596_v29 = vshll.u32 %v6942_v14, 16 }
  0x64   : > { %223 = vst.msk [vmem:[#allocation2 + $0x108] sm:$0xff] %vm189_vm5, %v6672_v26  ;;  %224 = vst.msk [vmem:[#allocation2 + $0x110] sm:$0xff] %vm189_vm5, %v6672_v26 }
  0x65   : > { %225 = vst.msk [vmem:[#allocation2 + $0x118] sm:$0xff] %vm189_vm5, %v6672_v26 }
  0x67   : > { %6195 = vmatmul.mubr.msk.bf16.gmra.mrb[40].mxu0 %vm393_vm1, %v1517_v34  ;;  %6161 = vmatmul.mubr.msk.bf16.gmra.mrb[40].mxu1 %vm393_vm1, %v985_v37  ;;  %v6545_v34 = vld [vmem:[%s6718_s20 + $0x28] sm:$0xff]   ;;  %v2544_v37 = vrot.slane %v2542_v28, 2 }
  0x68   : > { %6198 = vmatprep.mubr.msk.bf16.mxu0 %vm393_vm1, %v1519_v38  ;;  %6164 = vmatprep.mubr.msk.bf16.mxu1 %vm393_vm1, %v993_v41  ;;  %v2013_v38 = vsel %vm1492_vm3, %v2010_v9, %v2012_v25  ;;  %v3258_v41 = vsel %vm448_vm0, %v6834_v3, 0  ;;  %v2557_v46 = vshrl.u32 %v6545_v34, 16  ;;  %v2560_v49 = vshll.u32 %v6545_v34, 16  ;;  %v6552_v34 = vld [vmem:[%s6718_s20 + $0x58] sm:$0xff]  }
  0x69   : > { %v2545_v48 = vor.u32 %v2544_v37, %v2541_v36  ;;  %v2566_v3 = vshrl.u32 %v6547_v40, 16  ;;  %v2593_v25 = vshrl.u32 %v6942_v14, 16  ;;  %v6557_v36 = vld [vmem:[%s6718_s20 + $0x58] sm:$0xff]  }
  0x6a   : > { %v2559_v55 = vrot.slane %v2557_v46, 1  ;;  %v2611_v46 = vshrl.u32 %v6557_v36, 16  ;;  %v6565_v14 = vld [vmem:[%s6718_s20 + $0x78] sm:$0xff]  }
  0x6b   : > { %v2568_v62 = vrot.slane %v2566_v3, 1  ;;  %v2555_v2 = vsel %vm2520_vm4, %v2545_v48, %v2554_v52  ;;  %v2028_v3 = vrot.slane %v6552_v34, 1  ;;  %v2647_v26 = vshrl.u32 %v6565_v14, 16 }
  0x6c   : > { %v2613_v54 = vrot.slane %v2611_v46, 1 }
  0x6d   : > { %v6936_v9 = vor.u32 %v2571_v63, %v2568_v62  ;;  %v6563_v62 = vld [vmem:[%s6718_s20 + $0x70] sm:$0xff]   ;;  %v2649_v34 = vrot.slane %v2647_v26, 1 }
  0x6e   : > { %v2638_v7 = vshrl.u32 %v6563_v62, 16 }
  0x6f   : > { %6199 = vmatmul.mubr.msk.bf16.gmra.mrb[44].mxu0 %vm393_vm1, %v1521_v53  ;;  %6165 = vmatmul.mubr.msk.bf16.gmra.mrb[44].mxu1 %vm393_vm1, %v1001_v56  ;;  %v6549_v53 = vld [vmem:[%s6718_s20 + $0x38] sm:$0xff]   ;;  %v2546_v56 = vsel %vm2520_vm4, %v2536_v30, %v2545_v48  ;;  %v2590_v30 = vor.u32 %v2589_v21, %v2586_v18  ;;  %v2614_v48 = vshll.u32 %v6557_v36, 16  ;;  %v6567_v21 = vld [vmem:[%s6718_s20 + $0x80] sm:$0xff]   ;;  %v6570_v36 = vld [vmem:[%s6718_s20 + $0x90] sm:$0xff]  }
  0x70   : > { %6202 = vmatprep.mubr.msk.bf16.mxu0 %vm393_vm1, %v1523_v57  ;;  %6168 = vmatprep.mubr.msk.bf16.mxu1 %vm393_vm1, %v1009_v61  ;;  %v2562_v57 = vrot.slane %v2560_v49, 2  ;;  %v6922_v61 = vld [vmem:[%s6718_s20 + $0x40] sm:$0xff]   ;;  %v2575_v4 = vshrl.u32 %v6549_v53, 16  ;;  %v2578_v16 = vshll.u32 %v6549_v53, 16  ;;  %v6556_v53 = vld [vmem:[%s6718_s20 + $0x68] sm:$0xff]  }
  0x71   : > { %v2022_v8 = vrot.slane %v6922_v61, 1 }
  0x72   : > { %v2563_v6 = vor.u32 %v2562_v57, %v2559_v55  ;;  %v2577_v12 = vrot.slane %v2575_v4, 1  ;;  %v2580_v13 = vrot.slane %v2578_v16, 2  ;;  %v6561_v55 = vld [vmem:[%s6718_s20 + $0x68] sm:$0xff]   ;;  %v2616_v57 = vrot.slane %v2614_v48, 2 }
  0x73   : > { %v2025_v40 = vsel %vm1492_vm3, %v2022_v8, %v2024_v27  ;;  %v2032_v4 = vrot.slane %v6556_v53, 1  ;;  %v2650_v27 = vshll.u32 %v6565_v14, 16  ;;  %v2677_v48 = vshll.u32 %v6570_v36, 16  ;;  %v6577_v14 = vld [vmem:[%s6718_s20 + $0x18] sm:$0xff]  }
  0x74   : > { %v2564_v17 = vsel %vm2520_vm4, %v2554_v52, %v2563_v6  ;;  %v2581_v28 = vor.u32 %v2580_v13, %v2577_v12  ;;  %v2030_v52 = vrot.slane %v6554_v45, 1  ;;  %v2617_v16 = vor.u32 %v2616_v57, %v2613_v54  ;;  %v6573_v54 = vld [vmem:[%s6718_s20 + $0x98] ss:$0 sps:$4 sm:$0xff]  }
  0x75   : > { %v2668_v45 = vshll.u32 %v6569_v32, 16  ;;  %v2679_v57 = vrot.slane %v2677_v48, 2 }
  0x76   : > { %v2582_v37 = vsel %vm2520_vm4, %v6936_v9, %v2581_v28  ;;  %v2031_v63 = vsel %vm1492_vm3, %v2028_v3, %v2030_v52 }
  0x77   : > { %6203 = vmatmul.mubr.msk.bf16.gmra.mrb[48].mxu0 %vm393_vm1, %v1525_v15  ;;  %6169 = vmatmul.mubr.msk.bf16.gmra.mrb[48].mxu1 %vm393_vm1, %v1017_v19  ;;  %v6945_v15 = vld [vmem:[%s6713_s17 + $0x10] sm:$0x3]  ;;  %v2021_v19 = vsel %vm1492_vm3, %v2018_v51, %v2020_v5  ;;  %v2670_v53 = vrot.slane %v2668_v45, 2 }
  0x78   : > { %6206 = vmatprep.mubr.msk.bf16.mxu0 %vm393_vm1, %v1527_v20  ;;  %6212 = vmatprep.mubr.msk.bf16.mxu1 %vm393_vm1, %v2011_v23  ;;  %v2573_v20 = vsel %vm2520_vm4, %v2563_v6, %v6936_v9  ;;  %v2023_v23 = vsel %vm1492_vm3, %v2020_v5, %v2022_v8  ;;  %v2632_v5 = vshll.u32 %v6561_v55, 16  ;;  %v2641_v8 = vshll.u32 %v6563_v62, 16  ;;  %v6572_v62 = vld [vmem:[%s6718_s20 + $0x10] sm:$0xff]  }
  0x7a   : > { %v2634_v13 = vrot.slane %v2632_v5, 2 }
  0x7f   : > { %6207 = vmatmul.mubr.msk.bf16.gmra.mrb[52].mxu0 %vm393_vm1, %v1529_v35  ;;  %6213 = vmatmul.mubr.msk.bf16.vlgmr.msra.gmra.mrb[52].mxu1 %vm393_vm1, %v2013_v38  ;;  %v2595_v35 = vrot.slane %v2593_v25, 1  ;;  %v2598_v38 = vrot.slane %v2596_v29, 2  ;;  %v2656_v29 = vshrl.u32 %v6567_v21, 16 }
  0x80   : > { %6250 = vmatprep.mubr.msk.bf16.mxu0 %vm393_vm1, %v2537_v39  ;;  %6287 = vmatpush3.bf16.msra.mxu1 %v3258_v41  ;;  %v6559_v39 = vld [vmem:[%s6718_s20 + $0x60] sm:$0xff]   ;;  %v2591_v41 = vsel %vm2520_vm4, %v2581_v28, %v2590_v30 }
  0x81   : > { %6216 = vmatprep.mubr.msk.bf16.mxu1 %vm393_vm1, %v2015_v42  ;;  %6448 = vmatprep.subr.msk.bf16.mxu1 %vm448_vm0, %v6925_v0  ;;  %v2604_v42 = vrot.slane %v2602_v31, 1  ;;  %v2599_v47 = vor.u32 %v2598_v38, %v2595_v35  ;;  %v2620_v49 = vshrl.u32 %v6559_v39, 16  ;;  %v2623_v51 = vshll.u32 %v6559_v39, 16  ;;  %v6564_v39 = vld [vmem:[%s6718_s20 + $0x88] sm:$0xff]  }
  0x82   : > { %v2652_v35 = vrot.slane %v2650_v27, 2 }
  0x83   : > { %v2608_v50 = vor.u32 %v2607_v43, %v2604_v42  ;;  %v2622_v58 = vrot.slane %v2620_v49, 1  ;;  %v2625_v61 = vrot.slane %v2623_v51, 2  ;;  %v6566_v43 = vld [vmem:[%s6718_s20 + $0x90] sm:$0xff]   ;;  %v2040_v49 = vrot.slane %v6564_v39, 1  ;;  %v6568_v51 = vld [vmem:[%s6718_s20 + $0x98] ss:$0 sps:$4 sm:$0xff]  }
  0x84   : > { %v2653_v46 = vor.u32 %v2652_v35, %v2649_v34  ;;  %v4931_v39 = vsel %vm448_vm0, %v6945_v15, 0 }
  0x85   : > { %v2626_v6 = vor.u32 %v2625_v61, %v2622_v58  ;;  %v2618_v12 = vsel %vm2520_vm4, %v2608_v50, %v2617_v16  ;;  %v6571_v61 = vld [vmem:[%s6718_s20 + $0x8] sm:$0xff]  }
  0x86   : > { %v3166_v5 = vrot.slane %v6571_v61, 2 }
  0x87   : > { %6251 = vmatmul.mubr.msk.bf16.vlgmr.msra.gmra.mrb[56].mxu0 %vm393_vm1, %v2546_v56  ;;  %6217 = vmatmul.mubr.msk.bf16.gmra.mrb[56].mxu1 %vm393_vm1, %v2017_v59  ;;  %v2600_v56 = vsel %vm2520_vm4, %v2590_v30, %v2599_v47  ;;  %v2029_v59 = vsel %vm1492_vm3, %v2026_v33, %v2028_v3  ;;  %v2627_v18 = vsel %vm2520_vm4, %v2617_v16, %v2626_v6  ;;  %v2659_v30 = vshll.u32 %v6567_v21, 16 }
  0x88   : > { %6325 = vmatpush3.bf16.msra.mxu0 %v3774_v60  ;;  %6220 = vmatprep.mubr.msk.bf16.mxu1 %vm393_vm1, %v2019_v1  ;;  %v2609_v60 = vsel %vm2520_vm4, %v2599_v47, %v2608_v50  ;;  %v6558_v1 = vld [vmem:[%s6718_s20 + $0x70] sm:$0xff]   ;;  %v2674_v47 = vshrl.u32 %v6570_v36, 16  ;;  %v2042_v50 = vrot.slane %v6566_v43, 1 }
  0x89   : > { %6254 = vmatprep.mubr.msk.bf16.mxu0 %vm393_vm1, %v2555_v2  ;;  %6449 = vmatprep.subr.msk.bf16.mxu0 %vm448_vm0, %v6945_v15  ;;  %v2629_v2 = vshrl.u32 %v6561_v55, 16  ;;  %v2034_v9 = vrot.slane %v6558_v1, 1  ;;  %v2683_v1 = vshrl.u32 %v6573_v54, 16 }
  0x8b   : > { %v2631_v11 = vrot.slane %v2629_v2, 1  ;;  %v2035_v22 = vsel %vm1492_vm3, %v2032_v4, %v2034_v9  ;;  %v2686_v2 = vshll.u32 %v6573_v54, 16  ;;  %v6588_v54 = vld [vmem:[%s6718_s20 + $0x50] sm:$0xff]  }
  0x8d   : > { %v2635_v25 = vor.u32 %v2634_v13, %v2631_v11  ;;  %v2688_v10 = vrot.slane %v2686_v2, 2  ;;  %v6576_v13 = vld [vmem:[%s6718_s20 + $0x10] sm:$0xff]  }
  0x8e   : > { %v3682_v21 = vrot.slane %v6576_v13, 2  ;;  %v7137_v13 = vld [vmem:[%s6718_s20 + $0x68] sm:$0xff]  }
  0x8f   : > { %6255 = vmatmul.mubr.msk.bf16.gmra.mrb[60].mxu0 %vm393_vm1, %v2564_v17  ;;  %6221 = vmatmul.mubr.msk.bf16.gmra.mrb[60].mxu1 %vm393_vm1, %v2021_v19  ;;  %v2033_v17 = vsel %vm1492_vm3, %v2030_v52, %v2032_v4  ;;  %v2640_v19 = vrot.slane %v2638_v7, 1  ;;  %v2636_v33 = vsel %vm2520_vm4, %v2626_v6, %v2635_v25  ;;  %v2044_v4 = vrot.slane %v6568_v51, 1  ;;  %v6574_v7 = vld [vmem:[%s6718_s20 + $0x18] sm:$0xff]   ;;  %v6586_v51 = vld [vmem:[%s6718_s20 + $0x48] sm:$0xff]  }
  0x90   : > { %6258 = vmatprep.mubr.msk.bf16.mxu0 %vm393_vm1, %v2573_v20  ;;  %6224 = vmatprep.mubr.msk.bf16.mxu1 %vm393_vm1, %v2023_v23  ;;  %v2643_v20 = vrot.slane %v2641_v8, 2  ;;  %v6562_v23 = vld [vmem:[%s6718_s20 + $0x80] sm:$0xff]   ;;  %v3167_v6 = vrot.slane %v6572_v62, 2 }
  0x91   : > { %v2038_v31 = vrot.slane %v6562_v23, 1  ;;  %v2045_v11 = vsel %vm1492_vm3, %v2042_v50, %v2044_v4  ;;  %v6592_v4 = vld [vmem:[%s6718_s20 + $0x60] sm:$0xff]  }
  0x92   : > { %v2644_v28 = vor.u32 %v2643_v20, %v2640_v19  ;;  %v3169_v20 = vrot.slane %v6574_v7, 2  ;;  %v3187_v7 = vrot.slane %v6592_v4, 2  ;;  %v7180_v4 = vld [vmem:[%s6718_s20 + $0x88] sm:$0xff]  }
  0x93   : > { %v2039_v42 = vsel %vm1492_vm3, %v2036_v24, %v2038_v31  ;;  %v2041_v58 = vsel %vm1492_vm3, %v2038_v31, %v2040_v49  ;;  %v6580_v31 = vld [vmem:[%s6718_s20 + $0x30] sm:$0xff]  }
  0x94   : > { %v2645_v38 = vsel %vm2520_vm4, %v2635_v25, %v2644_v28  ;;  %v2654_v55 = vsel %vm2520_vm4, %v2644_v28, %v2653_v46  ;;  %v6579_v25 = vld [vmem:[%s6718_s20 + $0x20] sm:$0xff]   ;;  %v3170_v26 = vsel %vm3165_vm6, %v3167_v6, %v3169_v20  ;;  %v6578_v28 = vld [vmem:[%s6718_s20 + $0x28] sm:$0xff]   ;;  %v3175_v35 = vrot.slane %v6580_v31, 2  ;;  %v289_v31 = vld [vmem:[#allocation2 + $0xb8] sm:$0xff] }
  0x95   : > { %v3173_v34 = vrot.slane %v6578_v28, 2 }
  0x97   : > { %6259 = vmatmul.mubr.msk.bf16.gmra.mrb[64].mxu0 %vm393_vm1, %v2582_v37  ;;  %6225 = vmatmul.mubr.msk.bf16.gmra.mrb[64].mxu1 %vm393_vm1, %v2025_v40  ;;  %v2037_v37 = vsel %vm1492_vm3, %v2034_v9, %v2036_v24  ;;  %v2658_v40 = vrot.slane %v2656_v29, 1  ;;  %v2685_v9 = vrot.slane %v2683_v1, 1  ;;  %v4419_v29 = vsel %vm448_vm0, %v6925_v0, 0  ;;  %v6593_v1 = vld [vmem:[%s6718_s20 + $0x58] sm:$0xff]  }
  0x98   : > { %6262 = vmatprep.mubr.msk.bf16.mxu0 %vm393_vm1, %v2591_v41  ;;  %6228 = vmatprep.mubr.msk.bf16.mxu1 %vm393_vm1, %v2027_v44  ;;  %v2661_v41 = vrot.slane %v2659_v30, 2  ;;  %v2665_v44 = vshrl.u32 %v6569_v32, 16  ;;  %v6581_v32 = vld [vmem:[%s6718_s20 + $0x28] sm:$0xff]  }
  0x99   : > { %v2689_v19 = vor.u32 %v2688_v10, %v2685_v9  ;;  %v3687_v0 = vrot.slane %v6581_v32, 2  ;;  %v6595_v9 = vld [vmem:[%s6718_s20 + $0x60] sm:$0xff]   ;;  %v267_v32 = vld [vmem:[#allocation2 + $0x8] sm:$0xff] }
  0x9a   : > { %v2662_v3 = vor.u32 %v2661_v41, %v2658_v40  ;;  %v2667_v52 = vrot.slane %v2665_v44, 1  ;;  %v6582_v40 = vld [vmem:[%s6718_s20 + $0x38] sm:$0xff]   ;;  %v6584_v44 = vld [vmem:[%s6718_s20 + $0x40] sm:$0xff]  }
  0x9b   : > { %v6585_v41 = vld [vmem:[%s6718_s20 + $0x38] sm:$0xff]   ;;  %v3177_v15 = vrot.slane %v6582_v40, 2 }
  0x9f   : > { %6263 = vmatmul.mubr.msk.bf16.gmra.mrb[68].mxu0 %vm393_vm1, %v2600_v56  ;;  %6229 = vmatmul.mubr.msk.bf16.gmra.mrb[68].mxu1 %vm393_vm1, %v2029_v59  ;;  %v2676_v56 = vrot.slane %v2674_v47, 1  ;;  %v2663_v59 = vsel %vm2520_vm4, %v2653_v46, %v2662_v3  ;;  %v3691_v46 = vrot.slane %v6585_v41, 2  ;;  %v3179_v47 = vrot.slane %v6584_v44, 2 }
  0xa0   : > { %6266 = vmatprep.mubr.msk.bf16.mxu0 %vm393_vm1, %v2609_v60  ;;  %6232 = vmatprep.mubr.msk.bf16.mxu1 %vm393_vm1, %v2031_v63  ;;  %v2043_v60 = vsel %vm1492_vm3, %v2040_v49, %v2042_v50  ;;  %v2671_v63 = vor.u32 %v2670_v53, %v2667_v52  ;;  %v6587_v49 = vld [vmem:[%s6718_s20 + $0x40] sm:$0xff]   ;;  %v6589_v52 = vld [vmem:[%s6718_s20 + $0x48] sm:$0xff]  }
  0xa1   : > { %v2680_v16 = vor.u32 %v2679_v57, %v2676_v56  ;;  %v3180_v53 = vsel %vm3165_vm6, %v3177_v15, %v3179_v47  ;;  %v3181_v56 = vrot.slane %v6586_v51, 2  ;;  %v3695_v57 = vrot.slane %v6589_v52, 2  ;;  %v272_v51 = vld [vmem:[#allocation2 + $0x30] sm:$0xff] }
  0xa2   : > { %v2672_v8 = vsel %vm2520_vm4, %v2662_v3, %v2671_v63  ;;  %v3178_v3 = vsel %vm3165_vm6, %v3175_v35, %v3177_v15  ;;  %v7158_v15 = vld [vmem:[%s6718_s20 + $0x78] sm:$0xff]  }
  0xa3   : > { %v2690_v24 = vsel %vm2520_vm4, %v2680_v16, %v2689_v19  ;;  %v3182_v61 = vsel %vm3165_vm6, %v3179_v47, %v3181_v56  ;;  %v3701_v19 = vrot.slane %v6595_v9, 2  ;;  %v291_v9 = vld [vmem:[#allocation2 + $0xc8] sm:$0xff] }
  0xa7   : > { %6267 = vmatmul.mubr.msk.bf16.gmra.mrb[72].mxu0 %vm393_vm1, %v2618_v12  ;;  %6233 = vmatmul.mubr.msk.bf16.gmra.mrb[72].mxu1 %vm393_vm1, %v2033_v17  ;;  %v2681_v12 = vsel %vm2520_vm4, %v2671_v63, %v2680_v16  ;;  %v3168_v17 = vsel %vm3165_vm6, %v3166_v5, %v3167_v6  ;;  %v6590_v63 = vld [vmem:[%s6718_s20 + $0x58] sm:$0xff]   ;;  %v3699_v6 = vrot.slane %v6593_v1, 2 }
  0xa8   : > { %6270 = vmatprep.mubr.msk.bf16.mxu0 %vm393_vm1, %v2627_v18  ;;  %6236 = vmatprep.mubr.msk.bf16.mxu1 %vm393_vm1, %v2035_v22  ;;  %v6575_v18 = vld [vmem:[%s6718_s20 + $0x20] sm:$0xff]   ;;  %v3683_v22 = vrot.slane %v6577_v14, 2  ;;  %v3185_v5 = vrot.slane %v6590_v63, 2 }
  0xa9   : > { %v3171_v23 = vrot.slane %v6575_v18, 2  ;;  %v268_v18 = vld [vmem:[#allocation2 + $0x10] sm:$0xff] }
  0xaa   : > { %v3684_v27 = vsel %vm3165_vm6, %v3682_v21, %v3683_v22  ;;  %v3188_v14 = vsel %vm3165_vm6, %v3185_v5, %v3187_v7  ;;  %v266_v21 = vld [vmem:[#allocation2] sm:$0xff] }
  0xab   : > { %v3172_v30 = vsel %vm3165_vm6, %v3169_v20, %v3171_v23  ;;  %v288_v20 = vld [vmem:[#allocation2 + $0xb0] sm:$0xff] }
  0xaf   : > { %6271 = vmatmul.mubr.msk.bf16.gmra.mrb[76].mxu0 %vm393_vm1, %v2636_v33  ;;  %6237 = vmatmul.mubr.msk.bf16.gmra.mrb[76].mxu1 %vm393_vm1, %v2037_v37  ;;  %v3685_v33 = vrot.slane %v6579_v25, 2  ;;  %v6583_v37 = vld [vmem:[%s6718_s20 + $0x30] sm:$0xff]   ;;  %v286_v25 = vld [vmem:[#allocation2 + $0xa0] sm:$0xff] }
  0xb0   : > { %6274 = vmatprep.mubr.msk.bf16.mxu0 %vm393_vm1, %v2645_v38  ;;  %6240 = vmatprep.mubr.msk.bf16.mxu1 %vm393_vm1, %v2039_v42  ;;  %v3174_v38 = vsel %vm3165_vm6, %v3171_v23, %v3173_v34  ;;  %v3176_v42 = vsel %vm3165_vm6, %v3173_v34, %v3175_v35  ;;  %v3689_v45 = vrot.slane %v6583_v37, 2  ;;  %v3703_v23 = vrot.slane %v7137_v13, 2 }
  0xb1   : > { %v3686_v36 = vsel %vm3165_vm6, %v3683_v22, %v3685_v33  ;;  %v3688_v43 = vsel %vm3165_vm6, %v3685_v33, %v3687_v0  ;;  %v3702_v37 = vsel %vm3165_vm6, %v3699_v6, %v3701_v19 }
  0xb2   : > { %v3690_v48 = vsel %vm3165_vm6, %v3687_v0, %v3689_v45  ;;  %v3692_v50 = vsel %vm3165_vm6, %v3689_v45, %v3691_v46  ;;  %v3704_v44 = vsel %vm3165_vm6, %v3701_v19, %v3703_v23  ;;  %v6598_v45 = vld [vmem:[%s6718_s20 + $0x78] sm:$0xff]  }
  0xb7   : > { %6275 = vmatmul.mubr.msk.bf16.gmra.mrb[80].mxu0 %vm393_vm1, %v2654_v55  ;;  %6241 = vmatmul.mubr.msk.bf16.gmra.mrb[80].mxu1 %vm393_vm1, %v2041_v58  ;;  %v3693_v55 = vrot.slane %v6587_v49, 2  ;;  %v3183_v58 = vrot.slane %v6588_v54, 2  ;;  %v270_v54 = vld [vmem:[#allocation2 + $0x20] sm:$0xff] }
  0xb8   : > { %6278 = vmatprep.mubr.msk.bf16.mxu0 %vm393_vm1, %v2663_v59  ;;  %6244 = vmatprep.mubr.msk.bf16.mxu1 %vm393_vm1, %v2043_v60  ;;  %v6591_v59 = vld [vmem:[%s6718_s20 + $0x50] sm:$0xff]  }
  0xb9   : > { %v3694_v60 = vsel %vm3165_vm6, %v3691_v46, %v3693_v55  ;;  %v3696_v62 = vsel %vm3165_vm6, %v3693_v55, %v3695_v57  ;;  %v3184_v2 = vsel %vm3165_vm6, %v3181_v56, %v3183_v58  ;;  %v3697_v16 = vrot.slane %v6591_v59, 2  ;;  %v273_v59 = vld [vmem:[#allocation2 + $0x38] sm:$0xff] }
  0xba   : > { %v3186_v10 = vsel %vm3165_vm6, %v3183_v58, %v3185_v5  ;;  %v3193_v55 = vrot.slane %v6598_v45, 2  ;;  %v3707_v56 = vrot.slane %v7158_v15, 2  ;;  %v290_v58 = vld [vmem:[#allocation2 + $0xc0] sm:$0xff]  ;;  %v275_v45 = vld [vmem:[#allocation2 + $0x48] sm:$0xff]  ;;  %v7233_v15 = vld [vmem:[%s6718_s20 + $0x98] sm:$0xff]  }
  0xbf   : > { %6279 = vmatmul.mubr.msk.bf16.gmra.mrb[84].mxu0 %vm393_vm1, %v2672_v8  ;;  %6245 = vmatmul.mubr.msk.bf16.gmra.mrb[84].mxu1 %vm393_vm1, %v2045_v11  ;;  %v3698_v8 = vsel %vm3165_vm6, %v3695_v57, %v3697_v16  ;;  %v3700_v11 = vsel %vm3165_vm6, %v3697_v16, %v3699_v6  ;;  %v7183_v16 = vld [vmem:[%s6718_s20 + $0x80] sm:$0xff]  }
  0xc0   : > { %6282 = vmatprep.mubr.msk.bf16.mxu0 %vm393_vm1, %v2681_v12  ;;  %6288 = vmatprep.mubr.msk.bf16.mxu1 %vm393_vm1, %v3168_v17  ;;  %v6594_v12 = vld [vmem:[%s6718_s20 + $0x68] sm:$0xff]   ;;  %v7141_v17 = vld [vmem:[%s6718_s20 + $0x70] sm:$0xff]  }
  0xc1   : > { %v3189_v22 = vrot.slane %v6594_v12, 2  ;;  %v7192_v12 = vld [vmem:[%s6718_s20 + $0x88] sm:$0xff]  }
  0xc7   : > { %6283 = vmatmul.mubr.msk.bf16.gmra.mrb[88].mxu0 %vm393_vm1, %v2690_v24  ;;  %6289 = vmatmul.mubr.msk.bf16.vlgmr.msra.gmra.mrb[88].mxu1 %vm393_vm1, %v3170_v26  ;;  %v269_v26 = vld [vmem:[#allocation2 + $0x18] sm:$0xff] }
  0xc8   : > { %6326 = vmatprep.mubr.msk.bf16.mxu0 %vm393_vm1, %v3684_v27  ;;  %6363 = vmatpush3.bf16.msra.mxu1 %v4419_v29  ;;  %v3191_v27 = vrot.slane %v7141_v17, 2 }
  0xc9   : > { %6292 = vmatprep.mubr.msk.bf16.mxu1 %vm393_vm1, %v3172_v30 }
  0xca   : > { %v3192_v49 = vsel %vm3165_vm6, %v3189_v22, %v3191_v27 }
  0xcf   : > { %6327 = vmatmul.mubr.msk.bf16.vlgmr.msra.gmra.mrb[92].mxu0 %vm393_vm1, %v3686_v36  ;;  %6293 = vmatmul.mubr.msk.bf16.gmra.mrb[92].mxu1 %vm393_vm1, %v3174_v38  ;;  %v287_v36 = vld [vmem:[#allocation2 + $0xa8] sm:$0xff]  ;;  %v6599_v38 = vld [vmem:[%s6718_s20 + $0x70] sm:$0xff]  }
  0xd0   : > { %6401 = vmatpush3.bf16.msra.mxu0 %v4931_v39  ;;  %6296 = vmatprep.mubr.msk.bf16.mxu1 %vm393_vm1, %v3176_v42  ;;  %v3705_v52 = vrot.slane %v6599_v38, 2  ;;  %v277_v38 = vld [vmem:[#allocation2 + $0x58] sm:$0xff] }
  0xd1   : > { %6330 = vmatprep.mubr.msk.bf16.mxu0 %vm393_vm1, %v3688_v43  ;;  %v3190_v43 = vsel %vm3165_vm6, %v3187_v7, %v3189_v22  ;;  %v6609_v22 = vld [vmem:[%s6718_s20 + $0x10] sm:$0xff]  }
  0xd2   : > { %v3708_v13 = vsel %vm3165_vm6, %v3705_v52, %v3707_v56 }
  0xd7   : > { %6331 = vmatmul.mubr.msk.bf16.gmra.mrb[96].mxu0 %vm393_vm1, %v3690_v48  ;;  %6297 = vmatmul.mubr.msk.bf16.gmra.mrb[96].mxu1 %vm393_vm1, %v3178_v3  ;;  %v7166_v3 = vld [vmem:[%s6718_s20 + $0x80] sm:$0xff]  }
  0xd8   : > { %6334 = vmatprep.mubr.msk.bf16.mxu0 %vm393_vm1, %v3692_v50  ;;  %6300 = vmatprep.mubr.msk.bf16.mxu1 %vm393_vm1, %v3180_v53  ;;  %v292_v53 = vld [vmem:[#allocation2 + $0xd0] sm:$0xff] }
  0xdf   : > { %6335 = vmatmul.mubr.msk.bf16.gmra.mrb[100].mxu0 %vm393_vm1, %v3694_v60  ;;  %6301 = vmatmul.mubr.msk.bf16.gmra.mrb[100].mxu1 %vm393_vm1, %v3182_v61  ;;  %v293_v60 = vld [vmem:[#allocation2 + $0xd8] sm:$0xff]  ;;  %v3195_v61 = vrot.slane %v7166_v3, 2 }
  0xe0   : > { %6338 = vmatprep.mubr.msk.bf16.mxu0 %vm393_vm1, %v3696_v62  ;;  %6304 = vmatprep.mubr.msk.bf16.mxu1 %vm393_vm1, %v3184_v2  ;;  %v271_v2 = vld [vmem:[#allocation2 + $0x28] sm:$0xff] }
  0xe7   : > { %6339 = vmatmul.mubr.msk.bf16.gmra.mrb[104].mxu0 %vm393_vm1, %v3698_v8  ;;  %6305 = vmatmul.mubr.msk.bf16.gmra.mrb[104].mxu1 %vm393_vm1, %v3186_v10  ;;  %v3706_v10 = vsel %vm3165_vm6, %v3703_v23, %v3705_v52 }
  0xe8   : > { %6342 = vmatprep.mubr.msk.bf16.mxu0 %vm393_vm1, %v3700_v11  ;;  %6308 = vmatprep.mubr.msk.bf16.mxu1 %vm393_vm1, %v3188_v14  ;;  %v7189_v11 = vld [vmem:[%s6718_s20 + $0x90] sm:$0xff]  }
  0xea   : > { %v6100_v24 = vpop.f32.mrb[0].mxu0  ;;  %v6120_v29 = vpop.f32.mrb[0].mxu1 }
  0xeb   : > { %v631_v28 = vadd.f32 %v6100_v24, %v268_v18  ;;  %v486_v30 = vpop.f32.mrb[1].mxu0  ;;  %v651_v33 = vadd.f32 %v6120_v29, %v288_v20  ;;  %v566_v35 = vpop.f32.mrb[1].mxu1  ;;  %v3709_v29 = vrot.slane %v7183_v16, 2 }
  0xec   : > { %v629_v34 = vadd.f32 %v486_v30, %v266_v21  ;;  %v6101_v0 = vpop.f32.mrb[2].mxu0  ;;  %v649_v39 = vadd.f32 %v566_v35, %v286_v25  ;;  %v6121_v41 = vpop.f32.mrb[2].mxu1  ;;  %v3194_v21 = vsel %vm3165_vm6, %v3191_v27, %v3193_v55  ;;  %v3197_v27 = vrot.slane %v7180_v4, 2  ;;  %v276_v30 = vld [vmem:[#allocation2 + $0x50] sm:$0xff] }
  0xed   : > { %667 = vst.msk [vmem:[#allocation2 + $0x10] sm:$0xff] %vm189_vm5, %v631_v28  ;;  %v632_v40 = vadd.f32 %v6101_v0, %v269_v26  ;;  %v489_v42 = vpop.f32.mrb[3].mxu0  ;;  %687 = vst.msk [vmem:[#allocation2 + $0xb0] sm:$0xff] %vm189_vm5, %v651_v33  ;;  %v652_v46 = vadd.f32 %v6121_v41, %v289_v31  ;;  %v569_v48 = vpop.f32.mrb[3].mxu1  ;;  %v3196_v26 = vsel %vm3165_vm6, %v3193_v55, %v3195_v61  ;;  %v6610_v28 = vld [vmem:[%s6718_s20 + $0x18] sm:$0xff]   ;;  %v3199_v31 = vrot.slane %v7189_v11, 2 }
  0xee   : > { %665 = vst.msk [vmem:[#allocation2] sm:$0xff] %vm189_vm5, %v629_v34  ;;  %v630_v47 = vadd.f32 %v489_v42, %v267_v32  ;;  %685 = vst.msk [vmem:[#allocation2 + $0xa0] sm:$0xff] %vm189_vm5, %v649_v39  ;;  %v650_v50 = vadd.f32 %v569_v48, %v287_v36  ;;  %v3711_v32 = vrot.slane %v7192_v12, 2  ;;  %v296_v33 = vld [vmem:[#allocation2 + $0xf0] sm:$0xff]  ;;  %v274_v34 = vld [vmem:[#allocation2 + $0x40] sm:$0xff]  ;;  %v4195_v35 = vshrl.u32 %v6609_v22, 16 }
  0xef   : > { %668 = vst.msk [vmem:[#allocation2 + $0x18] sm:$0xff] %vm189_vm5, %v632_v40  ;;  %6343 = vmatmul.mubr.msk.bf16.gmra.mrb[108].mxu0 %vm393_vm1, %v3702_v37  ;;  %688 = vst.msk [vmem:[#allocation2 + $0xb8] sm:$0xff] %vm189_vm5, %v652_v46  ;;  %6309 = vmatmul.mubr.msk.bf16.gmra.mrb[108].mxu1 %vm393_vm1, %v3190_v43  ;;  %v4198_v0 = vshll.u32 %v6609_v22, 16  ;;  %v294_v37 = vld [vmem:[#allocation2 + $0xe0] sm:$0xff]  ;;  %v297_v39 = vld [vmem:[#allocation2 + $0xf8] sm:$0xff]  ;;  %v4203_v40 = vshrl.u32 %v6610_v28, 16  ;;  %v3198_v46 = vsel %vm3165_vm6, %v3195_v61, %v3197_v27 }
  0xf0   : > { %666 = vst.msk [vmem:[#allocation2 + $0x8] sm:$0xff] %vm189_vm5, %v630_v47  ;;  %6346 = vmatprep.mubr.msk.bf16.mxu0 %vm393_vm1, %v3704_v44  ;;  %686 = vst.msk [vmem:[#allocation2 + $0xa8] sm:$0xff] %vm189_vm5, %v650_v50  ;;  %6312 = vmatprep.mubr.msk.bf16.mxu1 %vm393_vm1, %v3192_v49  ;;  %v4206_v41 = vshll.u32 %v6610_v28, 16  ;;  %v3710_v47 = vsel %vm3165_vm6, %v3707_v56, %v3709_v29  ;;  %v6606_v48 = vld [vmem:[%s6718_s20 + $0x98] ss:$0 sps:$4 sm:$0xff]   ;;  %v6612_v49 = vld [vmem:[%s6718_s20 + $0x20] sm:$0xff]   ;;  %v3712_v55 = vsel %vm3165_vm6, %v3709_v29, %v3711_v32 }
  0xf1   : > { %v7236_v61 = vrot.slane %v4195_v35, 2  ;;  %v4205_v16 = vrot.slane %v4203_v40, 2 }
  0xf2   : > { %v6104_v57 = vpop.f32.mrb[4].mxu0  ;;  %v6124_v63 = vpop.f32.mrb[4].mxu1 }
  0xf3   : > { %v635_v62 = vadd.f32 %v6104_v57, %v272_v51  ;;  %v502_v1 = vpop.f32.mrb[5].mxu0  ;;  %v655_v5 = vadd.f32 %v6124_v63, %v292_v53  ;;  %v582_v7 = vpop.f32.mrb[5].mxu1  ;;  %v295_v53 = vld [vmem:[#allocation2 + $0xe8] sm:$0xff]  ;;  %v6607_v57 = vld [vmem:[%s6718_s20 + $0x90] sm:$0xff]  }
  0xf4   : > { %v633_v6 = vadd.f32 %v502_v1, %v270_v54  ;;  %v6105_v8 = vpop.f32.mrb[6].mxu0  ;;  %v653_v14 = vadd.f32 %v582_v7, %v290_v58  ;;  %v6125_v19 = vpop.f32.mrb[6].mxu1  ;;  %v3200_v54 = vsel %vm3165_vm6, %v3197_v27, %v3199_v31  ;;  %v7241_v63 = vld [vmem:[%s6718_s20 + $0x28] sm:$0xff]   ;;  %v3201_v7 = vrot.slane %v6606_v48, 2 }
  0xf5   : > { %671 = vst.msk [vmem:[#allocation2 + $0x30] sm:$0xff] %vm189_vm5, %v635_v62  ;;  %v636_v18 = vadd.f32 %v6105_v8, %v273_v59  ;;  %v505_v20 = vpop.f32.mrb[7].mxu0  ;;  %691 = vst.msk [vmem:[#allocation2 + $0xd0] sm:$0xff] %vm189_vm5, %v655_v5  ;;  %v656_v23 = vadd.f32 %v6125_v19, %v293_v60  ;;  %v585_v25 = vpop.f32.mrb[7].mxu1  ;;  %v7238_v62 = vrot.slane %v4198_v0, 3  ;;  %v4208_v5 = vrot.slane %v4206_v41, 3 }
  0xf6   : > { %669 = vst.msk [vmem:[#allocation2 + $0x20] sm:$0xff] %vm189_vm5, %v633_v6  ;;  %v634_v24 = vadd.f32 %v505_v20, %v271_v2  ;;  %689 = vst.msk [vmem:[#allocation2 + $0xc0] sm:$0xff] %vm189_vm5, %v653_v14  ;;  %v654_v17 = vadd.f32 %v585_v25, %v291_v9  ;;  %v4212_v8 = vshrl.u32 %v6612_v49, 16  ;;  %v4215_v9 = vshll.u32 %v6612_v49, 16  ;;  %v300_v14 = vld [vmem:[#allocation2 + $0x110] sm:$0xff]  ;;  %v278_v20 = vld [vmem:[#allocation2 + $0x60] sm:$0xff] }
  0xf7   : > { %672 = vst.msk [vmem:[#allocation2 + $0x38] sm:$0xff] %vm189_vm5, %v636_v18  ;;  %6347 = vmatmul.mubr.msk.bf16.gmra.mrb[112].mxu0 %vm393_vm1, %v3706_v10  ;;  %692 = vst.msk [vmem:[#allocation2 + $0xd8] sm:$0xff] %vm189_vm5, %v656_v23  ;;  %6313 = vmatmul.mubr.msk.bf16.gmra.mrb[112].mxu1 %vm393_vm1, %v3194_v21  ;;  %v280_v10 = vld [vmem:[#allocation2 + $0x70] sm:$0xff]  ;;  %v3713_v18 = vrot.slane %v6607_v57, 2  ;;  %v3715_v19 = vrot.slane %v7233_v15, 2  ;;  %v298_v21 = vld [vmem:[#allocation2 + $0x100] sm:$0xff]  ;;  %v4201_v28 = vor.u32 %v7238_v62, %v7236_v61 }
  0xf8   : > { %670 = vst.msk [vmem:[#allocation2 + $0x28] sm:$0xff] %vm189_vm5, %v634_v24  ;;  %6350 = vmatprep.mubr.msk.bf16.mxu0 %vm393_vm1, %v3708_v13  ;;  %690 = vst.msk [vmem:[#allocation2 + $0xc8] sm:$0xff] %vm189_vm5, %v654_v17  ;;  %6316 = vmatprep.mubr.msk.bf16.mxu1 %vm393_vm1, %v3196_v26  ;;  %v7256_v13 = vld [vmem:[%s6718_s20 + $0xa0] ss:$0 sps:$4 sm:$0xff]   ;;  %v4221_v22 = vshrl.u32 %v7241_v63, 16  ;;  %v281_v24 = vld [vmem:[#allocation2 + $0x78] sm:$0xff]  ;;  %v7261_v17 = vor.u32 %v4208_v5, %v4205_v16 }
  0xf9   : > { %v301_v25 = vld [vmem:[#allocation2 + $0x118] sm:$0xff]  ;;  %v279_v26 = vld [vmem:[#allocation2 + $0x68] sm:$0xff]  ;;  %v4224_v27 = vshll.u32 %v7241_v63, 16  ;;  %v4214_v35 = vrot.slane %v4212_v8, 2  ;;  %v4217_v0 = vrot.slane %v4215_v9, 3  ;;  %v3716_v11 = vsel %vm3165_vm6, %v3713_v18, %v3715_v19  ;;  %v740_v16 = vld [vmem:[#allocation2 + $0x10] sm:$0xff] }
  0xfa   : > { %v6108_v36 = vpop.f32.mrb[8].mxu0  ;;  %v6128_v43 = vpop.f32.mrb[8].mxu1  ;;  %v3717_v48 = vrot.slane %v7256_v13, 2  ;;  %v4223_v49 = vrot.slane %v4221_v22, 2  ;;  %v6620_v15 = vld [vmem:[%s6718_s20 + $0x40] sm:$0xff]  }
  0xfb   : > { %v639_v42 = vadd.f32 %v6108_v36, %v276_v30  ;;  %v518_v44 = vpop.f32.mrb[9].mxu0  ;;  %v659_v3 = vadd.f32 %v6128_v43, %v296_v33  ;;  %v598_v51 = vpop.f32.mrb[9].mxu1  ;;  %v6614_v36 = vld [vmem:[%s6718_s20 + $0x10] sm:$0xff]   ;;  %v3714_v43 = vsel %vm3165_vm6, %v3711_v32, %v3713_v18 }
  0xfc   : > { %v637_v50 = vadd.f32 %v518_v44, %v274_v34  ;;  %v6109_v52 = vpop.f32.mrb[10].mxu0  ;;  %v657_v56 = vadd.f32 %v598_v51, %v294_v37  ;;  %v6129_v59 = vpop.f32.mrb[10].mxu1  ;;  %v3202_v34 = vsel %vm3165_vm6, %v3199_v31, %v3201_v7  ;;  %v7269_v37 = vld [vmem:[%s6718_s20 + $0x18] sm:$0xff]   ;;  %v6616_v31 = vld [vmem:[%s6718_s20 + $0x30] sm:$0xff]   ;;  %v4210_v51 = vsel %vm4193_vm7, %v4201_v28, %v7261_v17  ;;  %v283_v7 = vld [vmem:[#allocation2 + $0x88] sm:$0xff] }
  0xfd   : > { %675 = vst.msk [vmem:[#allocation2 + $0x50] sm:$0xff] %vm189_vm5, %v639_v42  ;;  %v640_v58 = vadd.f32 %v6109_v52, %v277_v38  ;;  %v521_v60 = vpop.f32.mrb[11].mxu0  ;;  %695 = vst.msk [vmem:[#allocation2 + $0xf0] sm:$0xff] %vm189_vm5, %v659_v3  ;;  %v660_v1 = vadd.f32 %v6129_v59, %v297_v39  ;;  %v601_v4 = vpop.f32.mrb[11].mxu1  ;;  %v299_v42 = vld [vmem:[#allocation2 + $0x108] sm:$0xff]  ;;  %v6618_v3 = vld [vmem:[%s6718_s20 + $0x38] sm:$0xff]   ;;  %v3718_v8 = vsel %vm3165_vm6, %v3715_v19, %v3717_v48 }
  0xfe   : > { %673 = vst.msk [vmem:[#allocation2 + $0x40] sm:$0xff] %vm189_vm5, %v637_v50  ;;  %v638_v2 = vadd.f32 %v521_v60, %v275_v45  ;;  %693 = vst.msk [vmem:[#allocation2 + $0xe0] sm:$0xff] %vm189_vm5, %v657_v56  ;;  %v658_v6 = vadd.f32 %v601_v4, %v295_v53  ;;  %v4226_v52 = vrot.slane %v4224_v27, 3  ;;  %v4840_v57 = vrot.slane %v7269_v37, 3  ;;  %v284_v56 = vld [vmem:[#allocation2 + $0x90] sm:$0xff]  ;;  %v282_v60 = vld [vmem:[#allocation2 + $0x80] sm:$0xff] }
  0xff   : > { %676 = vst.msk [vmem:[#allocation2 + $0x58] sm:$0xff] %vm189_vm5, %v640_v58  ;;  %6351 = vmatmul.mubr.msk.bf16.gmra.mrb[116].mxu0 %vm393_vm1, %v3710_v47  ;;  %696 = vst.msk [vmem:[#allocation2 + $0xf8] sm:$0xff] %vm189_vm5, %v660_v1  ;;  %6317 = vmatmul.mubr.msk.bf16.gmra.mrb[116].mxu1 %vm393_vm1, %v3198_v46  ;;  %v4230_v58 = vshrl.u32 %v6616_v31, 16  ;;  %v4233_v59 = vshll.u32 %v6616_v31, 16  ;;  %v4239_v61 = vshrl.u32 %v6618_v3, 16  ;;  %v4242_v62 = vshll.u32 %v6618_v3, 16 }
 0x100   : > { %674 = vst.msk [vmem:[#allocation2 + $0x48] sm:$0xff] %vm189_vm5, %v638_v2  ;;  %6354 = vmatprep.mubr.msk.bf16.mxu0 %vm393_vm1, %v3712_v55  ;;  %694 = vst.msk [vmem:[#allocation2 + $0xe8] sm:$0xff] %vm189_vm5, %v658_v6  ;;  %6320 = vmatprep.mubr.msk.bf16.mxu1 %vm393_vm1, %v3200_v54  ;;  %v4218_v54 = vor.u32 %v4217_v0, %v4214_v35  ;;  %v4839_v55 = vrot.slane %v6614_v36, 3  ;;  %v285_v1 = vld [vmem:[#allocation2 + $0x98] sm:$0xff]  ;;  %v7295_v2 = vor.u32 %v4226_v52, %v4223_v49  ;;  %v739_v35 = vld [vmem:[#allocation2 + $0x8] sm:$0xff] }
 0x101   : > { %v4241_v27 = vrot.slane %v4239_v61, 2  ;;  %v7332_v3 = vld [vmem:[%s6718_s20 + $0x30] sm:$0xff]  }
 0x102   : > { %v6112_v23 = vpop.f32.mrb[12].mxu0  ;;  %v6132_v30 = vpop.f32.mrb[12].mxu1  ;;  %v4219_v9 = vsel %vm4193_vm7, %v7261_v17, %v4218_v54  ;;  %v4228_v36 = vsel %vm4193_vm7, %v4218_v54, %v7295_v2 }
 0x103   : > { %v643_v29 = vadd.f32 %v6112_v23, %v280_v10  ;;  %v534_v33 = vpop.f32.mrb[13].mxu0  ;;  %v663_v38 = vadd.f32 %v6132_v30, %v300_v14  ;;  %v614_v40 = vpop.f32.mrb[13].mxu1  ;;  %v4841_v10 = vsel %vm4838_vm8, %v4839_v55, %v4840_v57  ;;  %v7306_v14 = vld [vmem:[%s6718_s20 + $0x20] sm:$0xff]   ;;  %v4232_v23 = vrot.slane %v4230_v58, 2  ;;  %v7311_v30 = vld [vmem:[%s6718_s20 + $0x28] sm:$0xff]  }
 0x104   : > { %v641_v39 = vadd.f32 %v534_v33, %v278_v20  ;;  %v6113_v41 = vpop.f32.mrb[14].mxu0  ;;  %v661_v44 = vadd.f32 %v614_v40, %v298_v21  ;;  %v6133_v46 = vpop.f32.mrb[14].mxu1  ;;  %v738_v21 = vld [vmem:[#allocation2] sm:$0xff]  ;;  %v4842_v40 = vrot.slane %v7306_v14, 3  ;;  %v4844_v31 = vrot.slane %v7311_v30, 3 }
 0x105   : > { %679 = vst.msk [vmem:[#allocation2 + $0x70] sm:$0xff] %vm189_vm5, %v643_v29  ;;  %v644_v45 = vadd.f32 %v6113_v41, %v281_v24  ;;  %v537_v47 = vpop.f32.mrb[15].mxu0  ;;  %699 = vst.msk [vmem:[#allocation2 + $0x110] sm:$0xff] %vm189_vm5, %v663_v38  ;;  %v664_v12 = vadd.f32 %v6133_v46, %v301_v25  ;;  %v617_v50 = vpop.f32.mrb[15].mxu1  ;;  %v4235_v24 = vrot.slane %v4233_v59, 3  ;;  %v4244_v29 = vrot.slane %v4242_v62, 3 }
 0x106   : > { %677 = vst.msk [vmem:[#allocation2 + $0x60] sm:$0xff] %vm189_vm5, %v641_v39  ;;  %v642_v32 = vadd.f32 %v537_v47, %v279_v26  ;;  %697 = vst.msk [vmem:[#allocation2 + $0x100] sm:$0xff] %vm189_vm5, %v661_v44  ;;  %v662_v53 = vadd.f32 %v617_v50, %v299_v42  ;;  %v741_v26 = vld [vmem:[#allocation2 + $0x18] sm:$0xff]  ;;  %v6622_v38 = vld [vmem:[%s6718_s20 + $0x48] sm:$0xff]   ;;  %v4248_v41 = vshrl.u32 %v6620_v15, 16  ;;  %v4251_v42 = vshll.u32 %v6620_v15, 16 }
 0x107   : > { %680 = vst.msk [vmem:[#allocation2 + $0x78] sm:$0xff] %vm189_vm5, %v644_v45  ;;  %6355 = vmatmul.mubr.msk.bf16.gmra.mrb[120].mxu0 %vm393_vm1, %v3714_v43  ;;  %700 = vst.msk [vmem:[#allocation2 + $0x118] sm:$0xff] %vm189_vm5, %v664_v12  ;;  %6321 = vmatmul.mubr.msk.bf16.gmra.mrb[120].mxu1 %vm393_vm1, %v3202_v34  ;;  %v4236_v43 = vor.u32 %v4235_v24, %v4232_v23  ;;  %v4257_v45 = vshrl.u32 %v6622_v38, 16  ;;  %v4260_v46 = vshll.u32 %v6622_v38, 16  ;;  %v744_v47 = vld [vmem:[#allocation2 + $0x30] sm:$0xff]  ;;  %v7335_v12 = vld [vmem:[%s6718_s20 + $0x38] sm:$0xff]  }
 0x108   : > { %678 = vst.msk [vmem:[#allocation2 + $0x68] sm:$0xff] %vm189_vm5, %v642_v32  ;;  %6358 = vmatprep.mubr.msk.bf16.mxu0 %vm393_vm1, %v3716_v11  ;;  %698 = vst.msk [vmem:[#allocation2 + $0x108] sm:$0xff] %vm189_vm5, %v662_v53  ;;  %6364 = vmatprep.mubr.msk.bf16.mxu1 %vm393_vm1, %v4210_v51  ;;  %v7328_v11 = vor.u32 %v4244_v29, %v4241_v27  ;;  %v742_v50 = vld [vmem:[#allocation2 + $0x20] sm:$0xff]  ;;  %v4843_v53 = vsel %vm4838_vm8, %v4840_v57, %v4842_v40  ;;  %v4250_v54 = vrot.slane %v4248_v41, 2 }
 0x109   : > { %v4253_v55 = vrot.slane %v4251_v42, 3  ;;  %v4845_v37 = vsel %vm4838_vm8, %v4842_v40, %v4844_v31  ;;  %v4848_v15 = vrot.slane %v7335_v12, 3 }
 0x10a   : > { %v6116_v63 = vpop.f32.mrb[16].mxu0  ;;  %v6138_v5 = vpop.f32.mrb[16].mxu1 }
 0x10b   : > { %v647_v4 = vadd.f32 %v6116_v63, %v284_v56  ;;  %v550_v6 = vpop.f32.mrb[17].mxu0  ;;  %v1254_v18 = vadd.f32 %v6138_v5, %v740_v16  ;;  %v1109_v13 = vpop.f32.mrb[17].mxu1  ;;  %v6624_v56 = vld [vmem:[%s6718_s20 + $0x50] sm:$0xff]   ;;  %v4237_v63 = vsel %vm4193_vm7, %v7295_v2, %v4236_v43 }
 0x10c   : > { %v645_v20 = vadd.f32 %v550_v6, %v282_v60  ;;  %v6117_v22 = vpop.f32.mrb[18].mxu0  ;;  %v1252_v19 = vadd.f32 %v1109_v13, %v738_v21  ;;  %v6139_v28 = vpop.f32.mrb[18].mxu1  ;;  %v745_v60 = vld [vmem:[#allocation2 + $0x38] sm:$0xff]  ;;  %v743_v6 = vld [vmem:[#allocation2 + $0x28] sm:$0xff]  ;;  %v4254_v13 = vor.u32 %v4253_v55, %v4250_v54  ;;  %v4269_v23 = vshll.u32 %v6624_v56, 16 }
 0x10d   : > { %683 = vst.msk [vmem:[#allocation2 + $0x90] sm:$0xff] %vm189_vm5, %v647_v4  ;;  %v648_v25 = vadd.f32 %v6117_v22, %v285_v1  ;;  %v553_v17 = vpop.f32.mrb[19].mxu0  ;;  %1290 = vst.msk [vmem:[#allocation2 + $0x10] sm:$0xff] %vm189_vm5, %v1254_v18  ;;  %v1255_v33 = vadd.f32 %v6139_v28, %v741_v26  ;;  %v1112_v0 = vpop.f32.mrb[19].mxu1  ;;  %v4246_v1 = vsel %vm4193_vm7, %v4236_v43, %v7328_v11  ;;  %v6626_v4 = vld [vmem:[%s6718_s20 + $0x58] sm:$0xff]   ;;  %v4846_v18 = vrot.slane %v7332_v3, 3 }
 0x10e   : > { %681 = vst.msk [vmem:[#allocation2 + $0x80] sm:$0xff] %vm189_vm5, %v645_v20  ;;  %v646_v34 = vadd.f32 %v553_v17, %v283_v7  ;;  %1288 = vst.msk [vmem:[#allocation2] sm:$0xff] %vm189_vm5, %v1252_v19  ;;  %v1253_v39 = vadd.f32 %v1112_v0, %v739_v35  ;;  %v4266_v22 = vshrl.u32 %v6624_v56, 16  ;;  %v4275_v19 = vshrl.u32 %v6626_v4, 16  ;;  %v748_v17 = vld [vmem:[#allocation2 + $0x50] sm:$0xff]  ;;  %v7372_v35 = vld [vmem:[%s6718_s20 + $0x48] sm:$0xff]  }
 0x10f   : > { %684 = vst.msk [vmem:[#allocation2 + $0x98] sm:$0xff] %vm189_vm5, %v648_v25  ;;  %6359 = vmatmul.mubr.msk.bf16.gmra.mrb[124].mxu0 %vm393_vm1, %v3718_v8  ;;  %1291 = vst.msk [vmem:[#allocation2 + $0x18] sm:$0xff] %vm189_vm5, %v1255_v33  ;;  %6365 = vmatmul.mubr.msk.bf16.vlgmr.msra.gmra.mrb[124].mxu1 %vm393_vm1, %v4219_v9  ;;  %v4259_v8 = vrot.slane %v4257_v45, 2  ;;  %v4262_v9 = vrot.slane %v4260_v46, 3  ;;  %v4278_v25 = vshll.u32 %v6626_v4, 16  ;;  %v4847_v33 = vsel %vm4838_vm8, %v4844_v31, %v4846_v18  ;;  %v7377_v43 = vld [vmem:[%s6718_s20 + $0x60] sm:$0xff]  }
 0x110   : > { %682 = vst.msk [vmem:[#allocation2 + $0x88] sm:$0xff] %vm189_vm5, %v646_v34  ;;  %6402 = vmatprep.mubr.msk.bf16.mxu0 %vm393_vm1, %v4841_v10  ;;  %1289 = vst.msk [vmem:[#allocation2 + $0x8] sm:$0xff] %vm189_vm5, %v1253_v39  ;;  %6368 = vmatprep.mubr.msk.bf16.mxu1 %vm393_vm1, %v4228_v36  ;;  %v7369_v34 = vld [vmem:[%s6718_s20 + $0x40] sm:$0xff]   ;;  %v4255_v40 = vsel %vm4193_vm7, %v7328_v11, %v4254_v13  ;;  %v4268_v41 = vrot.slane %v4266_v22, 2  ;;  %v4271_v42 = vrot.slane %v4269_v23, 3  ;;  %v749_v45 = vld [vmem:[#allocation2 + $0x58] sm:$0xff] }
 0x111   : > { %v7362_v28 = vor.u32 %v4262_v9, %v4259_v8  ;;  %v746_v36 = vld [vmem:[#allocation2 + $0x40] sm:$0xff]  ;;  %v4287_v4 = vshll.u32 %v7377_v43, 16  ;;  %v7404_v9 = vld [vmem:[%s6718_s20 + $0x50] sm:$0xff]   ;;  %v7413_v22 = vld [vmem:[%s6718_s20 + $0x58] sm:$0xff]  }
 0x112   : > { %v6176_v44 = vpop.f32.mrb[20].mxu0  ;;  %v6142_v48 = vpop.f32.mrb[20].mxu1  ;;  %v6632_v23 = vld [vmem:[%s6718_s20 + $0x70] sm:$0xff]  }
 0x113   : > { %v1621_v49 = vpop.f32.mrb[21].mxu0  ;;  %v1258_v32 = vadd.f32 %v6142_v48, %v744_v47  ;;  %v1125_v51 = vpop.f32.mrb[21].mxu1  ;;  %v4849_v47 = vsel %vm4838_vm8, %v4846_v18, %v4848_v15  ;;  %v4277_v48 = vrot.slane %v4275_v19, 2 }
 0x114   : > { %v6177_v52 = vpop.f32.mrb[22].mxu0  ;;  %v1363_v58 = vld [vmem:[#allocation2 + $0x10] sm:$0xff]  ;;  %v1256_v59 = vadd.f32 %v1125_v51, %v742_v50  ;;  %v6143_v61 = vpop.f32.mrb[22].mxu1  ;;  %v747_v50 = vld [vmem:[#allocation2 + $0x48] sm:$0xff] }
 0x115   : > { %v1624_v62 = vpop.f32.mrb[23].mxu0  ;;  %1294 = vst.msk [vmem:[#allocation2 + $0x30] sm:$0xff] %vm189_vm5, %v1258_v32  ;;  %v1766_v57 = vadd.f32 %v6176_v44, %v1363_v58  ;;  %v1361_v16 = vld [vmem:[#allocation2] sm:$0xff]  ;;  %v1259_v5 = vadd.f32 %v6143_v61, %v745_v60  ;;  %v1128_v7 = vpop.f32.mrb[23].mxu1  ;;  %v4850_v60 = vrot.slane %v7369_v34, 3  ;;  %v4852_v61 = vrot.slane %v7372_v35, 3 }
 0x116   : > { %1292 = vst.msk [vmem:[#allocation2 + $0x20] sm:$0xff] %vm189_vm5, %v1256_v59  ;;  %v1764_v2 = vadd.f32 %v1621_v49, %v1361_v16  ;;  %v1364_v10 = vld [vmem:[#allocation2 + $0x18] sm:$0xff]  ;;  %v1257_v14 = vadd.f32 %v1128_v7, %v743_v6  ;;  %v4280_v49 = vrot.slane %v4278_v25, 3  ;;  %v752_v6 = vld [vmem:[#allocation2 + $0x70] sm:$0xff]  ;;  %v6638_v35 = vld [vmem:[%s6718_s20 + $0x88] sm:$0xff]  }
 0x117   : > { %6403 = vmatmul.mubr.msk.bf16.vlgmr.msra.gmra.mrb[128].mxu0 %vm393_vm1, %v4843_v53  ;;  %1802 = vst.msk [vmem:[#allocation2 + $0x10] sm:$0xff] %vm189_vm5, %v1766_v57  ;;  %1295 = vst.msk [vmem:[#allocation2 + $0x38] sm:$0xff] %vm189_vm5, %v1259_v5  ;;  %v1767_v20 = vadd.f32 %v6177_v52, %v1364_v10  ;;  %v1362_v21 = vld [vmem:[#allocation2 + $0x8] sm:$0xff]  ;;  %6369 = vmatmul.mubr.msk.bf16.gmra.mrb[128].mxu1 %vm393_vm1, %v4237_v63  ;;  %v4264_v52 = vsel %vm4193_vm7, %v4254_v13, %v7362_v28  ;;  %v750_v10 = vld [vmem:[#allocation2 + $0x60] sm:$0xff] }
 0x118   : > { %6406 = vmatprep.mubr.msk.bf16.mxu0 %vm393_vm1, %v4845_v37  ;;  %1800 = vst.msk [vmem:[#allocation2] sm:$0xff] %vm189_vm5, %v1764_v2  ;;  %1293 = vst.msk [vmem:[#allocation2 + $0x28] sm:$0xff] %vm189_vm5, %v1257_v14  ;;  %v1765_v24 = vadd.f32 %v1624_v62, %v1362_v21  ;;  %6372 = vmatprep.mubr.msk.bf16.mxu1 %vm393_vm1, %v4246_v1  ;;  %v6630_v53 = vld [vmem:[%s6718_s20 + $0x68] sm:$0xff]   ;;  %v4284_v62 = vshrl.u32 %v7377_v43, 16  ;;  %v4272_v1 = vor.u32 %v4271_v42, %v4268_v41  ;;  %v753_v25 = vld [vmem:[#allocation2 + $0x78] sm:$0xff] }
 0x119   : > { %1803 = vst.msk [vmem:[#allocation2 + $0x18] sm:$0xff] %vm189_vm5, %v1767_v20  ;;  %v7398_v37 = vor.u32 %v4280_v49, %v4277_v48  ;;  %v4293_v16 = vshrl.u32 %v6630_v53, 16  ;;  %v4296_v5 = vshll.u32 %v6630_v53, 16  ;;  %v4851_v20 = vsel %vm4838_vm8, %v4848_v15, %v4850_v60  ;;  %v7442_v53 = vld [vmem:[%s6718_s20 + $0x60] sm:$0xff]  }
 0x11a   : > { %v6180_v26 = vpop.f32.mrb[24].mxu0  ;;  %1801 = vst.msk [vmem:[#allocation2 + $0x8] sm:$0xff] %vm189_vm5, %v1765_v24  ;;  %v6146_v27 = vpop.f32.mrb[24].mxu1  ;;  %v4853_v21 = vsel %vm4838_vm8, %v4850_v60, %v4852_v61  ;;  %v4286_v13 = vrot.slane %v4284_v62, 2  ;;  %v4289_v15 = vrot.slane %v4287_v4, 3  ;;  %v4856_v48 = vrot.slane %v7413_v22, 3 }
 0x11b   : > { %v1637_v29 = vpop.f32.mrb[25].mxu0  ;;  %v1262_v0 = vadd.f32 %v6146_v27, %v748_v17  ;;  %v1141_v38 = vpop.f32.mrb[25].mxu1  ;;  %v4273_v27 = vsel %vm4193_vm7, %v7362_v28, %v4272_v1  ;;  %v4282_v12 = vsel %vm4193_vm7, %v4272_v1, %v7398_v37  ;;  %v7451_v1 = vld [vmem:[%s6718_s20 + $0x68] sm:$0xff]  }
 0x11c   : > { %v6181_v39 = vpop.f32.mrb[26].mxu0  ;;  %v1367_v44 = vld [vmem:[#allocation2 + $0x30] sm:$0xff]  ;;  %v1260_v30 = vadd.f32 %v1141_v38, %v746_v36  ;;  %v6147_v31 = vpop.f32.mrb[26].mxu1  ;;  %v751_v36 = vld [vmem:[#allocation2 + $0x68] sm:$0xff] }
 0x11d   : > { %v1640_v46 = vpop.f32.mrb[27].mxu0  ;;  %1298 = vst.msk [vmem:[#allocation2 + $0x50] sm:$0xff] %vm189_vm5, %v1262_v0  ;;  %v1770_v3 = vadd.f32 %v6180_v26, %v1367_v44  ;;  %v1365_v11 = vld [vmem:[#allocation2 + $0x20] sm:$0xff]  ;;  %v1263_v32 = vadd.f32 %v6147_v31, %v749_v45  ;;  %v1144_v51 = vpop.f32.mrb[27].mxu1  ;;  %v4302_v45 = vshrl.u32 %v6632_v23, 16  ;;  %v4305_v31 = vshll.u32 %v6632_v23, 16 }
 0x11e   : > { %1296 = vst.msk [vmem:[#allocation2 + $0x40] sm:$0xff] %vm189_vm5, %v1260_v30  ;;  %v1768_v54 = vadd.f32 %v1637_v29, %v1365_v11  ;;  %v1368_v55 = vld [vmem:[#allocation2 + $0x38] sm:$0xff]  ;;  %v1261_v56 = vadd.f32 %v1144_v51, %v747_v50  ;;  %v4854_v30 = vrot.slane %v7404_v9, 3  ;;  %v756_v50 = vld [vmem:[#allocation2 + $0x90] sm:$0xff] }
 0x11f   : > { %6407 = vmatmul.mubr.msk.bf16.gmra.mrb[132].mxu0 %vm393_vm1, %v4847_v33  ;;  %1806 = vst.msk [vmem:[#allocation2 + $0x30] sm:$0xff] %vm189_vm5, %v1770_v3  ;;  %1299 = vst.msk [vmem:[#allocation2 + $0x58] sm:$0xff] %vm189_vm5, %v1263_v32  ;;  %v1771_v58 = vadd.f32 %v6181_v39, %v1368_v55  ;;  %v1366_v59 = vld [vmem:[#allocation2 + $0x28] sm:$0xff]  ;;  %6373 = vmatmul.mubr.msk.bf16.gmra.mrb[132].mxu1 %vm393_vm1, %v4255_v40  ;;  %v7421_v29 = vld [vmem:[%s6718_s20 + $0x78] sm:$0xff]   ;;  %v4295_v39 = vrot.slane %v4293_v16, 2  ;;  %v4298_v40 = vrot.slane %v4296_v5, 3 }
 0x120   : > { %6410 = vmatprep.mubr.msk.bf16.mxu0 %vm393_vm1, %v4849_v47  ;;  %1804 = vst.msk [vmem:[#allocation2 + $0x20] sm:$0xff] %vm189_vm5, %v1768_v54  ;;  %1297 = vst.msk [vmem:[#allocation2 + $0x48] sm:$0xff] %vm189_vm5, %v1261_v56  ;;  %v1769_v63 = vadd.f32 %v1640_v46, %v1366_v59  ;;  %6376 = vmatprep.mubr.msk.bf16.mxu1 %vm393_vm1, %v4264_v52  ;;  %v4290_v47 = vor.u32 %v4289_v15, %v4286_v13  ;;  %v4311_v49 = vshrl.u32 %v7421_v29, 16  ;;  %v7445_v54 = vld [vmem:[%s6718_s20 + $0x80] sm:$0xff]   ;;  %v757_v16 = vld [vmem:[#allocation2 + $0x98] sm:$0xff] }
 0x121   : > { %1807 = vst.msk [vmem:[#allocation2 + $0x38] sm:$0xff] %vm189_vm5, %v1771_v58  ;;  %v7437_v11 = vor.u32 %v4298_v40, %v4295_v39  ;;  %v4314_v32 = vshll.u32 %v7421_v29, 16  ;;  %v754_v56 = vld [vmem:[#allocation2 + $0x80] sm:$0xff]  ;;  %v4855_v60 = vsel %vm4838_vm8, %v4852_v61, %v4854_v30  ;;  %v4304_v62 = vrot.slane %v4302_v45, 2 }
 0x122   : > { %v6184_v57 = vpop.f32.mrb[28].mxu0  ;;  %1805 = vst.msk [vmem:[#allocation2 + $0x28] sm:$0xff] %vm189_vm5, %v1769_v63  ;;  %v6150_v7 = vpop.f32.mrb[28].mxu1  ;;  %v4307_v63 = vrot.slane %v4305_v31, 3  ;;  %v4313_v9 = vrot.slane %v4311_v49, 2  ;;  %v4329_v29 = vshrl.u32 %v6638_v35, 16 }
 0x123   : > { %v1653_v8 = vpop.f32.mrb[29].mxu0  ;;  %v1266_v2 = vadd.f32 %v6150_v7, %v752_v6  ;;  %v1157_v14 = vpop.f32.mrb[29].mxu1  ;;  %v4291_v7 = vsel %vm4193_vm7, %v7398_v37, %v4290_v47 }
 0x124   : > { %v6185_v18 = vpop.f32.mrb[30].mxu0  ;;  %v1371_v24 = vld [vmem:[#allocation2 + $0x50] sm:$0xff]  ;;  %v1264_v19 = vadd.f32 %v1157_v14, %v750_v10  ;;  %v6151_v26 = vpop.f32.mrb[30].mxu1  ;;  %v755_v14 = vld [vmem:[#allocation2 + $0x88] sm:$0xff]  ;;  %v4308_v15 = vor.u32 %v4307_v63, %v4304_v62  ;;  %v4331_v22 = vrot.slane %v4329_v29, 2  ;;  %v765_v29 = vld [vmem:[#allocation2 + $0xd8] sm:$0xff] }
 0x125   : > { %v1656_v17 = vpop.f32.mrb[31].mxu0  ;;  %1302 = vst.msk [vmem:[#allocation2 + $0x70] sm:$0xff] %vm189_vm5, %v1266_v2  ;;  %v1774_v33 = vadd.f32 %v6184_v57, %v1371_v24  ;;  %v1369_v34 = vld [vmem:[#allocation2 + $0x40] sm:$0xff]  ;;  %v1267_v0 = vadd.f32 %v6151_v26, %v753_v25  ;;  %v1160_v38 = vpop.f32.mrb[31].mxu1  ;;  %v4320_v24 = vshrl.u32 %v7445_v54, 16  ;;  %v4858_v26 = vrot.slane %v7442_v53, 3 }
 0x126   : > { %1300 = vst.msk [vmem:[#allocation2 + $0x60] sm:$0xff] %vm189_vm5, %v1264_v19  ;;  %v1772_v41 = vadd.f32 %v1653_v8, %v1369_v34  ;;  %v1372_v42 = vld [vmem:[#allocation2 + $0x58] sm:$0xff]  ;;  %v1265_v28 = vadd.f32 %v1160_v38, %v751_v36  ;;  %v4857_v8 = vsel %vm4838_vm8, %v4854_v30, %v4856_v48  ;;  %v760_v36 = vld [vmem:[#allocation2 + $0xb0] sm:$0xff] }
 0x127   : > { %6411 = vmatmul.mubr.msk.bf16.gmra.mrb[136].mxu0 %vm393_vm1, %v4851_v20  ;;  %1810 = vst.msk [vmem:[#allocation2 + $0x50] sm:$0xff] %vm189_vm5, %v1774_v33  ;;  %1303 = vst.msk [vmem:[#allocation2 + $0x78] sm:$0xff] %vm189_vm5, %v1267_v0  ;;  %v1775_v43 = vadd.f32 %v6185_v18, %v1372_v42  ;;  %v1370_v44 = vld [vmem:[#allocation2 + $0x48] sm:$0xff]  ;;  %6377 = vmatmul.mubr.msk.bf16.gmra.mrb[136].mxu1 %vm393_vm1, %v4273_v27  ;;  %v4300_v20 = vsel %vm4193_vm7, %v4290_v47, %v7437_v11  ;;  %v4323_v27 = vshll.u32 %v7445_v54, 16  ;;  %v6640_v47 = vld [vmem:[%s6718_s20 + $0x90] sm:$0xff]  }
 0x128   : > { %6414 = vmatprep.mubr.msk.bf16.mxu0 %vm393_vm1, %v4853_v21  ;;  %1808 = vst.msk [vmem:[#allocation2 + $0x40] sm:$0xff] %vm189_vm5, %v1772_v41  ;;  %1301 = vst.msk [vmem:[#allocation2 + $0x68] sm:$0xff] %vm189_vm5, %v1265_v28  ;;  %v1773_v46 = vadd.f32 %v1656_v17, %v1370_v44  ;;  %6380 = vmatprep.mubr.msk.bf16.mxu1 %vm393_vm1, %v4282_v12  ;;  %v4316_v21 = vrot.slane %v4314_v32, 3  ;;  %v4860_v17 = vrot.slane %v7451_v1, 3  ;;  %v4332_v33 = vshll.u32 %v6638_v35, 16  ;;  %v7480_v41 = vld [vmem:[%s6718_s20 + $0x70] sm:$0xff]  }
 0x129   : > { %1811 = vst.msk [vmem:[#allocation2 + $0x58] sm:$0xff] %vm189_vm5, %v1775_v43  ;;  %v4322_v40 = vrot.slane %v4320_v24, 2  ;;  %v758_v28 = vld [vmem:[#allocation2 + $0xa0] sm:$0xff]  ;;  %v4859_v30 = vsel %vm4838_vm8, %v4856_v48, %v4858_v26  ;;  %v4325_v31 = vrot.slane %v4323_v27, 3  ;;  %v761_v32 = vld [vmem:[#allocation2 + $0xb8] sm:$0xff]  ;;  %v7518_v27 = vld [vmem:[%s6718_s20 + $0x88] sm:$0xff]  }
 0x12a   : > { %v6188_v3 = vpop.f32.mrb[32].mxu0  ;;  %1809 = vst.msk [vmem:[#allocation2 + $0x48] sm:$0xff] %vm189_vm5, %v1773_v46  ;;  %v6154_v51 = vpop.f32.mrb[32].mxu1  ;;  %v7476_v0 = vor.u32 %v4316_v21, %v4313_v9  ;;  %v4861_v45 = vsel %vm4838_vm8, %v4858_v26, %v4860_v17  ;;  %v7489_v46 = vld [vmem:[%s6718_s20 + $0x78] sm:$0xff]   ;;  %v4334_v53 = vrot.slane %v4332_v33, 3  ;;  %v6641_v21 = vld [vmem:[%s6718_s20 + $0x80] sm:$0xff]  }
 0x12b   : > { %v1669_v52 = vpop.f32.mrb[33].mxu0  ;;  %v1270_v55 = vadd.f32 %v6154_v51, %v756_v50  ;;  %v1173_v58 = vpop.f32.mrb[33].mxu1  ;;  %v4864_v35 = vrot.slane %v7489_v46, 3 }
 0x12c   : > { %v6189_v59 = vpop.f32.mrb[34].mxu0  ;;  %v1375_v4 = vld [vmem:[#allocation2 + $0x70] sm:$0xff]  ;;  %v1268_v57 = vadd.f32 %v1173_v58, %v754_v56  ;;  %v6155_v5 = vpop.f32.mrb[34].mxu1  ;;  %v759_v56 = vld [vmem:[#allocation2 + $0xa8] sm:$0xff]  ;;  %v7508_v9 = vor.u32 %v4334_v53, %v4331_v22 }
 0x12d   : > { %v1672_v6 = vpop.f32.mrb[35].mxu0  ;;  %1306 = vst.msk [vmem:[#allocation2 + $0x90] sm:$0xff] %vm189_vm5, %v1270_v55  ;;  %v1778_v61 = vadd.f32 %v6188_v3, %v1375_v4  ;;  %v1373_v2 = vld [vmem:[#allocation2 + $0x60] sm:$0xff]  ;;  %v1271_v10 = vadd.f32 %v6155_v5, %v757_v16  ;;  %v1176_v18 = vpop.f32.mrb[35].mxu1  ;;  %v4862_v16 = vrot.slane %v7480_v41, 3  ;;  %v4338_v5 = vshrl.u32 %v6640_v47, 16 }
 0x12e   : > { %1304 = vst.msk [vmem:[#allocation2 + $0x80] sm:$0xff] %vm189_vm5, %v1268_v57  ;;  %v1776_v37 = vadd.f32 %v1669_v52, %v1373_v2  ;;  %v1376_v13 = vld [vmem:[#allocation2 + $0x78] sm:$0xff]  ;;  %v1269_v23 = vadd.f32 %v1176_v18, %v755_v14  ;;  %v4309_v52 = vsel %vm4193_vm7, %v7437_v11, %v4308_v15  ;;  %v764_v14 = vld [vmem:[#allocation2 + $0xd0] sm:$0xff] }
 0x12f   : > { %6415 = vmatmul.mubr.msk.bf16.gmra.mrb[140].mxu0 %vm393_vm1, %v4855_v60  ;;  %1814 = vst.msk [vmem:[#allocation2 + $0x70] sm:$0xff] %vm189_vm5, %v1778_v61  ;;  %1307 = vst.msk [vmem:[#allocation2 + $0x98] sm:$0xff] %vm189_vm5, %v1271_v10  ;;  %v1779_v19 = vadd.f32 %v6189_v59, %v1376_v13  ;;  %v1374_v25 = vld [vmem:[#allocation2 + $0x68] sm:$0xff]  ;;  %6381 = vmatmul.mubr.msk.bf16.gmra.mrb[140].mxu1 %vm393_vm1, %v4291_v7  ;;  %v4318_v59 = vsel %vm4193_vm7, %v4308_v15, %v7476_v0  ;;  %v6642_v60 = vld [vmem:[%s6718_s20 + $0x98] sm:$0xff]  }
 0x130   : > { %6418 = vmatprep.mubr.msk.bf16.mxu0 %vm393_vm1, %v4857_v8  ;;  %1812 = vst.msk [vmem:[#allocation2 + $0x60] sm:$0xff] %vm189_vm5, %v1776_v37  ;;  %1305 = vst.msk [vmem:[#allocation2 + $0x88] sm:$0xff] %vm189_vm5, %v1269_v23  ;;  %v1777_v12 = vadd.f32 %v1672_v6, %v1374_v25  ;;  %6384 = vmatprep.mubr.msk.bf16.mxu1 %vm393_vm1, %v4300_v20  ;;  %v4341_v6 = vshll.u32 %v6640_v47, 16  ;;  %v4326_v8 = vor.u32 %v4325_v31, %v4322_v40  ;;  %v762_v13 = vld [vmem:[#allocation2 + $0xc0] sm:$0xff] }
 0x131   : > { %1815 = vst.msk [vmem:[#allocation2 + $0x78] sm:$0xff] %vm189_vm5, %v1779_v19  ;;  %v4347_v2 = vshrl.u32 %v6642_v60, 16  ;;  %v4350_v10 = vshll.u32 %v6642_v60, 16  ;;  %v4863_v19 = vsel %vm4838_vm8, %v4860_v17, %v4862_v16  ;;  %v4340_v25 = vrot.slane %v4338_v5, 2  ;;  %v6644_v17 = vld [vmem:[%s6718_s20 + $0xa0] ss:$0 sps:$4 sm:$0xff]  }
 0x132   : > { %v6192_v34 = vpop.f32.mrb[36].mxu0  ;;  %1813 = vst.msk [vmem:[#allocation2 + $0x68] sm:$0xff] %vm189_vm5, %v1777_v12  ;;  %v6158_v38 = vpop.f32.mrb[36].mxu1  ;;  %v4343_v26 = vrot.slane %v4341_v6, 3  ;;  %v4865_v1 = vsel %vm4838_vm8, %v4862_v16, %v4864_v35  ;;  %v769_v5 = vld [vmem:[#allocation2 + $0xf8] sm:$0xff] }
 0x133   : > { %v1685_v39 = vpop.f32.mrb[37].mxu0  ;;  %v1274_v42 = vadd.f32 %v6158_v38, %v760_v36  ;;  %v1189_v43 = vpop.f32.mrb[37].mxu1  ;;  %v4327_v36 = vsel %vm4193_vm7, %v7476_v0, %v4326_v8  ;;  %v4336_v38 = vsel %vm4193_vm7, %v4326_v8, %v7508_v9 }
 0x134   : > { %v6193_v44 = vpop.f32.mrb[38].mxu0  ;;  %v1379_v49 = vld [vmem:[#allocation2 + $0x90] sm:$0xff]  ;;  %v1272_v3 = vadd.f32 %v1189_v43, %v758_v28  ;;  %v6159_v50 = vpop.f32.mrb[38].mxu1  ;;  %v4349_v43 = vrot.slane %v4347_v2, 2 }
 0x135   : > { %v1688_v51 = vpop.f32.mrb[39].mxu0  ;;  %1310 = vst.msk [vmem:[#allocation2 + $0xb0] sm:$0xff] %vm189_vm5, %v1274_v42  ;;  %v1782_v48 = vadd.f32 %v6192_v34, %v1379_v49  ;;  %v1377_v54 = vld [vmem:[#allocation2 + $0x80] sm:$0xff]  ;;  %v1275_v55 = vadd.f32 %v6159_v50, %v761_v32  ;;  %v1192_v58 = vpop.f32.mrb[39].mxu1  ;;  %v763_v42 = vld [vmem:[#allocation2 + $0xc8] sm:$0xff]  ;;  %v4866_v49 = vrot.slane %v6641_v21, 3  ;;  %v4344_v50 = vor.u32 %v4343_v26, %v4340_v25 }
 0x136   : > { %1308 = vst.msk [vmem:[#allocation2 + $0xa0] sm:$0xff] %vm189_vm5, %v1272_v3  ;;  %v1780_v62 = vadd.f32 %v1685_v39, %v1377_v54  ;;  %v1380_v63 = vld [vmem:[#allocation2 + $0x98] sm:$0xff]  ;;  %v1273_v4 = vadd.f32 %v1192_v58, %v759_v56  ;;  %v4868_v3 = vrot.slane %v7518_v27, 3  ;;  %v766_v58 = vld [vmem:[#allocation2 + $0xe0] sm:$0xff] }
 0x137   : > { %6419 = vmatmul.mubr.msk.bf16.gmra.mrb[144].mxu0 %vm393_vm1, %v4859_v30  ;;  %1818 = vst.msk [vmem:[#allocation2 + $0x90] sm:$0xff] %vm189_vm5, %v1782_v48  ;;  %1311 = vst.msk [vmem:[#allocation2 + $0xb8] sm:$0xff] %vm189_vm5, %v1275_v55  ;;  %v1783_v11 = vadd.f32 %v6193_v44, %v1380_v63  ;;  %v1378_v57 = vld [vmem:[#allocation2 + $0x88] sm:$0xff]  ;;  %6385 = vmatmul.mubr.msk.bf16.gmra.mrb[144].mxu1 %vm393_vm1, %v4309_v52  ;;  %v4352_v44 = vrot.slane %v4350_v10, 3  ;;  %v4359_v52 = vshll.u32 %v6644_v17, 16  ;;  %v768_v48 = vld [vmem:[#allocation2 + $0xf0] sm:$0xff] }
 0x138   : > { %6422 = vmatprep.mubr.msk.bf16.mxu0 %vm393_vm1, %v4861_v45  ;;  %1816 = vst.msk [vmem:[#allocation2 + $0x80] sm:$0xff] %vm189_vm5, %v1780_v62  ;;  %1309 = vst.msk [vmem:[#allocation2 + $0xa8] sm:$0xff] %vm189_vm5, %v1273_v4  ;;  %v1781_v7 = vadd.f32 %v1688_v51, %v1378_v57  ;;  %6388 = vmatprep.mubr.msk.bf16.mxu1 %vm393_vm1, %v4318_v59  ;;  %v4356_v51 = vshrl.u32 %v6644_v17, 16  ;;  %v4867_v62 = vsel %vm4838_vm8, %v4864_v35, %v4866_v49  ;;  %v6645_v4 = vld [vmem:[%s6718_s20 + $0x90] sm:$0xff]  }
 0x139   : > { %1819 = vst.msk [vmem:[#allocation2 + $0x98] sm:$0xff] %vm189_vm5, %v1783_v11  ;;  %v7540_v53 = vor.u32 %v4352_v44, %v4349_v43  ;;  %v4869_v63 = vsel %vm4838_vm8, %v4866_v49, %v4868_v3  ;;  %v7551_v11 = vld [vmem:[%s6718_s20 + $0x98] sm:$0xff]   ;;  %v4345_v8 = vsel %vm4193_vm7, %v7508_v9, %v4344_v50  ;;  %v4361_v2 = vrot.slane %v4359_v52, 3 }
 0x13a   : > { %v6196_v61 = vpop.f32.mrb[40].mxu0  ;;  %1817 = vst.msk [vmem:[#allocation2 + $0x88] sm:$0xff] %vm189_vm5, %v1781_v7  ;;  %v6162_v18 = vpop.f32.mrb[40].mxu1  ;;  %v4872_v26 = vrot.slane %v7551_v11, 3  ;;  %v1881_v11 = vld [vmem:[#allocation2 + $0x18] sm:$0xff] }
 0x13b   : > { %v1701_v20 = vpop.f32.mrb[41].mxu0  ;;  %v1278_v37 = vadd.f32 %v6162_v18, %v764_v14  ;;  %v1205_v23 = vpop.f32.mrb[41].mxu1  ;;  %v767_v14 = vld [vmem:[#allocation2 + $0xe8] sm:$0xff] }
 0x13c   : > { %v6197_v24 = vpop.f32.mrb[42].mxu0  ;;  %v1383_v12 = vld [vmem:[#allocation2 + $0xb0] sm:$0xff]  ;;  %v1276_v15 = vadd.f32 %v1205_v23, %v762_v13  ;;  %v6163_v33 = vpop.f32.mrb[42].mxu1 }
 0x13d   : > { %v1704_v34 = vpop.f32.mrb[43].mxu0  ;;  %1314 = vst.msk [vmem:[#allocation2 + $0xd0] sm:$0xff] %vm189_vm5, %v1278_v37  ;;  %v1786_v39 = vadd.f32 %v6196_v61, %v1383_v12  ;;  %v1381_v40 = vld [vmem:[#allocation2 + $0xa0] sm:$0xff]  ;;  %v1279_v41 = vadd.f32 %v6163_v33, %v765_v29  ;;  %v1208_v28 = vpop.f32.mrb[43].mxu1  ;;  %v4358_v61 = vrot.slane %v4356_v51, 2 }
 0x13e   : > { %1312 = vst.msk [vmem:[#allocation2 + $0xc0] sm:$0xff] %vm189_vm5, %v1276_v15  ;;  %v1784_v0 = vadd.f32 %v1701_v20, %v1381_v40  ;;  %v1384_v30 = vld [vmem:[#allocation2 + $0xb8] sm:$0xff]  ;;  %v1277_v45 = vadd.f32 %v1208_v28, %v763_v42  ;;  %v4354_v20 = vsel %vm4193_vm7, %v4344_v50, %v7540_v53  ;;  %v772_v15 = vld [vmem:[#allocation2 + $0x110] sm:$0xff] }
 0x13f   : > { %6423 = vmatmul.mubr.msk.bf16.gmra.mrb[148].mxu0 %vm393_vm1, %v4863_v19  ;;  %1822 = vst.msk [vmem:[#allocation2 + $0xb0] sm:$0xff] %vm189_vm5, %v1786_v39  ;;  %1315 = vst.msk [vmem:[#allocation2 + $0xd8] sm:$0xff] %vm189_vm5, %v1279_v41  ;;  %v1787_v31 = vadd.f32 %v6197_v24, %v1384_v30  ;;  %v1382_v47 = vld [vmem:[#allocation2 + $0xa8] sm:$0xff]  ;;  %6389 = vmatmul.mubr.msk.bf16.gmra.mrb[148].mxu1 %vm393_vm1, %v4327_v36  ;;  %v4870_v24 = vrot.slane %v6645_v4, 3  ;;  %v4362_v25 = vor.u32 %v4361_v2, %v4358_v61  ;;  %v770_v36 = vld [vmem:[#allocation2 + $0x100] sm:$0xff] }
 0x140   : > { %6426 = vmatprep.mubr.msk.bf16.mxu0 %vm393_vm1, %v4865_v1  ;;  %1820 = vst.msk [vmem:[#allocation2 + $0xa0] sm:$0xff] %vm189_vm5, %v1784_v0  ;;  %1313 = vst.msk [vmem:[#allocation2 + $0xc8] sm:$0xff] %vm189_vm5, %v1277_v45  ;;  %v1785_v32 = vadd.f32 %v1704_v34, %v1382_v47  ;;  %6392 = vmatprep.mubr.msk.bf16.mxu1 %vm393_vm1, %v4336_v38  ;;  %v6647_v39 = vld [vmem:[%s6718_s20 + $0xa0] ss:$0 sps:$4 sm:$0xff]   ;;  %v773_v42 = vld [vmem:[#allocation2 + $0x118] sm:$0xff] }
 0x141   : > { %1823 = vst.msk [vmem:[#allocation2 + $0xb8] sm:$0xff] %vm189_vm5, %v1787_v31  ;;  %v4871_v17 = vsel %vm4838_vm8, %v4868_v3, %v4870_v24  ;;  %v4363_v44 = vsel %vm4193_vm7, %v7540_v53, %v4362_v25  ;;  %v4873_v0 = vsel %vm4838_vm8, %v4870_v24, %v4872_v26  ;;  %v771_v47 = vld [vmem:[#allocation2 + $0x108] sm:$0xff]  ;;  %v4874_v52 = vrot.slane %v6647_v39, 3 }
 0x142   : > { %v6200_v22 = vpop.f32.mrb[44].mxu0  ;;  %1821 = vst.msk [vmem:[#allocation2 + $0xa8] sm:$0xff] %vm189_vm5, %v1785_v32  ;;  %v6166_v54 = vpop.f32.mrb[44].mxu1 }
 0x143   : > { %v1717_v55 = vpop.f32.mrb[45].mxu0  ;;  %v1282_v56 = vadd.f32 %v6166_v54, %v768_v48  ;;  %v1221_v59 = vpop.f32.mrb[45].mxu1  ;;  %v1880_v48 = vld [vmem:[#allocation2 + $0x10] sm:$0xff] }
 0x144   : > { %v6201_v60 = vpop.f32.mrb[46].mxu0  ;;  %v1387_v57 = vld [vmem:[#allocation2 + $0xd0] sm:$0xff]  ;;  %v1280_v16 = vadd.f32 %v1221_v59, %v766_v58  ;;  %v6167_v6 = vpop.f32.mrb[46].mxu1  ;;  %v1878_v58 = vld [vmem:[#allocation2] sm:$0xff] }
 0x145   : > { %v1720_v7 = vpop.f32.mrb[47].mxu0  ;;  %1318 = vst.msk [vmem:[#allocation2 + $0xf0] sm:$0xff] %vm189_vm5, %v1282_v56  ;;  %v1790_v46 = vadd.f32 %v6200_v22, %v1387_v57  ;;  %v1385_v35 = vld [vmem:[#allocation2 + $0xc0] sm:$0xff]  ;;  %v1283_v10 = vadd.f32 %v6167_v6, %v769_v5  ;;  %v1224_v18 = vpop.f32.mrb[47].mxu1 }
 0x146   : > { %1316 = vst.msk [vmem:[#allocation2 + $0xe0] sm:$0xff] %vm189_vm5, %v1280_v16  ;;  %v1788_v21 = vadd.f32 %v1717_v55, %v1385_v35  ;;  %v1388_v37 = vld [vmem:[#allocation2 + $0xd8] sm:$0xff]  ;;  %v1281_v13 = vadd.f32 %v1224_v18, %v767_v14 }
 0x147   : > { %6427 = vmatmul.mubr.msk.bf16.gmra.mrb[152].mxu0 %vm393_vm1, %v4867_v62  ;;  %1826 = vst.msk [vmem:[#allocation2 + $0xd0] sm:$0xff] %vm189_vm5, %v1790_v46  ;;  %1319 = vst.msk [vmem:[#allocation2 + $0xf8] sm:$0xff] %vm189_vm5, %v1283_v10  ;;  %v1791_v9 = vadd.f32 %v6201_v60, %v1388_v37  ;;  %v1386_v23 = vld [vmem:[#allocation2 + $0xc8] sm:$0xff]  ;;  %6393 = vmatmul.mubr.msk.bf16.gmra.mrb[152].mxu1 %vm393_vm1, %v4345_v8  ;;  %v4875_v62 = vsel %vm4838_vm8, %v4872_v26, %v4874_v52 }
 0x148   : > { %6430 = vmatprep.mubr.msk.bf16.mxu0 %vm393_vm1, %v4869_v63  ;;  %1824 = vst.msk [vmem:[#allocation2 + $0xc0] sm:$0xff] %vm189_vm5, %v1788_v21  ;;  %1317 = vst.msk [vmem:[#allocation2 + $0xe8] sm:$0xff] %vm189_vm5, %v1281_v13  ;;  %v1789_v19 = vadd.f32 %v1720_v7, %v1386_v23  ;;  %6396 = vmatprep.mubr.msk.bf16.mxu1 %vm393_vm1, %v4354_v20  ;;  %v1879_v8 = vld [vmem:[#allocation2 + $0x8] sm:$0xff]  ;;  %v1884_v21 = vld [vmem:[#allocation2 + $0x30] sm:$0xff] }
 0x149   : > { %1827 = vst.msk [vmem:[#allocation2 + $0xd8] sm:$0xff] %vm189_vm5, %v1791_v9  ;;  %v1882_v23 = vld [vmem:[#allocation2 + $0x20] sm:$0xff] }
 0x14a   : > { %v6204_v12 = vpop.f32.mrb[48].mxu0  ;;  %1825 = vst.msk [vmem:[#allocation2 + $0xc8] sm:$0xff] %vm189_vm5, %v1789_v19  ;;  %v6170_v29 = vpop.f32.mrb[48].mxu1 }
 0x14b   : > { %v1733_v33 = vpop.f32.mrb[49].mxu0  ;;  %v1286_v34 = vadd.f32 %v6170_v29, %v772_v15  ;;  %v1237_v38 = vpop.f32.mrb[49].mxu1 }
 0x14c   : > { %v6205_v1 = vpop.f32.mrb[50].mxu0  ;;  %v1391_v40 = vld [vmem:[#allocation2 + $0xf0] sm:$0xff]  ;;  %v1284_v41 = vadd.f32 %v1237_v38, %v770_v36  ;;  %v6171_v28 = vpop.f32.mrb[50].mxu1  ;;  %v1883_v38 = vld [vmem:[#allocation2 + $0x28] sm:$0xff] }
 0x14d   : > { %v1736_v43 = vpop.f32.mrb[51].mxu0  ;;  %1322 = vst.msk [vmem:[#allocation2 + $0x110] sm:$0xff] %vm189_vm5, %v1286_v34  ;;  %v1794_v30 = vadd.f32 %v6204_v12, %v1391_v40  ;;  %v1389_v45 = vld [vmem:[#allocation2 + $0xe0] sm:$0xff]  ;;  %v1287_v31 = vadd.f32 %v6171_v28, %v773_v42  ;;  %v1240_v27 = vpop.f32.mrb[51].mxu1  ;;  %v1885_v12 = vld [vmem:[#allocation2 + $0x38] sm:$0xff] }
 0x14e   : > { %1320 = vst.msk [vmem:[#allocation2 + $0x100] sm:$0xff] %vm189_vm5, %v1284_v41  ;;  %v1792_v49 = vadd.f32 %v1733_v33, %v1389_v45  ;;  %v1392_v3 = vld [vmem:[#allocation2 + $0xf8] sm:$0xff]  ;;  %v1285_v32 = vadd.f32 %v1240_v27, %v771_v47 }
 0x14f   : > { %6431 = vmatmul.mubr.msk.bf16.gmra.mrb[156].mxu0 %vm393_vm1, %v4871_v17  ;;  %1830 = vst.msk [vmem:[#allocation2 + $0xf0] sm:$0xff] %vm189_vm5, %v1794_v30  ;;  %1323 = vst.msk [vmem:[#allocation2 + $0x118] sm:$0xff] %vm189_vm5, %v1287_v31  ;;  %v1795_v50 = vadd.f32 %v6205_v1, %v1392_v3  ;;  %v1390_v51 = vld [vmem:[#allocation2 + $0xe8] sm:$0xff]  ;;  %6397 = vmatmul.mubr.msk.bf16.gmra.mrb[156].mxu1 %vm393_vm1, %v4363_v44  ;;  %v1888_v44 = vld [vmem:[#allocation2 + $0x50] sm:$0xff] }
 0x150   : > { %6434 = vmatprep.mubr.msk.bf16.mxu0 %vm393_vm1, %v4873_v0  ;;  %1828 = vst.msk [vmem:[#allocation2 + $0xe0] sm:$0xff] %vm189_vm5, %v1792_v49  ;;  %1321 = vst.msk [vmem:[#allocation2 + $0x108] sm:$0xff] %vm189_vm5, %v1285_v32  ;;  %v1793_v22 = vadd.f32 %v1736_v43, %v1390_v51  ;;  %v1886_v31 = vld [vmem:[#allocation2 + $0x40] sm:$0xff]  ;;  %v1889_v32 = vld [vmem:[#allocation2 + $0x58] sm:$0xff] }
 0x151   : > { %1831 = vst.msk [vmem:[#allocation2 + $0xf8] sm:$0xff] %vm189_vm5, %v1795_v50 }
 0x152   : > { %v6208_v53 = vpop.f32.mrb[52].mxu0  ;;  %1829 = vst.msk [vmem:[#allocation2 + $0xe8] sm:$0xff] %vm189_vm5, %v1793_v22  ;;  %v6214_v54 = vpop.f32.mrb[52].mxu1 }
 0x153   : > { %v1749_v55 = vpop.f32.mrb[53].mxu0  ;;  %v2282_v56 = vadd.f32 %v6214_v54, %v1880_v48  ;;  %v2137_v59 = vpop.f32.mrb[53].mxu1  ;;  %v1887_v48 = vld [vmem:[#allocation2 + $0x48] sm:$0xff] }
 0x154   : > { %v6209_v60 = vpop.f32.mrb[54].mxu0  ;;  %v1395_v63 = vld [vmem:[#allocation2 + $0x110] sm:$0xff]  ;;  %v2280_v4 = vadd.f32 %v2137_v59, %v1878_v58  ;;  %v6215_v57 = vpop.f32.mrb[54].mxu1 }
 0x155   : > { %v1752_v16 = vpop.f32.mrb[55].mxu0  ;;  %v1798_v5 = vadd.f32 %v6208_v53, %v1395_v63  ;;  %2318 = vst.msk [vmem:[#allocation2 + $0x10] sm:$0xff] %vm189_vm5, %v2282_v56  ;;  %v1393_v6 = vld [vmem:[#allocation2 + $0x100] sm:$0xff]  ;;  %v2283_v7 = vadd.f32 %v6215_v57, %v1881_v11  ;;  %v2140_v61 = vpop.f32.mrb[55].mxu1 }
 0x156   : > { %v1796_v2 = vadd.f32 %v1749_v55, %v1393_v6  ;;  %2316 = vst.msk [vmem:[#allocation2] sm:$0xff] %vm189_vm5, %v2280_v4  ;;  %v1396_v46 = vld [vmem:[#allocation2 + $0x118] sm:$0xff]  ;;  %v2281_v35 = vadd.f32 %v2140_v61, %v1879_v8  ;;  %v1892_v4 = vld [vmem:[#allocation2 + $0x70] sm:$0xff] }
 0x157   : > { %6435 = vmatmul.mubr.msk.bf16.gmra.mrb[160].mxu0 %vm393_vm1, %v4875_v62  ;;  %1834 = vst.msk [vmem:[#allocation2 + $0x110] sm:$0xff] %vm189_vm5, %v1798_v5  ;;  %v1799_v10 = vadd.f32 %v6209_v60, %v1396_v46  ;;  %2319 = vst.msk [vmem:[#allocation2 + $0x18] sm:$0xff] %vm189_vm5, %v2283_v7  ;;  %v1394_v14 = vld [vmem:[#allocation2 + $0x108] sm:$0xff]  ;;  %v1890_v5 = vld [vmem:[#allocation2 + $0x60] sm:$0xff] }
 0x158   : > { %1832 = vst.msk [vmem:[#allocation2 + $0x100] sm:$0xff] %vm189_vm5, %v1796_v2  ;;  %v1797_v18 = vadd.f32 %v1752_v16, %v1394_v14  ;;  %2317 = vst.msk [vmem:[#allocation2 + $0x8] sm:$0xff] %vm189_vm5, %v2281_v35  ;;  %v1893_v2 = vld [vmem:[#allocation2 + $0x78] sm:$0xff] }
 0x159   : > { %1835 = vst.msk [vmem:[#allocation2 + $0x118] sm:$0xff] %vm189_vm5, %v1799_v10 }
 0x15a   : > { %v6252_v20 = vpop.f32.mrb[56].mxu0  ;;  %1833 = vst.msk [vmem:[#allocation2 + $0x108] sm:$0xff] %vm189_vm5, %v1797_v18  ;;  %v6218_v37 = vpop.f32.mrb[56].mxu1 }
 0x15b   : > { %v2782_v13 = vpop.f32.mrb[57].mxu0  ;;  %v2286_v9 = vadd.f32 %v6218_v37, %v1884_v21  ;;  %v2153_v24 = vpop.f32.mrb[57].mxu1 }
 0x15c   : > { %v6253_v19 = vpop.f32.mrb[58].mxu0  ;;  %v2391_v25 = vld [vmem:[#allocation2 + $0x10] sm:$0xff]  ;;  %v2284_v26 = vadd.f32 %v2153_v24, %v1882_v23  ;;  %v6219_v15 = vpop.f32.mrb[58].mxu1 }
 0x15d   : > { %v2785_v29 = vpop.f32.mrb[59].mxu0  ;;  %2322 = vst.msk [vmem:[#allocation2 + $0x30] sm:$0xff] %vm189_vm5, %v2286_v9  ;;  %v2927_v33 = vadd.f32 %v6252_v20, %v2391_v25  ;;  %v2389_v34 = vld [vmem:[#allocation2] sm:$0xff]  ;;  %v2287_v36 = vadd.f32 %v6219_v15, %v1885_v12  ;;  %v2156_v1 = vpop.f32.mrb[59].mxu1  ;;  %v1891_v20 = vld [vmem:[#allocation2 + $0x68] sm:$0xff] }
 0x15e   : > { %2320 = vst.msk [vmem:[#allocation2 + $0x20] sm:$0xff] %vm189_vm5, %v2284_v26  ;;  %v2925_v17 = vadd.f32 %v2782_v13, %v2389_v34  ;;  %v2392_v39 = vld [vmem:[#allocation2 + $0x18] sm:$0xff]  ;;  %v2285_v40 = vadd.f32 %v2156_v1, %v1883_v38  ;;  %v1896_v26 = vld [vmem:[#allocation2 + $0x90] sm:$0xff] }
 0x15f   : > { %2963 = vst.msk [vmem:[#allocation2 + $0x10] sm:$0xff] %vm189_vm5, %v2927_v33  ;;  %2323 = vst.msk [vmem:[#allocation2 + $0x38] sm:$0xff] %vm189_vm5, %v2287_v36  ;;  %v2928_v41 = vadd.f32 %v6253_v19, %v2392_v39  ;;  %v2390_v42 = vld [vmem:[#allocation2 + $0x8] sm:$0xff]  ;;  %v1894_v33 = vld [vmem:[#allocation2 + $0x80] sm:$0xff] }
 0x160   : > { %2961 = vst.msk [vmem:[#allocation2] sm:$0xff] %vm189_vm5, %v2925_v17  ;;  %2321 = vst.msk [vmem:[#allocation2 + $0x28] sm:$0xff] %vm189_vm5, %v2285_v40  ;;  %v2926_v28 = vadd.f32 %v2785_v29, %v2390_v42  ;;  %v1897_v17 = vld [vmem:[#allocation2 + $0x98] sm:$0xff] }
 0x161   : > { %2964 = vst.msk [vmem:[#allocation2 + $0x18] sm:$0xff] %vm189_vm5, %v2928_v41 }
 0x162   : > { %v6256_v43 = vpop.f32.mrb[60].mxu0  ;;  %2962 = vst.msk [vmem:[#allocation2 + $0x8] sm:$0xff] %vm189_vm5, %v2926_v28  ;;  %v6222_v0 = vpop.f32.mrb[60].mxu1 }
 0x163   : > { %v2798_v30 = vpop.f32.mrb[61].mxu0  ;;  %v2290_v45 = vadd.f32 %v6222_v0, %v1888_v44  ;;  %v2169_v47 = vpop.f32.mrb[61].mxu1 }
 0x164   : > { %v6257_v27 = vpop.f32.mrb[62].mxu0  ;;  %v2395_v49 = vld [vmem:[#allocation2 + $0x30] sm:$0xff]  ;;  %v2288_v3 = vadd.f32 %v2169_v47, %v1886_v31  ;;  %v6223_v50 = vpop.f32.mrb[62].mxu1 }
 0x165   : > { %v2801_v51 = vpop.f32.mrb[63].mxu0  ;;  %2326 = vst.msk [vmem:[#allocation2 + $0x50] sm:$0xff] %vm189_vm5, %v2290_v45  ;;  %v2931_v52 = vadd.f32 %v6256_v43, %v2395_v49  ;;  %v2393_v22 = vld [vmem:[#allocation2 + $0x20] sm:$0xff]  ;;  %v2291_v53 = vadd.f32 %v6223_v50, %v1889_v32  ;;  %v2172_v54 = vpop.f32.mrb[63].mxu1  ;;  %v1895_v43 = vld [vmem:[#allocation2 + $0x88] sm:$0xff] }
 0x166   : > { %2324 = vst.msk [vmem:[#allocation2 + $0x40] sm:$0xff] %vm189_vm5, %v2288_v3  ;;  %v2929_v55 = vadd.f32 %v2798_v30, %v2393_v22  ;;  %v2396_v56 = vld [vmem:[#allocation2 + $0x38] sm:$0xff]  ;;  %v2289_v58 = vadd.f32 %v2172_v54, %v1887_v48  ;;  %v1900_v3 = vld [vmem:[#allocation2 + $0xb0] sm:$0xff] }
 0x167   : > { %2967 = vst.msk [vmem:[#allocation2 + $0x30] sm:$0xff] %vm189_vm5, %v2931_v52  ;;  %2327 = vst.msk [vmem:[#allocation2 + $0x58] sm:$0xff] %vm189_vm5, %v2291_v53  ;;  %v2932_v59 = vadd.f32 %v6257_v27, %v2396_v56  ;;  %v2394_v60 = vld [vmem:[#allocation2 + $0x28] sm:$0xff]  ;;  %v1898_v52 = vld [vmem:[#allocation2 + $0xa0] sm:$0xff] }
 0x168   : > { %2965 = vst.msk [vmem:[#allocation2 + $0x20] sm:$0xff] %vm189_vm5, %v2929_v55  ;;  %2325 = vst.msk [vmem:[#allocation2 + $0x48] sm:$0xff] %vm189_vm5, %v2289_v58  ;;  %v2930_v62 = vadd.f32 %v2801_v51, %v2394_v60  ;;  %v1901_v55 = vld [vmem:[#allocation2 + $0xb8] sm:$0xff] }
 0x169   : > { %2968 = vst.msk [vmem:[#allocation2 + $0x38] sm:$0xff] %vm189_vm5, %v2932_v59 }
 0x16a   : > { %v6260_v63 = vpop.f32.mrb[64].mxu0  ;;  %2966 = vst.msk [vmem:[#allocation2 + $0x28] sm:$0xff] %vm189_vm5, %v2930_v62  ;;  %v6226_v11 = vpop.f32.mrb[64].mxu1 }
 0x16b   : > { %v2814_v57 = vpop.f32.mrb[65].mxu0  ;;  %v2294_v16 = vadd.f32 %v6226_v11, %v1892_v4  ;;  %v2185_v6 = vpop.f32.mrb[65].mxu1 }
 0x16c   : > { %v6261_v7 = vpop.f32.mrb[66].mxu0  ;;  %v2399_v8 = vld [vmem:[#allocation2 + $0x50] sm:$0xff]  ;;  %v2292_v61 = vadd.f32 %v2185_v6, %v1890_v5  ;;  %v6227_v46 = vpop.f32.mrb[66].mxu1 }
 0x16d   : > { %v2817_v35 = vpop.f32.mrb[67].mxu0  ;;  %2330 = vst.msk [vmem:[#allocation2 + $0x70] sm:$0xff] %vm189_vm5, %v2294_v16  ;;  %v2935_v10 = vadd.f32 %v6260_v63, %v2399_v8  ;;  %v2397_v14 = vld [vmem:[#allocation2 + $0x40] sm:$0xff]  ;;  %v2295_v18 = vadd.f32 %v6227_v46, %v1893_v2  ;;  %v2188_v21 = vpop.f32.mrb[67].mxu1  ;;  %v1899_v63 = vld [vmem:[#allocation2 + $0xa8] sm:$0xff] }
 0x16e   : > { %2328 = vst.msk [vmem:[#allocation2 + $0x60] sm:$0xff] %vm189_vm5, %v2292_v61  ;;  %v2933_v37 = vadd.f32 %v2814_v57, %v2397_v14  ;;  %v2400_v13 = vld [vmem:[#allocation2 + $0x58] sm:$0xff]  ;;  %v2293_v9 = vadd.f32 %v2188_v21, %v1891_v20  ;;  %v1904_v61 = vld [vmem:[#allocation2 + $0xd0] sm:$0xff] }
 0x16f   : > { %2971 = vst.msk [vmem:[#allocation2 + $0x50] sm:$0xff] %vm189_vm5, %v2935_v10  ;;  %2331 = vst.msk [vmem:[#allocation2 + $0x78] sm:$0xff] %vm189_vm5, %v2295_v18  ;;  %v2936_v23 = vadd.f32 %v6261_v7, %v2400_v13  ;;  %v2398_v24 = vld [vmem:[#allocation2 + $0x48] sm:$0xff]  ;;  %v1902_v10 = vld [vmem:[#allocation2 + $0xc0] sm:$0xff] }
 0x170   : > { %2969 = vst.msk [vmem:[#allocation2 + $0x40] sm:$0xff] %vm189_vm5, %v2933_v37  ;;  %2329 = vst.msk [vmem:[#allocation2 + $0x68] sm:$0xff] %vm189_vm5, %v2293_v9  ;;  %v2934_v19 = vadd.f32 %v2817_v35, %v2398_v24  ;;  %v1905_v37 = vld [vmem:[#allocation2 + $0xd8] sm:$0xff] }
 0x171   : > { %2972 = vst.msk [vmem:[#allocation2 + $0x58] sm:$0xff] %vm189_vm5, %v2936_v23 }
 0x172   : > { %v6264_v25 = vpop.f32.mrb[68].mxu0  ;;  %2970 = vst.msk [vmem:[#allocation2 + $0x48] sm:$0xff] %vm189_vm5, %v2934_v19  ;;  %v6230_v12 = vpop.f32.mrb[68].mxu1 }
 0x173   : > { %v2830_v15 = vpop.f32.mrb[69].mxu0  ;;  %v2298_v29 = vadd.f32 %v6230_v12, %v1896_v26  ;;  %v2201_v34 = vpop.f32.mrb[69].mxu1 }
 0x174   : > { %v6265_v36 = vpop.f32.mrb[70].mxu0  ;;  %v2403_v38 = vld [vmem:[#allocation2 + $0x70] sm:$0xff]  ;;  %v2296_v1 = vadd.f32 %v2201_v34, %v1894_v33  ;;  %v6231_v39 = vpop.f32.mrb[70].mxu1 }
 0x175   : > { %v2833_v40 = vpop.f32.mrb[71].mxu0  ;;  %2334 = vst.msk [vmem:[#allocation2 + $0x90] sm:$0xff] %vm189_vm5, %v2298_v29  ;;  %v2939_v41 = vadd.f32 %v6264_v25, %v2403_v38  ;;  %v2401_v42 = vld [vmem:[#allocation2 + $0x60] sm:$0xff]  ;;  %v2299_v28 = vadd.f32 %v6231_v39, %v1897_v17  ;;  %v2204_v44 = vpop.f32.mrb[71].mxu1  ;;  %v1903_v25 = vld [vmem:[#allocation2 + $0xc8] sm:$0xff] }
 0x176   : > { %2332 = vst.msk [vmem:[#allocation2 + $0x80] sm:$0xff] %vm189_vm5, %v2296_v1  ;;  %v2937_v0 = vadd.f32 %v2830_v15, %v2401_v42  ;;  %v2404_v30 = vld [vmem:[#allocation2 + $0x78] sm:$0xff]  ;;  %v2297_v45 = vadd.f32 %v2204_v44, %v1895_v43  ;;  %v1908_v1 = vld [vmem:[#allocation2 + $0xf0] sm:$0xff] }
 0x177   : > { %2975 = vst.msk [vmem:[#allocation2 + $0x70] sm:$0xff] %vm189_vm5, %v2939_v41  ;;  %2335 = vst.msk [vmem:[#allocation2 + $0x98] sm:$0xff] %vm189_vm5, %v2299_v28  ;;  %v2940_v31 = vadd.f32 %v6265_v36, %v2404_v30  ;;  %v2402_v47 = vld [vmem:[#allocation2 + $0x68] sm:$0xff]  ;;  %v1906_v41 = vld [vmem:[#allocation2 + $0xe0] sm:$0xff] }
 0x178   : > { %2973 = vst.msk [vmem:[#allocation2 + $0x60] sm:$0xff] %vm189_vm5, %v2937_v0  ;;  %2333 = vst.msk [vmem:[#allocation2 + $0x88] sm:$0xff] %vm189_vm5, %v2297_v45  ;;  %v2938_v27 = vadd.f32 %v2833_v40, %v2402_v47  ;;  %v1909_v0 = vld [vmem:[#allocation2 + $0xf8] sm:$0xff] }
 0x179   : > { %2976 = vst.msk [vmem:[#allocation2 + $0x78] sm:$0xff] %vm189_vm5, %v2940_v31 }
 0x17a   : > { %v6268_v49 = vpop.f32.mrb[72].mxu0  ;;  %2974 = vst.msk [vmem:[#allocation2 + $0x68] sm:$0xff] %vm189_vm5, %v2938_v27  ;;  %v6234_v32 = vpop.f32.mrb[72].mxu1 }
 0x17b   : > { %v2846_v50 = vpop.f32.mrb[73].mxu0  ;;  %v2302_v51 = vadd.f32 %v6234_v32, %v1900_v3  ;;  %v2217_v22 = vpop.f32.mrb[73].mxu1 }
 0x17c   : > { %v6269_v53 = vpop.f32.mrb[74].mxu0  ;;  %v2407_v48 = vld [vmem:[#allocation2 + $0x90] sm:$0xff]  ;;  %v2300_v54 = vadd.f32 %v2217_v22, %v1898_v52  ;;  %v6235_v56 = vpop.f32.mrb[74].mxu1 }
 0x17d   : > { %v2849_v58 = vpop.f32.mrb[75].mxu0  ;;  %2338 = vst.msk [vmem:[#allocation2 + $0xb0] sm:$0xff] %vm189_vm5, %v2302_v51  ;;  %v2943_v59 = vadd.f32 %v6268_v49, %v2407_v48  ;;  %v2405_v60 = vld [vmem:[#allocation2 + $0x80] sm:$0xff]  ;;  %v2303_v62 = vadd.f32 %v6235_v56, %v1901_v55  ;;  %v2220_v4 = vpop.f32.mrb[75].mxu1  ;;  %v1907_v49 = vld [vmem:[#allocation2 + $0xe8] sm:$0xff] }
 0x17e   : > { %2336 = vst.msk [vmem:[#allocation2 + $0xa0] sm:$0xff] %vm189_vm5, %v2300_v54  ;;  %v2941_v11 = vadd.f32 %v2846_v50, %v2405_v60  ;;  %v2408_v57 = vld [vmem:[#allocation2 + $0x98] sm:$0xff]  ;;  %v2301_v16 = vadd.f32 %v2220_v4, %v1899_v63  ;;  %v1912_v54 = vld [vmem:[#allocation2 + $0x110] sm:$0xff] }
 0x17f   : > { %2979 = vst.msk [vmem:[#allocation2 + $0x90] sm:$0xff] %vm189_vm5, %v2943_v59  ;;  %2339 = vst.msk [vmem:[#allocation2 + $0xb8] sm:$0xff] %vm189_vm5, %v2303_v62  ;;  %v2944_v5 = vadd.f32 %v6269_v53, %v2408_v57  ;;  %v2406_v6 = vld [vmem:[#allocation2 + $0x88] sm:$0xff]  ;;  %v1910_v59 = vld [vmem:[#allocation2 + $0x100] sm:$0xff] }
 0x180   : > { %2977 = vst.msk [vmem:[#allocation2 + $0x80] sm:$0xff] %vm189_vm5, %v2941_v11  ;;  %2337 = vst.msk [vmem:[#allocation2 + $0xa8] sm:$0xff] %vm189_vm5, %v2301_v16  ;;  %v2942_v7 = vadd.f32 %v2849_v58, %v2406_v6  ;;  %v1913_v11 = vld [vmem:[#allocation2 + $0x118] sm:$0xff] }
 0x181   : > { %2980 = vst.msk [vmem:[#allocation2 + $0x98] sm:$0xff] %vm189_vm5, %v2944_v5 }
 0x182   : > { %v6272_v8 = vpop.f32.mrb[76].mxu0  ;;  %2978 = vst.msk [vmem:[#allocation2 + $0x88] sm:$0xff] %vm189_vm5, %v2942_v7  ;;  %v6238_v2 = vpop.f32.mrb[76].mxu1 }
 0x183   : > { %v2862_v46 = vpop.f32.mrb[77].mxu0  ;;  %v2306_v35 = vadd.f32 %v6238_v2, %v1904_v61  ;;  %v2233_v14 = vpop.f32.mrb[77].mxu1 }
 0x184   : > { %v6273_v18 = vpop.f32.mrb[78].mxu0  ;;  %v2411_v20 = vld [vmem:[#allocation2 + $0xb0] sm:$0xff]  ;;  %v2304_v21 = vadd.f32 %v2233_v14, %v1902_v10  ;;  %v6239_v13 = vpop.f32.mrb[78].mxu1 }
 0x185   : > { %v2865_v9 = vpop.f32.mrb[79].mxu0  ;;  %2342 = vst.msk [vmem:[#allocation2 + $0xd0] sm:$0xff] %vm189_vm5, %v2306_v35  ;;  %v2947_v23 = vadd.f32 %v6272_v8, %v2411_v20  ;;  %v2409_v24 = vld [vmem:[#allocation2 + $0xa0] sm:$0xff]  ;;  %v2307_v19 = vadd.f32 %v6239_v13, %v1905_v37  ;;  %v2236_v26 = vpop.f32.mrb[79].mxu1  ;;  %v1911_v8 = vld [vmem:[#allocation2 + $0x108] sm:$0xff] }
 0x186   : > { %2340 = vst.msk [vmem:[#allocation2 + $0xc0] sm:$0xff] %vm189_vm5, %v2304_v21  ;;  %v2945_v12 = vadd.f32 %v2862_v46, %v2409_v24  ;;  %v2412_v15 = vld [vmem:[#allocation2 + $0xb8] sm:$0xff]  ;;  %v2305_v29 = vadd.f32 %v2236_v26, %v1903_v25  ;;  %v3036_v21 = vld [vmem:[#allocation2 + $0x10] sm:$0xff] }
 0x187   : > { %2983 = vst.msk [vmem:[#allocation2 + $0xb0] sm:$0xff] %vm189_vm5, %v2947_v23  ;;  %2343 = vst.msk [vmem:[#allocation2 + $0xd8] sm:$0xff] %vm189_vm5, %v2307_v19  ;;  %v2948_v33 = vadd.f32 %v6273_v18, %v2412_v15  ;;  %v2410_v34 = vld [vmem:[#allocation2 + $0xa8] sm:$0xff]  ;;  %v3034_v23 = vld [vmem:[#allocation2] sm:$0xff] }
 0x188   : > { %2981 = vst.msk [vmem:[#allocation2 + $0xa0] sm:$0xff] %vm189_vm5, %v2945_v12  ;;  %2341 = vst.msk [vmem:[#allocation2 + $0xc8] sm:$0xff] %vm189_vm5, %v2305_v29  ;;  %v2946_v36 = vadd.f32 %v2865_v9, %v2410_v34  ;;  %v3037_v12 = vld [vmem:[#allocation2 + $0x18] sm:$0xff] }
 0x189   : > { %2984 = vst.msk [vmem:[#allocation2 + $0xb8] sm:$0xff] %vm189_vm5, %v2948_v33 }
 0x18a   : > { %v6276_v38 = vpop.f32.mrb[80].mxu0  ;;  %2982 = vst.msk [vmem:[#allocation2 + $0xa8] sm:$0xff] %vm189_vm5, %v2946_v36  ;;  %v6242_v17 = vpop.f32.mrb[80].mxu1 }
 0x18b   : > { %v2878_v39 = vpop.f32.mrb[81].mxu0  ;;  %v2310_v40 = vadd.f32 %v6242_v17, %v1908_v1  ;;  %v2249_v42 = vpop.f32.mrb[81].mxu1 }
 0x18c   : > { %v6277_v28 = vpop.f32.mrb[82].mxu0  ;;  %v2415_v43 = vld [vmem:[#allocation2 + $0xd0] sm:$0xff]  ;;  %v2308_v44 = vadd.f32 %v2249_v42, %v1906_v41  ;;  %v6243_v30 = vpop.f32.mrb[82].mxu1 }
 0x18d   : > { %v2881_v45 = vpop.f32.mrb[83].mxu0  ;;  %2346 = vst.msk [vmem:[#allocation2 + $0xf0] sm:$0xff] %vm189_vm5, %v2310_v40  ;;  %v2951_v31 = vadd.f32 %v6276_v38, %v2415_v43  ;;  %v2413_v47 = vld [vmem:[#allocation2 + $0xc0] sm:$0xff]  ;;  %v2311_v27 = vadd.f32 %v6243_v30, %v1909_v0  ;;  %v2252_v3 = vpop.f32.mrb[83].mxu1  ;;  %v3035_v38 = vld [vmem:[#allocation2 + $0x8] sm:$0xff] }
 0x18e   : > { %2344 = vst.msk [vmem:[#allocation2 + $0xe0] sm:$0xff] %vm189_vm5, %v2308_v44  ;;  %v2949_v32 = vadd.f32 %v2878_v39, %v2413_v47  ;;  %v2416_v50 = vld [vmem:[#allocation2 + $0xd8] sm:$0xff]  ;;  %v2309_v51 = vadd.f32 %v2252_v3, %v1907_v49  ;;  %v3040_v44 = vld [vmem:[#allocation2 + $0x30] sm:$0xff] }
 0x18f   : > { %2987 = vst.msk [vmem:[#allocation2 + $0xd0] sm:$0xff] %vm189_vm5, %v2951_v31  ;;  %2347 = vst.msk [vmem:[#allocation2 + $0xf8] sm:$0xff] %vm189_vm5, %v2311_v27  ;;  %v2952_v52 = vadd.f32 %v6277_v28, %v2416_v50  ;;  %v2414_v22 = vld [vmem:[#allocation2 + $0xc8] sm:$0xff]  ;;  %v3038_v31 = vld [vmem:[#allocation2 + $0x20] sm:$0xff] }
 0x190   : > { %2985 = vst.msk [vmem:[#allocation2 + $0xc0] sm:$0xff] %vm189_vm5, %v2949_v32  ;;  %2345 = vst.msk [vmem:[#allocation2 + $0xe8] sm:$0xff] %vm189_vm5, %v2309_v51  ;;  %v2950_v53 = vadd.f32 %v2881_v45, %v2414_v22  ;;  %v3041_v32 = vld [vmem:[#allocation2 + $0x38] sm:$0xff] }
 0x191   : > { %2988 = vst.msk [vmem:[#allocation2 + $0xd8] sm:$0xff] %vm189_vm5, %v2952_v52 }
 0x192   : > { %v6280_v48 = vpop.f32.mrb[84].mxu0  ;;  %2986 = vst.msk [vmem:[#allocation2 + $0xc8] sm:$0xff] %vm189_vm5, %v2950_v53  ;;  %v6246_v55 = vpop.f32.mrb[84].mxu1 }
 0x193   : > { %v2894_v56 = vpop.f32.mrb[85].mxu0  ;;  %v2314_v58 = vadd.f32 %v6246_v55, %v1912_v54  ;;  %v2265_v60 = vpop.f32.mrb[85].mxu1 }
 0x194   : > { %v6281_v62 = vpop.f32.mrb[86].mxu0  ;;  %v2419_v63 = vld [vmem:[#allocation2 + $0xf0] sm:$0xff]  ;;  %v2312_v4 = vadd.f32 %v2265_v60, %v1910_v59  ;;  %v6247_v57 = vpop.f32.mrb[86].mxu1 }
 0x195   : > { %v2897_v16 = vpop.f32.mrb[87].mxu0  ;;  %2350 = vst.msk [vmem:[#allocation2 + $0x110] sm:$0xff] %vm189_vm5, %v2314_v58  ;;  %v2955_v5 = vadd.f32 %v6280_v48, %v2419_v63  ;;  %v2417_v6 = vld [vmem:[#allocation2 + $0xe0] sm:$0xff]  ;;  %v2315_v7 = vadd.f32 %v6247_v57, %v1913_v11  ;;  %v2268_v61 = vpop.f32.mrb[87].mxu1  ;;  %v3039_v48 = vld [vmem:[#allocation2 + $0x28] sm:$0xff] }
 0x196   : > { %2348 = vst.msk [vmem:[#allocation2 + $0x100] sm:$0xff] %vm189_vm5, %v2312_v4  ;;  %v2953_v2 = vadd.f32 %v2894_v56, %v2417_v6  ;;  %v2420_v46 = vld [vmem:[#allocation2 + $0xf8] sm:$0xff]  ;;  %v2313_v35 = vadd.f32 %v2268_v61, %v1911_v8  ;;  %v3044_v4 = vld [vmem:[#allocation2 + $0x50] sm:$0xff] }
 0x197   : > { %2991 = vst.msk [vmem:[#allocation2 + $0xf0] sm:$0xff] %vm189_vm5, %v2955_v5  ;;  %2351 = vst.msk [vmem:[#allocation2 + $0x118] sm:$0xff] %vm189_vm5, %v2315_v7  ;;  %v2956_v10 = vadd.f32 %v6281_v62, %v2420_v46  ;;  %v2418_v14 = vld [vmem:[#allocation2 + $0xe8] sm:$0xff]  ;;  %v3042_v5 = vld [vmem:[#allocation2 + $0x40] sm:$0xff] }
 0x198   : > { %2989 = vst.msk [vmem:[#allocation2 + $0xe0] sm:$0xff] %vm189_vm5, %v2953_v2  ;;  %2349 = vst.msk [vmem:[#allocation2 + $0x108] sm:$0xff] %vm189_vm5, %v2313_v35  ;;  %v2954_v18 = vadd.f32 %v2897_v16, %v2418_v14  ;;  %v3045_v2 = vld [vmem:[#allocation2 + $0x58] sm:$0xff] }
 0x199   : > { %2992 = vst.msk [vmem:[#allocation2 + $0xf8] sm:$0xff] %vm189_vm5, %v2956_v10 }
 0x19a   : > { %v6284_v20 = vpop.f32.mrb[88].mxu0  ;;  %2990 = vst.msk [vmem:[#allocation2 + $0xe8] sm:$0xff] %vm189_vm5, %v2954_v18  ;;  %v6290_v37 = vpop.f32.mrb[88].mxu1 }
 0x19b   : > { %v2910_v13 = vpop.f32.mrb[89].mxu0  ;;  %v3439_v9 = vadd.f32 %v6290_v37, %v3036_v21  ;;  %v3294_v24 = vpop.f32.mrb[89].mxu1 }
 0x19c   : > { %v6285_v19 = vpop.f32.mrb[90].mxu0  ;;  %v2423_v25 = vld [vmem:[#allocation2 + $0x110] sm:$0xff]  ;;  %v3437_v26 = vadd.f32 %v3294_v24, %v3034_v23  ;;  %v6291_v15 = vpop.f32.mrb[90].mxu1 }
 0x19d   : > { %v2913_v29 = vpop.f32.mrb[91].mxu0  ;;  %v2959_v33 = vadd.f32 %v6284_v20, %v2423_v25  ;;  %3475 = vst.msk [vmem:[#allocation2 + $0x10] sm:$0xff] %vm189_vm5, %v3439_v9  ;;  %v2421_v34 = vld [vmem:[#allocation2 + $0x100] sm:$0xff]  ;;  %v3440_v36 = vadd.f32 %v6291_v15, %v3037_v12  ;;  %v3297_v1 = vpop.f32.mrb[91].mxu1  ;;  %v3043_v20 = vld [vmem:[#allocation2 + $0x48] sm:$0xff] }
 0x19e   : > { %v2957_v17 = vadd.f32 %v2910_v13, %v2421_v34  ;;  %3473 = vst.msk [vmem:[#allocation2] sm:$0xff] %vm189_vm5, %v3437_v26  ;;  %v2424_v39 = vld [vmem:[#allocation2 + $0x118] sm:$0xff]  ;;  %v3438_v40 = vadd.f32 %v3297_v1, %v3035_v38  ;;  %v3048_v26 = vld [vmem:[#allocation2 + $0x70] sm:$0xff] }
 0x19f   : > { %2995 = vst.msk [vmem:[#allocation2 + $0x110] sm:$0xff] %vm189_vm5, %v2959_v33  ;;  %v2960_v41 = vadd.f32 %v6285_v19, %v2424_v39  ;;  %3476 = vst.msk [vmem:[#allocation2 + $0x18] sm:$0xff] %vm189_vm5, %v3440_v36  ;;  %v2422_v42 = vld [vmem:[#allocation2 + $0x108] sm:$0xff]  ;;  %v3046_v33 = vld [vmem:[#allocation2 + $0x60] sm:$0xff] }
 0x1a0   : > { %2993 = vst.msk [vmem:[#allocation2 + $0x100] sm:$0xff] %vm189_vm5, %v2957_v17  ;;  %v2958_v28 = vadd.f32 %v2913_v29, %v2422_v42  ;;  %3474 = vst.msk [vmem:[#allocation2 + $0x8] sm:$0xff] %vm189_vm5, %v3438_v40  ;;  %v3049_v17 = vld [vmem:[#allocation2 + $0x78] sm:$0xff] }
 0x1a1   : > { %2996 = vst.msk [vmem:[#allocation2 + $0x118] sm:$0xff] %vm189_vm5, %v2960_v41 }
 0x1a2   : > { %v6328_v43 = vpop.f32.mrb[92].mxu0  ;;  %2994 = vst.msk [vmem:[#allocation2 + $0x108] sm:$0xff] %vm189_vm5, %v2958_v28  ;;  %v6294_v0 = vpop.f32.mrb[92].mxu1 }
 0x1a3   : > { %v3810_v30 = vpop.f32.mrb[93].mxu0  ;;  %v3443_v45 = vadd.f32 %v6294_v0, %v3040_v44  ;;  %v3310_v47 = vpop.f32.mrb[93].mxu1 }
 0x1a4   : > { %v6329_v27 = vpop.f32.mrb[94].mxu0  ;;  %v3553_v49 = vld [vmem:[#allocation2 + $0x10] sm:$0xff]  ;;  %v3441_v3 = vadd.f32 %v3310_v47, %v3038_v31  ;;  %v6295_v50 = vpop.f32.mrb[94].mxu1 }
 0x1a5   : > { %v3813_v51 = vpop.f32.mrb[95].mxu0  ;;  %3479 = vst.msk [vmem:[#allocation2 + $0x30] sm:$0xff] %vm189_vm5, %v3443_v45  ;;  %v3955_v52 = vadd.f32 %v6328_v43, %v3553_v49  ;;  %v3551_v22 = vld [vmem:[#allocation2] sm:$0xff]  ;;  %v3444_v53 = vadd.f32 %v6295_v50, %v3041_v32  ;;  %v3313_v54 = vpop.f32.mrb[95].mxu1  ;;  %v3047_v43 = vld [vmem:[#allocation2 + $0x68] sm:$0xff] }
 0x1a6   : > { %3477 = vst.msk [vmem:[#allocation2 + $0x20] sm:$0xff] %vm189_vm5, %v3441_v3  ;;  %v3953_v55 = vadd.f32 %v3810_v30, %v3551_v22  ;;  %v3554_v56 = vld [vmem:[#allocation2 + $0x18] sm:$0xff]  ;;  %v3442_v58 = vadd.f32 %v3313_v54, %v3039_v48  ;;  %v3052_v3 = vld [vmem:[#allocation2 + $0x90] sm:$0xff] }
 0x1a7   : > { %3991 = vst.msk [vmem:[#allocation2 + $0x10] sm:$0xff] %vm189_vm5, %v3955_v52  ;;  %3480 = vst.msk [vmem:[#allocation2 + $0x38] sm:$0xff] %vm189_vm5, %v3444_v53  ;;  %v3956_v59 = vadd.f32 %v6329_v27, %v3554_v56  ;;  %v3552_v60 = vld [vmem:[#allocation2 + $0x8] sm:$0xff]  ;;  %v3050_v52 = vld [vmem:[#allocation2 + $0x80] sm:$0xff] }
 0x1a8   : > { %3989 = vst.msk [vmem:[#allocation2] sm:$0xff] %vm189_vm5, %v3953_v55  ;;  %3478 = vst.msk [vmem:[#allocation2 + $0x28] sm:$0xff] %vm189_vm5, %v3442_v58  ;;  %v3954_v62 = vadd.f32 %v3813_v51, %v3552_v60  ;;  %v3053_v55 = vld [vmem:[#allocation2 + $0x98] sm:$0xff] }
 0x1a9   : > { %3992 = vst.msk [vmem:[#allocation2 + $0x18] sm:$0xff] %vm189_vm5, %v3956_v59 }
 0x1aa   : > { %v6332_v63 = vpop.f32.mrb[96].mxu0  ;;  %3990 = vst.msk [vmem:[#allocation2 + $0x8] sm:$0xff] %vm189_vm5, %v3954_v62  ;;  %v6298_v11 = vpop.f32.mrb[96].mxu1 }
 0x1ab   : > { %v3826_v57 = vpop.f32.mrb[97].mxu0  ;;  %v3447_v16 = vadd.f32 %v6298_v11, %v3044_v4  ;;  %v3326_v6 = vpop.f32.mrb[97].mxu1 }
 0x1ac   : > { %v6333_v7 = vpop.f32.mrb[98].mxu0  ;;  %v3557_v8 = vld [vmem:[#allocation2 + $0x30] sm:$0xff]  ;;  %v3445_v61 = vadd.f32 %v3326_v6, %v3042_v5  ;;  %v6299_v46 = vpop.f32.mrb[98].mxu1 }
 0x1ad   : > { %v3829_v35 = vpop.f32.mrb[99].mxu0  ;;  %3483 = vst.msk [vmem:[#allocation2 + $0x50] sm:$0xff] %vm189_vm5, %v3447_v16  ;;  %v3959_v10 = vadd.f32 %v6332_v63, %v3557_v8  ;;  %v3555_v14 = vld [vmem:[#allocation2 + $0x20] sm:$0xff]  ;;  %v3448_v18 = vadd.f32 %v6299_v46, %v3045_v2  ;;  %v3329_v21 = vpop.f32.mrb[99].mxu1  ;;  %v3051_v63 = vld [vmem:[#allocation2 + $0x88] sm:$0xff] }
 0x1ae   : > { %3481 = vst.msk [vmem:[#allocation2 + $0x40] sm:$0xff] %vm189_vm5, %v3445_v61  ;;  %v3957_v37 = vadd.f32 %v3826_v57, %v3555_v14  ;;  %v3558_v13 = vld [vmem:[#allocation2 + $0x38] sm:$0xff]  ;;  %v3446_v9 = vadd.f32 %v3329_v21, %v3043_v20  ;;  %v3056_v61 = vld [vmem:[#allocation2 + $0xb0] sm:$0xff] }
 0x1af   : > { %3995 = vst.msk [vmem:[#allocation2 + $0x30] sm:$0xff] %vm189_vm5, %v3959_v10  ;;  %3484 = vst.msk [vmem:[#allocation2 + $0x58] sm:$0xff] %vm189_vm5, %v3448_v18  ;;  %v3960_v23 = vadd.f32 %v6333_v7, %v3558_v13  ;;  %v3556_v24 = vld [vmem:[#allocation2 + $0x28] sm:$0xff]  ;;  %v3054_v10 = vld [vmem:[#allocation2 + $0xa0] sm:$0xff] }
 0x1b0   : > { %3993 = vst.msk [vmem:[#allocation2 + $0x20] sm:$0xff] %vm189_vm5, %v3957_v37  ;;  %3482 = vst.msk [vmem:[#allocation2 + $0x48] sm:$0xff] %vm189_vm5, %v3446_v9  ;;  %v3958_v19 = vadd.f32 %v3829_v35, %v3556_v24  ;;  %v3057_v37 = vld [vmem:[#allocation2 + $0xb8] sm:$0xff] }
 0x1b1   : > { %3996 = vst.msk [vmem:[#allocation2 + $0x38] sm:$0xff] %vm189_vm5, %v3960_v23 }
 0x1b2   : > { %v6336_v25 = vpop.f32.mrb[100].mxu0  ;;  %3994 = vst.msk [vmem:[#allocation2 + $0x28] sm:$0xff] %vm189_vm5, %v3958_v19  ;;  %v6302_v12 = vpop.f32.mrb[100].mxu1 }
 0x1b3   : > { %v3842_v15 = vpop.f32.mrb[101].mxu0  ;;  %v3451_v29 = vadd.f32 %v6302_v12, %v3048_v26  ;;  %v3342_v34 = vpop.f32.mrb[101].mxu1 }
 0x1b4   : > { %v6337_v36 = vpop.f32.mrb[102].mxu0  ;;  %v3561_v38 = vld [vmem:[#allocation2 + $0x50] sm:$0xff]  ;;  %v3449_v1 = vadd.f32 %v3342_v34, %v3046_v33  ;;  %v6303_v39 = vpop.f32.mrb[102].mxu1 }
 0x1b5   : > { %v3845_v40 = vpop.f32.mrb[103].mxu0  ;;  %3487 = vst.msk [vmem:[#allocation2 + $0x70] sm:$0xff] %vm189_vm5, %v3451_v29  ;;  %v3963_v41 = vadd.f32 %v6336_v25, %v3561_v38  ;;  %v3559_v42 = vld [vmem:[#allocation2 + $0x40] sm:$0xff]  ;;  %v3452_v28 = vadd.f32 %v6303_v39, %v3049_v17  ;;  %v3345_v44 = vpop.f32.mrb[103].mxu1  ;;  %v3055_v25 = vld [vmem:[#allocation2 + $0xa8] sm:$0xff] }
 0x1b6   : > { %3485 = vst.msk [vmem:[#allocation2 + $0x60] sm:$0xff] %vm189_vm5, %v3449_v1  ;;  %v3961_v0 = vadd.f32 %v3842_v15, %v3559_v42  ;;  %v3562_v30 = vld [vmem:[#allocation2 + $0x58] sm:$0xff]  ;;  %v3450_v45 = vadd.f32 %v3345_v44, %v3047_v43  ;;  %v3060_v1 = vld [vmem:[#allocation2 + $0xd0] sm:$0xff] }
 0x1b7   : > { %3999 = vst.msk [vmem:[#allocation2 + $0x50] sm:$0xff] %vm189_vm5, %v3963_v41  ;;  %3488 = vst.msk [vmem:[#allocation2 + $0x78] sm:$0xff] %vm189_vm5, %v3452_v28  ;;  %v3964_v31 = vadd.f32 %v6337_v36, %v3562_v30  ;;  %v3560_v47 = vld [vmem:[#allocation2 + $0x48] sm:$0xff]  ;;  %v3058_v41 = vld [vmem:[#allocation2 + $0xc0] sm:$0xff] }
 0x1b8   : > { %3997 = vst.msk [vmem:[#allocation2 + $0x40] sm:$0xff] %vm189_vm5, %v3961_v0  ;;  %3486 = vst.msk [vmem:[#allocation2 + $0x68] sm:$0xff] %vm189_vm5, %v3450_v45  ;;  %v3962_v27 = vadd.f32 %v3845_v40, %v3560_v47  ;;  %v3061_v0 = vld [vmem:[#allocation2 + $0xd8] sm:$0xff] }
 0x1b9   : > { %4000 = vst.msk [vmem:[#allocation2 + $0x58] sm:$0xff] %vm189_vm5, %v3964_v31 }
 0x1ba   : > { %v6340_v49 = vpop.f32.mrb[104].mxu0  ;;  %3998 = vst.msk [vmem:[#allocation2 + $0x48] sm:$0xff] %vm189_vm5, %v3962_v27  ;;  %v6306_v32 = vpop.f32.mrb[104].mxu1 }
 0x1bb   : > { %v3858_v50 = vpop.f32.mrb[105].mxu0  ;;  %v3455_v51 = vadd.f32 %v6306_v32, %v3052_v3  ;;  %v3358_v22 = vpop.f32.mrb[105].mxu1 }
 0x1bc   : > { %v6341_v53 = vpop.f32.mrb[106].mxu0  ;;  %v3565_v48 = vld [vmem:[#allocation2 + $0x70] sm:$0xff]  ;;  %v3453_v54 = vadd.f32 %v3358_v22, %v3050_v52  ;;  %v6307_v56 = vpop.f32.mrb[106].mxu1 }
 0x1bd   : > { %v3861_v58 = vpop.f32.mrb[107].mxu0  ;;  %3491 = vst.msk [vmem:[#allocation2 + $0x90] sm:$0xff] %vm189_vm5, %v3455_v51  ;;  %v3967_v59 = vadd.f32 %v6340_v49, %v3565_v48  ;;  %v3563_v60 = vld [vmem:[#allocation2 + $0x60] sm:$0xff]  ;;  %v3456_v62 = vadd.f32 %v6307_v56, %v3053_v55  ;;  %v3361_v4 = vpop.f32.mrb[107].mxu1  ;;  %v3059_v49 = vld [vmem:[#allocation2 + $0xc8] sm:$0xff] }
 0x1be   : > { %3489 = vst.msk [vmem:[#allocation2 + $0x80] sm:$0xff] %vm189_vm5, %v3453_v54  ;;  %v3965_v11 = vadd.f32 %v3858_v50, %v3563_v60  ;;  %v3566_v57 = vld [vmem:[#allocation2 + $0x78] sm:$0xff]  ;;  %v3454_v16 = vadd.f32 %v3361_v4, %v3051_v63  ;;  %v3064_v54 = vld [vmem:[#allocation2 + $0xf0] sm:$0xff] }
 0x1bf   : > { %4003 = vst.msk [vmem:[#allocation2 + $0x70] sm:$0xff] %vm189_vm5, %v3967_v59  ;;  %3492 = vst.msk [vmem:[#allocation2 + $0x98] sm:$0xff] %vm189_vm5, %v3456_v62  ;;  %v3968_v5 = vadd.f32 %v6341_v53, %v3566_v57  ;;  %v3564_v6 = vld [vmem:[#allocation2 + $0x68] sm:$0xff]  ;;  %v3062_v59 = vld [vmem:[#allocation2 + $0xe0] sm:$0xff] }
 0x1c0   : > { %4001 = vst.msk [vmem:[#allocation2 + $0x60] sm:$0xff] %vm189_vm5, %v3965_v11  ;;  %3490 = vst.msk [vmem:[#allocation2 + $0x88] sm:$0xff] %vm189_vm5, %v3454_v16  ;;  %v3966_v7 = vadd.f32 %v3861_v58, %v3564_v6  ;;  %v3065_v11 = vld [vmem:[#allocation2 + $0xf8] sm:$0xff] }
 0x1c1   : > { %4004 = vst.msk [vmem:[#allocation2 + $0x78] sm:$0xff] %vm189_vm5, %v3968_v5 }
 0x1c2   : > { %v6344_v8 = vpop.f32.mrb[108].mxu0  ;;  %4002 = vst.msk [vmem:[#allocation2 + $0x68] sm:$0xff] %vm189_vm5, %v3966_v7  ;;  %v6310_v2 = vpop.f32.mrb[108].mxu1 }
 0x1c3   : > { %v3874_v46 = vpop.f32.mrb[109].mxu0  ;;  %v3459_v35 = vadd.f32 %v6310_v2, %v3056_v61  ;;  %v3374_v14 = vpop.f32.mrb[109].mxu1 }
 0x1c4   : > { %v6345_v18 = vpop.f32.mrb[110].mxu0  ;;  %v3569_v20 = vld [vmem:[#allocation2 + $0x90] sm:$0xff]  ;;  %v3457_v21 = vadd.f32 %v3374_v14, %v3054_v10  ;;  %v6311_v13 = vpop.f32.mrb[110].mxu1 }
 0x1c5   : > { %v3877_v9 = vpop.f32.mrb[111].mxu0  ;;  %3495 = vst.msk [vmem:[#allocation2 + $0xb0] sm:$0xff] %vm189_vm5, %v3459_v35  ;;  %v3971_v23 = vadd.f32 %v6344_v8, %v3569_v20  ;;  %v3567_v24 = vld [vmem:[#allocation2 + $0x80] sm:$0xff]  ;;  %v3460_v19 = vadd.f32 %v6311_v13, %v3057_v37  ;;  %v3377_v26 = vpop.f32.mrb[111].mxu1  ;;  %v3063_v8 = vld [vmem:[#allocation2 + $0xe8] sm:$0xff] }
 0x1c6   : > { %3493 = vst.msk [vmem:[#allocation2 + $0xa0] sm:$0xff] %vm189_vm5, %v3457_v21  ;;  %v3969_v12 = vadd.f32 %v3874_v46, %v3567_v24  ;;  %v3570_v15 = vld [vmem:[#allocation2 + $0x98] sm:$0xff]  ;;  %v3458_v29 = vadd.f32 %v3377_v26, %v3055_v25  ;;  %v3068_v21 = vld [vmem:[#allocation2 + $0x110] sm:$0xff] }
 0x1c7   : > { %4007 = vst.msk [vmem:[#allocation2 + $0x90] sm:$0xff] %vm189_vm5, %v3971_v23  ;;  %3496 = vst.msk [vmem:[#allocation2 + $0xb8] sm:$0xff] %vm189_vm5, %v3460_v19  ;;  %v3972_v33 = vadd.f32 %v6345_v18, %v3570_v15  ;;  %v3568_v34 = vld [vmem:[#allocation2 + $0x88] sm:$0xff]  ;;  %v3066_v23 = vld [vmem:[#allocation2 + $0x100] sm:$0xff] }
 0x1c8   : > { %4005 = vst.msk [vmem:[#allocation2 + $0x80] sm:$0xff] %vm189_vm5, %v3969_v12  ;;  %3494 = vst.msk [vmem:[#allocation2 + $0xa8] sm:$0xff] %vm189_vm5, %v3458_v29  ;;  %v3970_v36 = vadd.f32 %v3877_v9, %v3568_v34  ;;  %v3069_v12 = vld [vmem:[#allocation2 + $0x118] sm:$0xff] }
 0x1c9   : > { %4008 = vst.msk [vmem:[#allocation2 + $0x98] sm:$0xff] %vm189_vm5, %v3972_v33 }
 0x1ca   : > { %v6348_v38 = vpop.f32.mrb[112].mxu0  ;;  %4006 = vst.msk [vmem:[#allocation2 + $0x88] sm:$0xff] %vm189_vm5, %v3970_v36  ;;  %v6314_v17 = vpop.f32.mrb[112].mxu1 }
 0x1cb   : > { %v3890_v39 = vpop.f32.mrb[113].mxu0  ;;  %v3463_v40 = vadd.f32 %v6314_v17, %v3060_v1  ;;  %v3390_v42 = vpop.f32.mrb[113].mxu1 }
 0x1cc   : > { %v6349_v28 = vpop.f32.mrb[114].mxu0  ;;  %v3573_v43 = vld [vmem:[#allocation2 + $0xb0] sm:$0xff]  ;;  %v3461_v44 = vadd.f32 %v3390_v42, %v3058_v41  ;;  %v6315_v30 = vpop.f32.mrb[114].mxu1 }
 0x1cd   : > { %v3893_v45 = vpop.f32.mrb[115].mxu0  ;;  %3499 = vst.msk [vmem:[#allocation2 + $0xd0] sm:$0xff] %vm189_vm5, %v3463_v40  ;;  %v3975_v31 = vadd.f32 %v6348_v38, %v3573_v43  ;;  %v3571_v47 = vld [vmem:[#allocation2 + $0xa0] sm:$0xff]  ;;  %v3464_v27 = vadd.f32 %v6315_v30, %v3061_v0  ;;  %v3393_v3 = vpop.f32.mrb[115].mxu1  ;;  %v3067_v38 = vld [vmem:[#allocation2 + $0x108] sm:$0xff] }
 0x1ce   : > { %3497 = vst.msk [vmem:[#allocation2 + $0xc0] sm:$0xff] %vm189_vm5, %v3461_v44  ;;  %v3973_v32 = vadd.f32 %v3890_v39, %v3571_v47  ;;  %v3574_v50 = vld [vmem:[#allocation2 + $0xb8] sm:$0xff]  ;;  %v3462_v51 = vadd.f32 %v3393_v3, %v3059_v49  ;;  %v4064_v44 = vld [vmem:[#allocation2 + $0x10] sm:$0xff] }
 0x1cf   : > { %4011 = vst.msk [vmem:[#allocation2 + $0xb0] sm:$0xff] %vm189_vm5, %v3975_v31  ;;  %3500 = vst.msk [vmem:[#allocation2 + $0xd8] sm:$0xff] %vm189_vm5, %v3464_v27  ;;  %v3976_v52 = vadd.f32 %v6349_v28, %v3574_v50  ;;  %v3572_v22 = vld [vmem:[#allocation2 + $0xa8] sm:$0xff]  ;;  %v4062_v31 = vld [vmem:[#allocation2] sm:$0xff] }
 0x1d0   : > { %4009 = vst.msk [vmem:[#allocation2 + $0xa0] sm:$0xff] %vm189_vm5, %v3973_v32  ;;  %3498 = vst.msk [vmem:[#allocation2 + $0xc8] sm:$0xff] %vm189_vm5, %v3462_v51  ;;  %v3974_v53 = vadd.f32 %v3893_v45, %v3572_v22  ;;  %v4065_v32 = vld [vmem:[#allocation2 + $0x18] sm:$0xff] }
 0x1d1   : > { %4012 = vst.msk [vmem:[#allocation2 + $0xb8] sm:$0xff] %vm189_vm5, %v3976_v52 }
 0x1d2   : > { %v6352_v48 = vpop.f32.mrb[116].mxu0  ;;  %4010 = vst.msk [vmem:[#allocation2 + $0xa8] sm:$0xff] %vm189_vm5, %v3974_v53  ;;  %v6318_v55 = vpop.f32.mrb[116].mxu1 }
 0x1d3   : > { %v3906_v56 = vpop.f32.mrb[117].mxu0  ;;  %v3467_v58 = vadd.f32 %v6318_v55, %v3064_v54  ;;  %v3406_v60 = vpop.f32.mrb[117].mxu1 }
 0x1d4   : > { %v6353_v62 = vpop.f32.mrb[118].mxu0  ;;  %v3577_v63 = vld [vmem:[#allocation2 + $0xd0] sm:$0xff]  ;;  %v3465_v4 = vadd.f32 %v3406_v60, %v3062_v59  ;;  %v6319_v57 = vpop.f32.mrb[118].mxu1 }
 0x1d5   : > { %v3909_v16 = vpop.f32.mrb[119].mxu0  ;;  %3503 = vst.msk [vmem:[#allocation2 + $0xf0] sm:$0xff] %vm189_vm5, %v3467_v58  ;;  %v3979_v5 = vadd.f32 %v6352_v48, %v3577_v63  ;;  %v3575_v6 = vld [vmem:[#allocation2 + $0xc0] sm:$0xff]  ;;  %v3468_v7 = vadd.f32 %v6319_v57, %v3065_v11  ;;  %v3409_v61 = vpop.f32.mrb[119].mxu1  ;;  %v4063_v48 = vld [vmem:[#allocation2 + $0x8] sm:$0xff] }
 0x1d6   : > { %3501 = vst.msk [vmem:[#allocation2 + $0xe0] sm:$0xff] %vm189_vm5, %v3465_v4  ;;  %v3977_v2 = vadd.f32 %v3906_v56, %v3575_v6  ;;  %v3578_v46 = vld [vmem:[#allocation2 + $0xd8] sm:$0xff]  ;;  %v3466_v35 = vadd.f32 %v3409_v61, %v3063_v8  ;;  %v4068_v4 = vld [vmem:[#allocation2 + $0x30] sm:$0xff] }
 0x1d7   : > { %4015 = vst.msk [vmem:[#allocation2 + $0xd0] sm:$0xff] %vm189_vm5, %v3979_v5  ;;  %3504 = vst.msk [vmem:[#allocation2 + $0xf8] sm:$0xff] %vm189_vm5, %v3468_v7  ;;  %v3980_v10 = vadd.f32 %v6353_v62, %v3578_v46  ;;  %v3576_v14 = vld [vmem:[#allocation2 + $0xc8] sm:$0xff]  ;;  %v4066_v5 = vld [vmem:[#allocation2 + $0x20] sm:$0xff] }
 0x1d8   : > { %4013 = vst.msk [vmem:[#allocation2 + $0xc0] sm:$0xff] %vm189_vm5, %v3977_v2  ;;  %3502 = vst.msk [vmem:[#allocation2 + $0xe8] sm:$0xff] %vm189_vm5, %v3466_v35  ;;  %v3978_v18 = vadd.f32 %v3909_v16, %v3576_v14  ;;  %v4069_v2 = vld [vmem:[#allocation2 + $0x38] sm:$0xff] }
 0x1d9   : > { %4016 = vst.msk [vmem:[#allocation2 + $0xd8] sm:$0xff] %vm189_vm5, %v3980_v10 }
 0x1da   : > { %v6356_v20 = vpop.f32.mrb[120].mxu0  ;;  %4014 = vst.msk [vmem:[#allocation2 + $0xc8] sm:$0xff] %vm189_vm5, %v3978_v18  ;;  %v6322_v37 = vpop.f32.mrb[120].mxu1 }
 0x1db   : > { %v3922_v13 = vpop.f32.mrb[121].mxu0  ;;  %v3471_v9 = vadd.f32 %v6322_v37, %v3068_v21  ;;  %v3422_v24 = vpop.f32.mrb[121].mxu1 }
 0x1dc   : > { %v6357_v19 = vpop.f32.mrb[122].mxu0  ;;  %v3581_v25 = vld [vmem:[#allocation2 + $0xf0] sm:$0xff]  ;;  %v3469_v26 = vadd.f32 %v3422_v24, %v3066_v23  ;;  %v6323_v15 = vpop.f32.mrb[122].mxu1 }
 0x1dd   : > { %v3925_v29 = vpop.f32.mrb[123].mxu0  ;;  %3507 = vst.msk [vmem:[#allocation2 + $0x110] sm:$0xff] %vm189_vm5, %v3471_v9  ;;  %v3983_v33 = vadd.f32 %v6356_v20, %v3581_v25  ;;  %v3579_v34 = vld [vmem:[#allocation2 + $0xe0] sm:$0xff]  ;;  %v3472_v36 = vadd.f32 %v6323_v15, %v3069_v12  ;;  %v3425_v1 = vpop.f32.mrb[123].mxu1  ;;  %v4067_v20 = vld [vmem:[#allocation2 + $0x28] sm:$0xff] }
 0x1de   : > { %3505 = vst.msk [vmem:[#allocation2 + $0x100] sm:$0xff] %vm189_vm5, %v3469_v26  ;;  %v3981_v17 = vadd.f32 %v3922_v13, %v3579_v34  ;;  %v3582_v39 = vld [vmem:[#allocation2 + $0xf8] sm:$0xff]  ;;  %v3470_v40 = vadd.f32 %v3425_v1, %v3067_v38  ;;  %v4072_v26 = vld [vmem:[#allocation2 + $0x50] sm:$0xff] }
 0x1df   : > { %4019 = vst.msk [vmem:[#allocation2 + $0xf0] sm:$0xff] %vm189_vm5, %v3983_v33  ;;  %3508 = vst.msk [vmem:[#allocation2 + $0x118] sm:$0xff] %vm189_vm5, %v3472_v36  ;;  %v3984_v41 = vadd.f32 %v6357_v19, %v3582_v39  ;;  %v3580_v42 = vld [vmem:[#allocation2 + $0xe8] sm:$0xff]  ;;  %v4070_v33 = vld [vmem:[#allocation2 + $0x40] sm:$0xff] }
 0x1e0   : > { %4017 = vst.msk [vmem:[#allocation2 + $0xe0] sm:$0xff] %vm189_vm5, %v3981_v17  ;;  %3506 = vst.msk [vmem:[#allocation2 + $0x108] sm:$0xff] %vm189_vm5, %v3470_v40  ;;  %v3982_v28 = vadd.f32 %v3925_v29, %v3580_v42  ;;  %v4073_v17 = vld [vmem:[#allocation2 + $0x58] sm:$0xff] }
 0x1e1   : > { %4020 = vst.msk [vmem:[#allocation2 + $0xf8] sm:$0xff] %vm189_vm5, %v3984_v41 }
 0x1e2   : > { %v6360_v43 = vpop.f32.mrb[124].mxu0  ;;  %4018 = vst.msk [vmem:[#allocation2 + $0xe8] sm:$0xff] %vm189_vm5, %v3982_v28  ;;  %v6366_v0 = vpop.f32.mrb[124].mxu1 }
 0x1e3   : > { %v3938_v30 = vpop.f32.mrb[125].mxu0  ;;  %v4600_v45 = vadd.f32 %v6366_v0, %v4064_v44  ;;  %v4455_v47 = vpop.f32.mrb[125].mxu1 }
 0x1e4   : > { %v6361_v27 = vpop.f32.mrb[126].mxu0  ;;  %v3585_v49 = vld [vmem:[#allocation2 + $0x110] sm:$0xff]  ;;  %v4598_v3 = vadd.f32 %v4455_v47, %v4062_v31  ;;  %v6367_v50 = vpop.f32.mrb[126].mxu1 }
 0x1e5   : > { %v3941_v51 = vpop.f32.mrb[127].mxu0  ;;  %v3987_v52 = vadd.f32 %v6360_v43, %v3585_v49  ;;  %4636 = vst.msk [vmem:[#allocation2 + $0x10] sm:$0xff] %vm189_vm5, %v4600_v45  ;;  %v3583_v22 = vld [vmem:[#allocation2 + $0x100] sm:$0xff]  ;;  %v4601_v53 = vadd.f32 %v6367_v50, %v4065_v32  ;;  %v4458_v54 = vpop.f32.mrb[127].mxu1  ;;  %v4071_v43 = vld [vmem:[#allocation2 + $0x48] sm:$0xff] }
 0x1e6   : > { %v3985_v55 = vadd.f32 %v3938_v30, %v3583_v22  ;;  %4634 = vst.msk [vmem:[#allocation2] sm:$0xff] %vm189_vm5, %v4598_v3  ;;  %v3586_v56 = vld [vmem:[#allocation2 + $0x118] sm:$0xff]  ;;  %v4599_v58 = vadd.f32 %v4458_v54, %v4063_v48  ;;  %v4074_v54 = vld [vmem:[#allocation2 + $0x60] sm:$0xff] }
 0x1e7   : > { %4023 = vst.msk [vmem:[#allocation2 + $0x110] sm:$0xff] %vm189_vm5, %v3987_v52  ;;  %v3988_v59 = vadd.f32 %v6361_v27, %v3586_v56  ;;  %4637 = vst.msk [vmem:[#allocation2 + $0x18] sm:$0xff] %vm189_vm5, %v4601_v53  ;;  %v3584_v60 = vld [vmem:[#allocation2 + $0x108] sm:$0xff]  ;;  %v4076_v52 = vld [vmem:[#allocation2 + $0x70] sm:$0xff] }
 0x1e8   : > { %4021 = vst.msk [vmem:[#allocation2 + $0x100] sm:$0xff] %vm189_vm5, %v3985_v55  ;;  %v3986_v62 = vadd.f32 %v3941_v51, %v3584_v60  ;;  %4635 = vst.msk [vmem:[#allocation2 + $0x8] sm:$0xff] %vm189_vm5, %v4599_v58  ;;  %v4077_v60 = vld [vmem:[#allocation2 + $0x78] sm:$0xff] }
 0x1e9   : > { %4024 = vst.msk [vmem:[#allocation2 + $0x118] sm:$0xff] %vm189_vm5, %v3988_v59 }
 0x1ea   : > { %v6404_v63 = vpop.f32.mrb[128].mxu0  ;;  %4022 = vst.msk [vmem:[#allocation2 + $0x108] sm:$0xff] %vm189_vm5, %v3986_v62  ;;  %v6370_v11 = vpop.f32.mrb[128].mxu1 }
 0x1eb   : > { %v4967_v57 = vpop.f32.mrb[129].mxu0  ;;  %v4604_v16 = vadd.f32 %v6370_v11, %v4068_v4  ;;  %v4471_v6 = vpop.f32.mrb[129].mxu1 }
 0x1ec   : > { %v6405_v7 = vpop.f32.mrb[130].mxu0  ;;  %v4709_v8 = vld [vmem:[#allocation2 + $0x10] sm:$0xff]  ;;  %v4602_v61 = vadd.f32 %v4471_v6, %v4066_v5  ;;  %v6371_v46 = vpop.f32.mrb[130].mxu1 }
 0x1ed   : > { %v4970_v35 = vpop.f32.mrb[131].mxu0  ;;  %4640 = vst.msk [vmem:[#allocation2 + $0x30] sm:$0xff] %vm189_vm5, %v4604_v16  ;;  %v5112_v10 = vadd.f32 %v6404_v63, %v4709_v8  ;;  %v4707_v14 = vld [vmem:[#allocation2] sm:$0xff]  ;;  %v4605_v18 = vadd.f32 %v6371_v46, %v4069_v2  ;;  %v4474_v21 = vpop.f32.mrb[131].mxu1  ;;  %v4075_v16 = vld [vmem:[#allocation2 + $0x68] sm:$0xff] }
 0x1ee   : > { %4638 = vst.msk [vmem:[#allocation2 + $0x20] sm:$0xff] %vm189_vm5, %v4602_v61  ;;  %v5110_v37 = vadd.f32 %v4967_v57, %v4707_v14  ;;  %v4710_v13 = vld [vmem:[#allocation2 + $0x18] sm:$0xff]  ;;  %v4603_v9 = vadd.f32 %v4474_v21, %v4067_v20  ;;  %v4080_v21 = vld [vmem:[#allocation2 + $0x90] sm:$0xff] }
 0x1ef   : > { %5148 = vst.msk [vmem:[#allocation2 + $0x10] sm:$0xff] %vm189_vm5, %v5112_v10  ;;  %4641 = vst.msk [vmem:[#allocation2 + $0x38] sm:$0xff] %vm189_vm5, %v4605_v18  ;;  %v5113_v23 = vadd.f32 %v6405_v7, %v4710_v13  ;;  %v4708_v24 = vld [vmem:[#allocation2 + $0x8] sm:$0xff] }
 0x1f0   : > { %5146 = vst.msk [vmem:[#allocation2] sm:$0xff] %vm189_vm5, %v5110_v37  ;;  %4639 = vst.msk [vmem:[#allocation2 + $0x28] sm:$0xff] %vm189_vm5, %v4603_v9  ;;  %v5111_v19 = vadd.f32 %v4970_v35, %v4708_v24 }
 0x1f1   : > { %5149 = vst.msk [vmem:[#allocation2 + $0x18] sm:$0xff] %vm189_vm5, %v5113_v23  ;;  %v4078_v23 = vld [vmem:[#allocation2 + $0x80] sm:$0xff] }
 0x1f2   : > { %v6408_v25 = vpop.f32.mrb[132].mxu0  ;;  %5147 = vst.msk [vmem:[#allocation2 + $0x8] sm:$0xff] %vm189_vm5, %v5111_v19  ;;  %v6374_v12 = vpop.f32.mrb[132].mxu1 }
 0x1f3   : > { %v4983_v15 = vpop.f32.mrb[133].mxu0  ;;  %v4608_v29 = vadd.f32 %v6374_v12, %v4072_v26  ;;  %v4487_v34 = vpop.f32.mrb[133].mxu1  ;;  %v4081_v12 = vld [vmem:[#allocation2 + $0x98] sm:$0xff] }
 0x1f4   : > { %v6409_v36 = vpop.f32.mrb[134].mxu0  ;;  %v4713_v38 = vld [vmem:[#allocation2 + $0x30] sm:$0xff]  ;;  %v4606_v1 = vadd.f32 %v4487_v34, %v4070_v33  ;;  %v6375_v39 = vpop.f32.mrb[134].mxu1 }
 0x1f5   : > { %v4986_v40 = vpop.f32.mrb[135].mxu0  ;;  %4644 = vst.msk [vmem:[#allocation2 + $0x50] sm:$0xff] %vm189_vm5, %v4608_v29  ;;  %v5116_v41 = vadd.f32 %v6408_v25, %v4713_v38  ;;  %v4711_v42 = vld [vmem:[#allocation2 + $0x20] sm:$0xff]  ;;  %v4609_v28 = vadd.f32 %v6375_v39, %v4073_v17  ;;  %v4490_v44 = vpop.f32.mrb[135].mxu1  ;;  %v4079_v38 = vld [vmem:[#allocation2 + $0x88] sm:$0xff] }
 0x1f6   : > { %v5184_v0 = vld [vmem:[#allocation2 + $0x10] sm:$0xff]  ;;  %4642 = vst.msk [vmem:[#allocation2 + $0x40] sm:$0xff] %vm189_vm5, %v4606_v1  ;;  %v5114_v30 = vadd.f32 %v4983_v15, %v4711_v42  ;;  %v4714_v45 = vld [vmem:[#allocation2 + $0x38] sm:$0xff]  ;;  %v4607_v31 = vadd.f32 %v4490_v44, %v4071_v43 }
 0x1f7   : > { %5220 = vst.msk [vmem:[%s7754_s24 + $0x10] sm:$0xff] %vm189_vm5, %v5184_v0  ;;  %v5182_v47 = vld [vmem:[#allocation2] sm:$0xff]  ;;  %5152 = vst.msk [vmem:[#allocation2 + $0x30] sm:$0xff] %vm189_vm5, %v5116_v41  ;;  %v5117_v27 = vadd.f32 %v6409_v36, %v4714_v45  ;;  %v4712_v49 = vld [vmem:[#allocation2 + $0x28] sm:$0xff] }
 0x1f8   : > { %4645 = vst.msk [vmem:[#allocation2 + $0x58] sm:$0xff] %vm189_vm5, %v4609_v28  ;;  %5218 = vst.msk [vmem:[%s7754_s24] sm:$0xff] %vm189_vm5, %v5182_v47  ;;  %v5185_v3 = vld [vmem:[#allocation2 + $0x18] sm:$0xff]  ;;  %v5115_v32 = vadd.f32 %v4986_v40, %v4712_v49 }
 0x1f9   : > { %5150 = vst.msk [vmem:[#allocation2 + $0x20] sm:$0xff] %vm189_vm5, %v5114_v30  ;;  %4643 = vst.msk [vmem:[#allocation2 + $0x48] sm:$0xff] %vm189_vm5, %v4607_v31  ;;  %v5183_v50 = vld [vmem:[#allocation2 + $0x8] sm:$0xff]  ;;  %v4084_v31 = vld [vmem:[#allocation2 + $0xb0] sm:$0xff] }
 0x1fa   : > { %5221 = vst.msk [vmem:[%s7754_s24 + $0x18] sm:$0xff] %vm189_vm5, %v5185_v3  ;;  %5153 = vst.msk [vmem:[#allocation2 + $0x38] sm:$0xff] %vm189_vm5, %v5117_v27  ;;  %v6412_v51 = vpop.f32.mrb[136].mxu0  ;;  %v6378_v22 = vpop.f32.mrb[136].mxu1  ;;  %v4082_v3 = vld [vmem:[#allocation2 + $0xa0] sm:$0xff] }
 0x1fb   : > { %5219 = vst.msk [vmem:[%s7754_s24 + $0x8] sm:$0xff] %vm189_vm5, %v5183_v50  ;;  %5151 = vst.msk [vmem:[#allocation2 + $0x28] sm:$0xff] %vm189_vm5, %v5115_v32  ;;  %v4999_v53 = vpop.f32.mrb[137].mxu0  ;;  %v4612_v48 = vadd.f32 %v6378_v22, %v4076_v52  ;;  %v4503_v55 = vpop.f32.mrb[137].mxu1  ;;  %v4085_v22 = vld [vmem:[#allocation2 + $0xb8] sm:$0xff] }
 0x1fc   : > { %v6413_v56 = vpop.f32.mrb[138].mxu0  ;;  %v4717_v58 = vld [vmem:[#allocation2 + $0x50] sm:$0xff]  ;;  %v4610_v59 = vadd.f32 %v4503_v55, %v4074_v54  ;;  %v6379_v62 = vpop.f32.mrb[138].mxu1 }
 0x1fd   : > { %v5002_v63 = vpop.f32.mrb[139].mxu0  ;;  %4648 = vst.msk [vmem:[#allocation2 + $0x70] sm:$0xff] %vm189_vm5, %v4612_v48  ;;  %v5120_v4 = vadd.f32 %v6412_v51, %v4717_v58  ;;  %v4715_v11 = vld [vmem:[#allocation2 + $0x40] sm:$0xff]  ;;  %v4613_v57 = vadd.f32 %v6379_v62, %v4077_v60  ;;  %v4506_v5 = vpop.f32.mrb[139].mxu1  ;;  %v4083_v58 = vld [vmem:[#allocation2 + $0xa8] sm:$0xff] }
 0x1fe   : > { %v5188_v6 = vld [vmem:[#allocation2 + $0x30] sm:$0xff]  ;;  %4646 = vst.msk [vmem:[#allocation2 + $0x60] sm:$0xff] %vm189_vm5, %v4610_v59  ;;  %v5118_v7 = vadd.f32 %v4999_v53, %v4715_v11  ;;  %v4611_v61 = vadd.f32 %v4506_v5, %v4075_v16 }
 0x1ff   : > { %v4718_v8 = vld [vmem:[#allocation2 + $0x58] sm:$0xff]  ;;  %5224 = vst.msk [vmem:[%s7754_s24 + $0x30] sm:$0xff] %vm189_vm5, %v5188_v6  ;;  %5156 = vst.msk [vmem:[#allocation2 + $0x50] sm:$0xff] %vm189_vm5, %v5120_v4 }
 0x200   : > { %v5186_v2 = vld [vmem:[#allocation2 + $0x20] sm:$0xff]  ;;  %4649 = vst.msk [vmem:[#allocation2 + $0x78] sm:$0xff] %vm189_vm5, %v4613_v57  ;;  %v5121_v46 = vadd.f32 %v6413_v56, %v4718_v8  ;;  %v4716_v35 = vld [vmem:[#allocation2 + $0x48] sm:$0xff]  ;;  %5154 = vst.msk [vmem:[#allocation2 + $0x40] sm:$0xff] %vm189_vm5, %v5118_v7 }
 0x201   : > { %5222 = vst.msk [vmem:[%s7754_s24 + $0x20] sm:$0xff] %vm189_vm5, %v5186_v2  ;;  %v5189_v10 = vld [vmem:[#allocation2 + $0x38] sm:$0xff]  ;;  %4647 = vst.msk [vmem:[#allocation2 + $0x68] sm:$0xff] %vm189_vm5, %v4611_v61  ;;  %v5119_v14 = vadd.f32 %v5002_v63, %v4716_v35  ;;  %v4088_v61 = vld [vmem:[#allocation2 + $0xd0] sm:$0xff] }
 0x202   : > { %5225 = vst.msk [vmem:[%s7754_s24 + $0x38] sm:$0xff] %vm189_vm5, %v5189_v10  ;;  %v5187_v18 = vld [vmem:[#allocation2 + $0x28] sm:$0xff]  ;;  %5157 = vst.msk [vmem:[#allocation2 + $0x58] sm:$0xff] %vm189_vm5, %v5121_v46  ;;  %v6416_v20 = vpop.f32.mrb[140].mxu0  ;;  %v6382_v37 = vpop.f32.mrb[140].mxu1  ;;  %v4086_v10 = vld [vmem:[#allocation2 + $0xc0] sm:$0xff] }
 0x203   : > { %5223 = vst.msk [vmem:[%s7754_s24 + $0x28] sm:$0xff] %vm189_vm5, %v5187_v18  ;;  %5155 = vst.msk [vmem:[#allocation2 + $0x48] sm:$0xff] %vm189_vm5, %v5119_v14  ;;  %v5015_v13 = vpop.f32.mrb[141].mxu0  ;;  %v4616_v9 = vadd.f32 %v6382_v37, %v4080_v21  ;;  %v4519_v24 = vpop.f32.mrb[141].mxu1  ;;  %v4089_v37 = vld [vmem:[#allocation2 + $0xd8] sm:$0xff] }
 0x204   : > { %v6417_v19 = vpop.f32.mrb[142].mxu0  ;;  %v4721_v25 = vld [vmem:[#allocation2 + $0x70] sm:$0xff]  ;;  %v4614_v26 = vadd.f32 %v4519_v24, %v4078_v23  ;;  %v6383_v15 = vpop.f32.mrb[142].mxu1 }
 0x205   : > { %v5018_v29 = vpop.f32.mrb[143].mxu0  ;;  %4652 = vst.msk [vmem:[#allocation2 + $0x90] sm:$0xff] %vm189_vm5, %v4616_v9  ;;  %v5124_v33 = vadd.f32 %v6416_v20, %v4721_v25  ;;  %v4719_v34 = vld [vmem:[#allocation2 + $0x60] sm:$0xff]  ;;  %v4617_v36 = vadd.f32 %v6383_v15, %v4081_v12  ;;  %v4522_v1 = vpop.f32.mrb[143].mxu1  ;;  %v4087_v25 = vld [vmem:[#allocation2 + $0xc8] sm:$0xff] }
 0x206   : > { %v5192_v17 = vld [vmem:[#allocation2 + $0x50] sm:$0xff]  ;;  %4650 = vst.msk [vmem:[#allocation2 + $0x80] sm:$0xff] %vm189_vm5, %v4614_v26  ;;  %v5122_v39 = vadd.f32 %v5015_v13, %v4719_v34  ;;  %v4615_v41 = vadd.f32 %v4522_v1, %v4079_v38 }
 0x207   : > { %v4722_v40 = vld [vmem:[#allocation2 + $0x78] sm:$0xff]  ;;  %5228 = vst.msk [vmem:[%s7754_s24 + $0x50] sm:$0xff] %vm189_vm5, %v5192_v17  ;;  %v5190_v42 = vld [vmem:[#allocation2 + $0x40] sm:$0xff]  ;;  %5160 = vst.msk [vmem:[#allocation2 + $0x70] sm:$0xff] %vm189_vm5, %v5124_v33 }
 0x208   : > { %4653 = vst.msk [vmem:[#allocation2 + $0x98] sm:$0xff] %vm189_vm5, %v4617_v36  ;;  %v5125_v28 = vadd.f32 %v6417_v19, %v4722_v40  ;;  %v4720_v43 = vld [vmem:[#allocation2 + $0x68] sm:$0xff]  ;;  %5226 = vst.msk [vmem:[%s7754_s24 + $0x40] sm:$0xff] %vm189_vm5, %v5190_v42 }
 0x209   : > { %v5193_v44 = vld [vmem:[#allocation2 + $0x58] sm:$0xff]  ;;  %5158 = vst.msk [vmem:[#allocation2 + $0x60] sm:$0xff] %vm189_vm5, %v5122_v39  ;;  %4651 = vst.msk [vmem:[#allocation2 + $0x88] sm:$0xff] %vm189_vm5, %v4615_v41  ;;  %v5123_v0 = vadd.f32 %v5018_v29, %v4720_v43  ;;  %v4092_v41 = vld [vmem:[#allocation2 + $0xf0] sm:$0xff] }
 0x20a   : > { %5229 = vst.msk [vmem:[%s7754_s24 + $0x58] sm:$0xff] %vm189_vm5, %v5193_v44  ;;  %v5191_v30 = vld [vmem:[#allocation2 + $0x48] sm:$0xff]  ;;  %5161 = vst.msk [vmem:[#allocation2 + $0x78] sm:$0xff] %vm189_vm5, %v5125_v28  ;;  %v6420_v45 = vpop.f32.mrb[144].mxu0  ;;  %v6386_v47 = vpop.f32.mrb[144].mxu1  ;;  %v4090_v44 = vld [vmem:[#allocation2 + $0xe0] sm:$0xff] }
 0x20b   : > { %5227 = vst.msk [vmem:[%s7754_s24 + $0x48] sm:$0xff] %vm189_vm5, %v5191_v30  ;;  %5159 = vst.msk [vmem:[#allocation2 + $0x68] sm:$0xff] %vm189_vm5, %v5123_v0  ;;  %v5031_v27 = vpop.f32.mrb[145].mxu0  ;;  %v4620_v49 = vadd.f32 %v6386_v47, %v4084_v31  ;;  %v4535_v32 = vpop.f32.mrb[145].mxu1  ;;  %v4093_v47 = vld [vmem:[#allocation2 + $0xf8] sm:$0xff] }
 0x20c   : > { %v6421_v50 = vpop.f32.mrb[146].mxu0  ;;  %v4725_v51 = vld [vmem:[#allocation2 + $0x90] sm:$0xff]  ;;  %v4618_v52 = vadd.f32 %v4535_v32, %v4082_v3  ;;  %v6387_v53 = vpop.f32.mrb[146].mxu1 }
 0x20d   : > { %v5034_v48 = vpop.f32.mrb[147].mxu0  ;;  %4656 = vst.msk [vmem:[#allocation2 + $0xb0] sm:$0xff] %vm189_vm5, %v4620_v49  ;;  %v5128_v54 = vadd.f32 %v6420_v45, %v4725_v51  ;;  %v4723_v55 = vld [vmem:[#allocation2 + $0x80] sm:$0xff]  ;;  %v4621_v56 = vadd.f32 %v6387_v53, %v4085_v22  ;;  %v4538_v59 = vpop.f32.mrb[147].mxu1  ;;  %v4091_v51 = vld [vmem:[#allocation2 + $0xe8] sm:$0xff] }
 0x20e   : > { %v5196_v60 = vld [vmem:[#allocation2 + $0x70] sm:$0xff]  ;;  %4654 = vst.msk [vmem:[#allocation2 + $0xa0] sm:$0xff] %vm189_vm5, %v4618_v52  ;;  %v5126_v62 = vadd.f32 %v5031_v27, %v4723_v55  ;;  %v4619_v4 = vadd.f32 %v4538_v59, %v4083_v58 }
 0x20f   : > { %v4726_v63 = vld [vmem:[#allocation2 + $0x98] sm:$0xff]  ;;  %5232 = vst.msk [vmem:[%s7754_s24 + $0x70] sm:$0xff] %vm189_vm5, %v5196_v60  ;;  %5164 = vst.msk [vmem:[#allocation2 + $0x90] sm:$0xff] %vm189_vm5, %v5128_v54 }
 0x210   : > { %v5194_v11 = vld [vmem:[#allocation2 + $0x60] sm:$0xff]  ;;  %4657 = vst.msk [vmem:[#allocation2 + $0xb8] sm:$0xff] %vm189_vm5, %v4621_v56  ;;  %v5129_v57 = vadd.f32 %v6421_v50, %v4726_v63  ;;  %v4724_v16 = vld [vmem:[#allocation2 + $0x88] sm:$0xff]  ;;  %5162 = vst.msk [vmem:[#allocation2 + $0x80] sm:$0xff] %vm189_vm5, %v5126_v62 }
 0x211   : > { %5230 = vst.msk [vmem:[%s7754_s24 + $0x60] sm:$0xff] %vm189_vm5, %v5194_v11  ;;  %v5197_v5 = vld [vmem:[#allocation2 + $0x78] sm:$0xff]  ;;  %4655 = vst.msk [vmem:[#allocation2 + $0xa8] sm:$0xff] %vm189_vm5, %v4619_v4  ;;  %v5127_v6 = vadd.f32 %v5034_v48, %v4724_v16  ;;  %v4096_v4 = vld [vmem:[#allocation2 + $0x110] sm:$0xff] }
 0x212   : > { %5233 = vst.msk [vmem:[%s7754_s24 + $0x78] sm:$0xff] %vm189_vm5, %v5197_v5  ;;  %v5195_v7 = vld [vmem:[#allocation2 + $0x68] sm:$0xff]  ;;  %5165 = vst.msk [vmem:[#allocation2 + $0x98] sm:$0xff] %vm189_vm5, %v5129_v57  ;;  %v6424_v8 = vpop.f32.mrb[148].mxu0  ;;  %v6390_v2 = vpop.f32.mrb[148].mxu1  ;;  %v4094_v5 = vld [vmem:[#allocation2 + $0x100] sm:$0xff] }
 0x213   : > { %5231 = vst.msk [vmem:[%s7754_s24 + $0x68] sm:$0xff] %vm189_vm5, %v5195_v7  ;;  %5163 = vst.msk [vmem:[#allocation2 + $0x88] sm:$0xff] %vm189_vm5, %v5127_v6  ;;  %v5047_v46 = vpop.f32.mrb[149].mxu0  ;;  %v4624_v35 = vadd.f32 %v6390_v2, %v4088_v61  ;;  %v4551_v14 = vpop.f32.mrb[149].mxu1  ;;  %v4097_v2 = vld [vmem:[#allocation2 + $0x118] sm:$0xff] }
 0x214   : > { %v6425_v18 = vpop.f32.mrb[150].mxu0  ;;  %v4729_v20 = vld [vmem:[#allocation2 + $0xb0] sm:$0xff]  ;;  %v4622_v21 = vadd.f32 %v4551_v14, %v4086_v10  ;;  %v6391_v13 = vpop.f32.mrb[150].mxu1 }
 0x215   : > { %v5050_v9 = vpop.f32.mrb[151].mxu0  ;;  %4660 = vst.msk [vmem:[#allocation2 + $0xd0] sm:$0xff] %vm189_vm5, %v4624_v35  ;;  %v5132_v23 = vadd.f32 %v6424_v8, %v4729_v20  ;;  %v4727_v24 = vld [vmem:[#allocation2 + $0xa0] sm:$0xff]  ;;  %v4625_v19 = vadd.f32 %v6391_v13, %v4089_v37  ;;  %v4554_v26 = vpop.f32.mrb[151].mxu1  ;;  %v4095_v20 = vld [vmem:[#allocation2 + $0x108] sm:$0xff] }
 0x216   : > { %v5200_v12 = vld [vmem:[#allocation2 + $0x90] sm:$0xff]  ;;  %4658 = vst.msk [vmem:[#allocation2 + $0xc0] sm:$0xff] %vm189_vm5, %v4622_v21  ;;  %v5130_v15 = vadd.f32 %v5047_v46, %v4727_v24  ;;  %v4623_v33 = vadd.f32 %v4554_v26, %v4087_v25 }
 0x217   : > { %v4730_v29 = vld [vmem:[#allocation2 + $0xb8] sm:$0xff]  ;;  %5236 = vst.msk [vmem:[%s7754_s24 + $0x90] sm:$0xff] %vm189_vm5, %v5200_v12  ;;  %v5198_v34 = vld [vmem:[#allocation2 + $0x80] sm:$0xff]  ;;  %5168 = vst.msk [vmem:[#allocation2 + $0xb0] sm:$0xff] %vm189_vm5, %v5132_v23 }
 0x218   : > { %4661 = vst.msk [vmem:[#allocation2 + $0xd8] sm:$0xff] %vm189_vm5, %v4625_v19  ;;  %v5133_v36 = vadd.f32 %v6425_v18, %v4730_v29  ;;  %v4728_v38 = vld [vmem:[#allocation2 + $0xa8] sm:$0xff]  ;;  %5234 = vst.msk [vmem:[%s7754_s24 + $0x80] sm:$0xff] %vm189_vm5, %v5198_v34 }
 0x219   : > { %v5201_v1 = vld [vmem:[#allocation2 + $0x98] sm:$0xff]  ;;  %5166 = vst.msk [vmem:[#allocation2 + $0xa0] sm:$0xff] %vm189_vm5, %v5130_v15  ;;  %4659 = vst.msk [vmem:[#allocation2 + $0xc8] sm:$0xff] %vm189_vm5, %v4623_v33  ;;  %v5131_v17 = vadd.f32 %v5050_v9, %v4728_v38 }
 0x21a   : > { %5237 = vst.msk [vmem:[%s7754_s24 + $0x98] sm:$0xff] %vm189_vm5, %v5201_v1  ;;  %v5199_v39 = vld [vmem:[#allocation2 + $0x88] sm:$0xff]  ;;  %5169 = vst.msk [vmem:[#allocation2 + $0xb8] sm:$0xff] %vm189_vm5, %v5133_v36  ;;  %v6428_v40 = vpop.f32.mrb[152].mxu0  ;;  %v6394_v42 = vpop.f32.mrb[152].mxu1 }
 0x21b   : > { %5235 = vst.msk [vmem:[%s7754_s24 + $0x88] sm:$0xff] %vm189_vm5, %v5199_v39  ;;  %5167 = vst.msk [vmem:[#allocation2 + $0xa8] sm:$0xff] %vm189_vm5, %v5131_v17  ;;  %v5063_v28 = vpop.f32.mrb[153].mxu0  ;;  %v4628_v43 = vadd.f32 %v6394_v42, %v4092_v41  ;;  %v4567_v0 = vpop.f32.mrb[153].mxu1 }
 0x21c   : > { %v6429_v30 = vpop.f32.mrb[154].mxu0  ;;  %v4733_v45 = vld [vmem:[#allocation2 + $0xd0] sm:$0xff]  ;;  %v4626_v31 = vadd.f32 %v4567_v0, %v4090_v44  ;;  %v6395_v27 = vpop.f32.mrb[154].mxu1 }
 0x21d   : > { %v5066_v49 = vpop.f32.mrb[155].mxu0  ;;  %4664 = vst.msk [vmem:[#allocation2 + $0xf0] sm:$0xff] %vm189_vm5, %v4628_v43  ;;  %v5136_v3 = vadd.f32 %v6428_v40, %v4733_v45  ;;  %v4731_v32 = vld [vmem:[#allocation2 + $0xc0] sm:$0xff]  ;;  %v4629_v50 = vadd.f32 %v6395_v27, %v4093_v47  ;;  %v4570_v52 = vpop.f32.mrb[155].mxu1 }
 0x21e   : > { %v5204_v22 = vld [vmem:[#allocation2 + $0xb0] sm:$0xff]  ;;  %4662 = vst.msk [vmem:[#allocation2 + $0xe0] sm:$0xff] %vm189_vm5, %v4626_v31  ;;  %v5134_v53 = vadd.f32 %v5063_v28, %v4731_v32  ;;  %v4627_v54 = vadd.f32 %v4570_v52, %v4091_v51 }
 0x21f   : > { %v4734_v48 = vld [vmem:[#allocation2 + $0xd8] sm:$0xff]  ;;  %5240 = vst.msk [vmem:[%s7754_s24 + $0xb0] sm:$0xff] %vm189_vm5, %v5204_v22  ;;  %5172 = vst.msk [vmem:[#allocation2 + $0xd0] sm:$0xff] %vm189_vm5, %v5136_v3 }
 0x220   : > { %v5202_v55 = vld [vmem:[#allocation2 + $0xa0] sm:$0xff]  ;;  %4665 = vst.msk [vmem:[#allocation2 + $0xf8] sm:$0xff] %vm189_vm5, %v4629_v50  ;;  %v5137_v56 = vadd.f32 %v6429_v30, %v4734_v48  ;;  %v4732_v58 = vld [vmem:[#allocation2 + $0xc8] sm:$0xff]  ;;  %5170 = vst.msk [vmem:[#allocation2 + $0xc0] sm:$0xff] %vm189_vm5, %v5134_v53 }
 0x221   : > { %5238 = vst.msk [vmem:[%s7754_s24 + $0xa0] sm:$0xff] %vm189_vm5, %v5202_v55  ;;  %v5205_v59 = vld [vmem:[#allocation2 + $0xb8] sm:$0xff]  ;;  %4663 = vst.msk [vmem:[#allocation2 + $0xe8] sm:$0xff] %vm189_vm5, %v4627_v54  ;;  %v5135_v60 = vadd.f32 %v5066_v49, %v4732_v58 }
 0x222   : > { %5241 = vst.msk [vmem:[%s7754_s24 + $0xb8] sm:$0xff] %vm189_vm5, %v5205_v59  ;;  %v5203_v62 = vld [vmem:[#allocation2 + $0xa8] sm:$0xff]  ;;  %5173 = vst.msk [vmem:[#allocation2 + $0xd8] sm:$0xff] %vm189_vm5, %v5137_v56  ;;  %v6432_v63 = vpop.f32.mrb[156].mxu0  ;;  %v6398_v11 = vpop.f32.mrb[156].mxu1 }
 0x223   : > { %5239 = vst.msk [vmem:[%s7754_s24 + $0xa8] sm:$0xff] %vm189_vm5, %v5203_v62  ;;  %5171 = vst.msk [vmem:[#allocation2 + $0xc8] sm:$0xff] %vm189_vm5, %v5135_v60  ;;  %v5079_v57 = vpop.f32.mrb[157].mxu0  ;;  %v4632_v16 = vadd.f32 %v6398_v11, %v4096_v4  ;;  %v4583_v6 = vpop.f32.mrb[157].mxu1 }
 0x224   : > { %v6433_v7 = vpop.f32.mrb[158].mxu0  ;;  %v4737_v8 = vld [vmem:[#allocation2 + $0xf0] sm:$0xff]  ;;  %v4630_v61 = vadd.f32 %v4583_v6, %v4094_v5  ;;  %v6399_v46 = vpop.f32.mrb[158].mxu1 }
 0x225   : > { %v5082_v35 = vpop.f32.mrb[159].mxu0  ;;  %4668 = vst.msk [vmem:[#allocation2 + $0x110] sm:$0xff] %vm189_vm5, %v4632_v16  ;;  %v5140_v10 = vadd.f32 %v6432_v63, %v4737_v8  ;;  %v4735_v14 = vld [vmem:[#allocation2 + $0xe0] sm:$0xff]  ;;  %v4633_v18 = vadd.f32 %v6399_v46, %v4097_v2  ;;  %v4586_v21 = vpop.f32.mrb[159].mxu1 }
 0x226   : > { %v5208_v37 = vld [vmem:[#allocation2 + $0xd0] sm:$0xff]  ;;  %4666 = vst.msk [vmem:[#allocation2 + $0x100] sm:$0xff] %vm189_vm5, %v4630_v61  ;;  %v5138_v13 = vadd.f32 %v5079_v57, %v4735_v14  ;;  %v4631_v23 = vadd.f32 %v4586_v21, %v4095_v20 }
 0x227   : > { %v4738_v9 = vld [vmem:[#allocation2 + $0xf8] sm:$0xff]  ;;  %5244 = vst.msk [vmem:[%s7754_s24 + $0xd0] sm:$0xff] %vm189_vm5, %v5208_v37  ;;  %v5206_v24 = vld [vmem:[#allocation2 + $0xc0] sm:$0xff]  ;;  %5176 = vst.msk [vmem:[#allocation2 + $0xf0] sm:$0xff] %vm189_vm5, %v5140_v10 }
 0x228   : > { %4669 = vst.msk [vmem:[#allocation2 + $0x118] sm:$0xff] %vm189_vm5, %v4633_v18  ;;  %v5141_v19 = vadd.f32 %v6433_v7, %v4738_v9  ;;  %v4736_v25 = vld [vmem:[#allocation2 + $0xe8] sm:$0xff]  ;;  %5242 = vst.msk [vmem:[%s7754_s24 + $0xc0] sm:$0xff] %vm189_vm5, %v5206_v24 }
 0x229   : > { %v5209_v26 = vld [vmem:[#allocation2 + $0xd8] sm:$0xff]  ;;  %5174 = vst.msk [vmem:[#allocation2 + $0xe0] sm:$0xff] %vm189_vm5, %v5138_v13  ;;  %4667 = vst.msk [vmem:[#allocation2 + $0x108] sm:$0xff] %vm189_vm5, %v4631_v23  ;;  %v5139_v12 = vadd.f32 %v5082_v35, %v4736_v25 }
 0x22a   : > { %5245 = vst.msk [vmem:[%s7754_s24 + $0xd8] sm:$0xff] %vm189_vm5, %v5209_v26  ;;  %v5207_v15 = vld [vmem:[#allocation2 + $0xc8] sm:$0xff]  ;;  %5177 = vst.msk [vmem:[#allocation2 + $0xf8] sm:$0xff] %vm189_vm5, %v5141_v19  ;;  %v6436_v29 = vpop.f32.mrb[160].mxu0 }
 0x22b   : > { %5243 = vst.msk [vmem:[%s7754_s24 + $0xc8] sm:$0xff] %vm189_vm5, %v5207_v15  ;;  %5175 = vst.msk [vmem:[#allocation2 + $0xe8] sm:$0xff] %vm189_vm5, %v5139_v12  ;;  %v5095_v33 = vpop.f32.mrb[161].mxu0 }
 0x22c   : > { %v6437_v34 = vpop.f32.mrb[162].mxu0  ;;  %v4741_v36 = vld [vmem:[#allocation2 + $0x110] sm:$0xff] }
 0x22d   : > { %v5098_v38 = vpop.f32.mrb[163].mxu0  ;;  %v5144_v1 = vadd.f32 %v6436_v29, %v4741_v36  ;;  %v4739_v17 = vld [vmem:[#allocation2 + $0x100] sm:$0xff] }
 0x22e   : > { %v5212_v39 = vld [vmem:[#allocation2 + $0xf0] sm:$0xff]  ;;  %v5142_v40 = vadd.f32 %v5095_v33, %v4739_v17 }
 0x22f   : > { %v4742_v41 = vld [vmem:[#allocation2 + $0x118] sm:$0xff]  ;;  %5248 = vst.msk [vmem:[%s7754_s24 + $0xf0] sm:$0xff] %vm189_vm5, %v5212_v39  ;;  %5180 = vst.msk [vmem:[#allocation2 + $0x110] sm:$0xff] %vm189_vm5, %v5144_v1 }
 0x230   : > { %v5210_v42 = vld [vmem:[#allocation2 + $0xe0] sm:$0xff]  ;;  %v5145_v28 = vadd.f32 %v6437_v34, %v4742_v41  ;;  %v4740_v43 = vld [vmem:[#allocation2 + $0x108] sm:$0xff]  ;;  %5178 = vst.msk [vmem:[#allocation2 + $0x100] sm:$0xff] %vm189_vm5, %v5142_v40 }
 0x231   : > { %5246 = vst.msk [vmem:[%s7754_s24 + $0xe0] sm:$0xff] %vm189_vm5, %v5210_v42  ;;  %v5213_v44 = vld [vmem:[#allocation2 + $0xf8] sm:$0xff]  ;;  %v5143_v0 = vadd.f32 %v5098_v38, %v4740_v43 }
 0x232   : > { %5249 = vst.msk [vmem:[%s7754_s24 + $0xf8] sm:$0xff] %vm189_vm5, %v5213_v44  ;;  %v5211_v30 = vld [vmem:[#allocation2 + $0xe8] sm:$0xff]  ;;  %5181 = vst.msk [vmem:[#allocation2 + $0x118] sm:$0xff] %vm189_vm5, %v5145_v28 }
 0x233   : > { %5247 = vst.msk [vmem:[%s7754_s24 + $0xe8] sm:$0xff] %vm189_vm5, %v5211_v30  ;;  %5179 = vst.msk [vmem:[#allocation2 + $0x108] sm:$0xff] %vm189_vm5, %v5143_v0 }
 0x236   : > { %v5216_v45 = vld [vmem:[#allocation2 + $0x110] sm:$0xff] }
 0x237   : > { %5252 = vst.msk [vmem:[%s7754_s24 + $0x110] sm:$0xff] %vm189_vm5, %v5216_v45  ;;  %v5214_v31 = vld [vmem:[#allocation2 + $0x100] sm:$0xff] }
 0x238   : > { %5250 = vst.msk [vmem:[%s7754_s24 + $0x100] sm:$0xff] %vm189_vm5, %v5214_v31 }
 0x239   : > { %v5217_v47 = vld [vmem:[#allocation2 + $0x118] sm:$0xff] }
 0x23a   : > { %5253 = vst.msk [vmem:[%s7754_s24 + $0x118] sm:$0xff] %vm189_vm5, %v5217_v47  ;;  %v5215_v27 = vld [vmem:[#allocation2 + $0x108] sm:$0xff] }
 0x23b   : > { %5251 = vst.msk [vmem:[%s7754_s24 + $0x108] sm:$0xff] %vm189_vm5, %v5215_v27 }
 0x23c PF: > { %s12_s11 = sadd.s32 1, %s6670_s11   ;;  %s7900_s9 = smov %s6666_s10 }
 0x23d   : > { %p9_p5 = scmp.ge.s32.totalorder %s12_s11, 4   ;;  %s7901_s10 = smov %s7903_s12 }
 0x23f   :  { %11 = sbr.rel (!%p9_p5) target bundleno = 2 (0x2), region = 72 }

</bundles_post_ra>
